<compile_context>
chip_gen: v5e
topology: v5e:2x2
jax: 0.10.0
libtpu: 0.0.40
codegen_flags: <defaults>
</compile_context>

<pallas_src>
import functools

import jax
import jax.numpy as jnp
from jax.experimental import pallas as pl
from jax.experimental.pallas import tpu as pltpu  # noqa: F401  (TPU-specific tuning hooks)

EPS = 1e-5          # BatchNorm1d eps (PyTorch default)
HIDDEN = 512        # fixed by the module
LANE = 128          # TPU lane width


def _contrastive_kernel(
    x_ref,
    w1_ref, g1_ref, be1_ref,
    w2_ref, g2_ref, be2_ref,
    w3_ref, b3_ref,
    o_ref,
):
    inv_b = jnp.float32(1.0 / x_ref.shape[0])   # static batch size

    def dot_bf16(a_f32, w_ref):
        # bf16 x bf16 MXU matmul with f32 accumulation.
        return jnp.dot(a_f32.astype(jnp.bfloat16), w_ref[...],
                       preferred_element_type=jnp.float32)

    def bn_relu(h, g_ref, be_ref):
        # One-pass training-mode BatchNorm1d stats (biased variance) + affine + ReLU.
        mu = jnp.sum(h, axis=0, keepdims=True) * inv_b
        ex2 = jnp.sum(h * h, axis=0, keepdims=True) * inv_b
        var = ex2 - mu * mu
        scale = jax.lax.rsqrt(var + EPS) * g_ref[...]
        return jnp.maximum((h - mu) * scale + be_ref[...], 0.0)

    x = x_ref[...]

    # Layer 1: Linear (bias dropped - cancels under training-mode BN) + BN + ReLU.
    h = bn_relu(dot_bf16(x, w1_ref), g1_ref, be1_ref)
    # Layer 2: Linear (bias dropped) + BN + ReLU.
    h = bn_relu(dot_bf16(h, w2_ref), g2_ref, be2_ref)
    # Layer 3: Linear(HIDDEN, d_out_padded) + bias (padded columns are exactly 0).
    out = dot_bf16(h, w3_ref) + b3_ref[...]

    # Row-wise L2 normalize: out * rsqrt(sum(out^2)).  Zero padded columns do not
    # change the norm.  No eps, matching `x / torch.linalg.norm(x, dim=1, keepdim=True)`.
    sumsq = jnp.sum(out * out, axis=1, keepdims=True)
    o_ref[...] = (out * jax.lax.rsqrt(sumsq)).astype(o_ref.dtype)


@functools.partial(jax.jit, static_argnames=())
def contrastive_net(x, params):
    """x: (B, D_in) float32; params: dict from init_params (bf16 weights)."""
    B, _ = x.shape
    d_out = params["w3"].shape[1]
    d_pad = ((d_out + LANE - 1) // LANE) * LANE

    # Zero-pad the last layer's columns so the final matmul / output store are
    # lane-dense (multiple of 128).  Tiny pads, fused away under jit.
    w3p = jnp.pad(params["w3"], ((0, 0), (0, d_pad - d_out)))
    b3p = jnp.pad(params["b3"], ((0, 0), (0, d_pad - d_out)))

    args = (
        x,
        params["w1"], params["g1"], params["be1"],
        params["w2"], params["g2"], params["be2"],
        w3p, b3p,
    )

    # Single-block footprint must fit VMEM with headroom; budget derived for the
    # smallest chip (v7x: 64 MiB physical, 32 MiB default scoped) -> stay < 24 MiB.
    est = sum(int(a.size) * a.dtype.itemsize for a in args)
    est += B * d_pad * 4            # output block
    est += 6 * B * HIDDEN * 4       # live f32 activation temporaries (headroom)
    assert est <= 24 * 1024 * 1024, (
        f"batch too large for the single-block kernel (~{est / 2**20:.1f} MiB VMEM); "
        "use a batch-tiled two-pass-BN variant."
    )

    origin2 = lambda: (0, 0)   # grid=() -> every full-array (rank-2) block sits at (0, 0)
    out = pl.pallas_call(
        _contrastive_kernel,
        out_shape=jax.ShapeDtypeStruct((B, d_pad), jnp.float32),
        grid=(),
        in_specs=[pl.BlockSpec(a.shape, origin2) for a in args],
        out_specs=pl.BlockSpec((B, d_pad), origin2),
    )(*args)

    return out[:, :d_out]


def init_params(key, input_dim, output_dim):
    """PyTorch-style uniform fan-in init; weights stored in bf16 for DMA/MXU."""
    ks = jax.random.split(key, 6)

    def linear(kw, kb, fan_in, fan_out):
        bound = 1.0 / jnp.sqrt(jnp.float32(fan_in))
        w = jax.random.uniform(kw, (fan_in, fan_out), jnp.float32, -bound, bound)
        b = jax.random.uniform(kb, (1, fan_out), jnp.float32, -bound, bound)
        return w.astype(jnp.bfloat16), b

    w1, b1 = linear(ks[0], ks[1], input_dim, HIDDEN)
    w2, b2 = linear(ks[2], ks[3], HIDDEN, HIDDEN)
    w3, b3 = linear(ks[4], ks[5], HIDDEN, output_dim)

    return dict(
        # b1 / b2 are only consumed by the reference: they cancel exactly under
        # training-mode BatchNorm, so the kernel never loads them.
        w1=w1, b1=b1,
        w2=w2, b2=b2,
        w3=w3, b3=b3,
        g1=jnp.ones((1, HIDDEN), jnp.float32), be1=jnp.zeros((1, HIDDEN), jnp.float32),
        g2=jnp.ones((1, HIDDEN), jnp.float32), be2=jnp.zeros((1, HIDDEN), jnp.float32),
    )


def _reference(x, p):
    """Pure-JAX reference of the PyTorch forward (training-mode BN, with biases),
    using the same bf16 weights / bf16 matmul inputs as the kernel."""
    def dot_bf16(a, w):
        return jnp.dot(a.astype(jnp.bfloat16), w, preferred_element_type=jnp.float32)

    def bn_relu(h, g, be):
        mu = jnp.mean(h, axis=0, keepdims=True)
        var = jnp.mean((h - mu) ** 2, axis=0, keepdims=True)   # biased variance
        return jnp.maximum((h - mu) / jnp.sqrt(var + EPS) * g + be, 0.0)

    h = bn_relu(dot_bf16(x, p["w1"]) + p["b1"], p["g1"], p["be1"])
    h = bn_relu(dot_bf16(h, p["w2"]) + p["b2"], p["g2"], p["be2"])
    out = dot_bf16(h, p["w3"]) + p["b3"]
    return out / jnp.linalg.norm(out, axis=1, keepdims=True)


if __name__ == "__main__":
    key = jax.random.PRNGKey(0)
    k_x, k_p = jax.random.split(key)

    # Hidden width (512) is fixed by the module; the batch is sized to fill one
    # MXU pass in M while staying small, and the weight DMA is paid exactly once.
    B, D_IN, D_OUT = 128, 64, 32
    x = jax.random.normal(k_x, (B, D_IN), jnp.float32)
    params = init_params(k_p, D_IN, D_OUT)

    out = jax.block_until_ready(contrastive_net(x, params))
    ref = _reference(x, params)

    assert out.shape == (B, D_OUT)
    assert bool(jnp.all(jnp.isfinite(out)))
    assert jnp.allclose(out, ref, atol=2e-3, rtol=2e-3), (
        float(jnp.max(jnp.abs(out - ref))))
    # rows are unit-norm (padded columns are exactly zero, so the slice keeps it)
    assert jnp.allclose(jnp.linalg.norm(out, axis=1), 1.0, atol=1e-4)

    print("KERNEL_OK")
</pallas_src>

<mosaic_0001>
module attributes {stable_mosaic.version = 11 : i64} {
  func.func @_contrastive_kernel(%arg0: memref<128x64xf32, #tpu.memory_space<vmem>>, %arg1: memref<64x512xbf16, #tpu.memory_space<vmem>>, %arg2: memref<1x512xf32, #tpu.memory_space<vmem>>, %arg3: memref<1x512xf32, #tpu.memory_space<vmem>>, %arg4: memref<512x512xbf16, #tpu.memory_space<vmem>>, %arg5: memref<1x512xf32, #tpu.memory_space<vmem>>, %arg6: memref<1x512xf32, #tpu.memory_space<vmem>>, %arg7: memref<512x128xbf16, #tpu.memory_space<vmem>>, %arg8: memref<1x128xf32, #tpu.memory_space<vmem>>, %arg9: memref<128x128xf32, #tpu.memory_space<vmem>>) attributes {dimension_semantics = [], scalar_prefetch = 0 : i64, scratch_operands = 0 : i64, tpu.core_type = #tpu.core_type<tc>} {
    %c0 = arith.constant 0 : index
    %c0_0 = arith.constant 0 : index
    %0 = vector.load %arg0[%c0, %c0_0] : memref<128x64xf32, #tpu.memory_space<vmem>>, vector<128x64xf32>
    %1 = arith.truncf %0 : vector<128x64xf32> to vector<128x64xbf16>
    %c0_1 = arith.constant 0 : index
    %c0_2 = arith.constant 0 : index
    %2 = vector.load %arg1[%c0_1, %c0_2] : memref<64x512xbf16, #tpu.memory_space<vmem>>, vector<64x512xbf16>
    %cst = arith.constant dense<0.000000e+00> : vector<128x512xf32>
    %3 = tpu.matmul %1, %2, %cst {dimension_numbers = #tpu.dot_dimension_numbers<[1], [0], [0], [1], [0, 0, 1, 1], [], []>} : vector<128x64xbf16>, vector<64x512xbf16>, vector<128x512xf32> -> vector<128x512xf32>
    %cst_3 = arith.constant dense<0.000000e+00> : vector<512xf32>
    %4 = vector.multi_reduction <add>, %3, %cst_3 [0] : vector<128x512xf32> to vector<512xf32>
    %5 = vector.shape_cast %4 : vector<512xf32> to vector<1x512xf32>
    %cst_4 = arith.constant 7.812500e-03 : f32
    %6 = vector.broadcast %cst_4 : f32 to vector<1x512xf32>
    %7 = arith.mulf %5, %6 : vector<1x512xf32>
    %8 = arith.mulf %3, %3 : vector<128x512xf32>
    %cst_5 = arith.constant dense<0.000000e+00> : vector<512xf32>
    %9 = vector.multi_reduction <add>, %8, %cst_5 [0] : vector<128x512xf32> to vector<512xf32>
    %10 = vector.shape_cast %9 : vector<512xf32> to vector<1x512xf32>
    %cst_6 = arith.constant 7.812500e-03 : f32
    %11 = vector.broadcast %cst_6 : f32 to vector<1x512xf32>
    %12 = arith.mulf %10, %11 : vector<1x512xf32>
    %13 = arith.mulf %7, %7 : vector<1x512xf32>
    %14 = arith.subf %12, %13 : vector<1x512xf32>
    %cst_7 = arith.constant 9.99999974E-6 : f32
    %15 = vector.broadcast %cst_7 : f32 to vector<1x512xf32>
    %16 = arith.addf %14, %15 : vector<1x512xf32>
    %17 = math.rsqrt %16 : vector<1x512xf32>
    %c0_8 = arith.constant 0 : index
    %c0_9 = arith.constant 0 : index
    %18 = vector.load %arg2[%c0_8, %c0_9] : memref<1x512xf32, #tpu.memory_space<vmem>>, vector<1x512xf32>
    %19 = arith.mulf %17, %18 : vector<1x512xf32>
    %20 = vector.broadcast %7 : vector<1x512xf32> to vector<128x512xf32>
    %21 = arith.subf %3, %20 : vector<128x512xf32>
    %22 = vector.broadcast %19 : vector<1x512xf32> to vector<128x512xf32>
    %23 = arith.mulf %21, %22 : vector<128x512xf32>
    %c0_10 = arith.constant 0 : index
    %c0_11 = arith.constant 0 : index
    %24 = vector.load %arg3[%c0_10, %c0_11] : memref<1x512xf32, #tpu.memory_space<vmem>>, vector<1x512xf32>
    %25 = vector.broadcast %24 : vector<1x512xf32> to vector<128x512xf32>
    %26 = arith.addf %23, %25 : vector<128x512xf32>
    %cst_12 = arith.constant 0.000000e+00 : f32
    %27 = vector.broadcast %cst_12 : f32 to vector<128x512xf32>
    %28 = arith.maximumf %26, %27 : vector<128x512xf32>
    %29 = arith.truncf %28 : vector<128x512xf32> to vector<128x512xbf16>
    %c0_13 = arith.constant 0 : index
    %c0_14 = arith.constant 0 : index
    %30 = vector.load %arg4[%c0_13, %c0_14] : memref<512x512xbf16, #tpu.memory_space<vmem>>, vector<512x512xbf16>
    %cst_15 = arith.constant dense<0.000000e+00> : vector<128x512xf32>
    %31 = tpu.matmul %29, %30, %cst_15 {dimension_numbers = #tpu.dot_dimension_numbers<[1], [0], [0], [1], [0, 0, 1, 1], [], []>} : vector<128x512xbf16>, vector<512x512xbf16>, vector<128x512xf32> -> vector<128x512xf32>
    %cst_16 = arith.constant dense<0.000000e+00> : vector<512xf32>
    %32 = vector.multi_reduction <add>, %31, %cst_16 [0] : vector<128x512xf32> to vector<512xf32>
    %33 = vector.shape_cast %32 : vector<512xf32> to vector<1x512xf32>
    %cst_17 = arith.constant 7.812500e-03 : f32
    %34 = vector.broadcast %cst_17 : f32 to vector<1x512xf32>
    %35 = arith.mulf %33, %34 : vector<1x512xf32>
    %36 = arith.mulf %31, %31 : vector<128x512xf32>
    %cst_18 = arith.constant dense<0.000000e+00> : vector<512xf32>
    %37 = vector.multi_reduction <add>, %36, %cst_18 [0] : vector<128x512xf32> to vector<512xf32>
    %38 = vector.shape_cast %37 : vector<512xf32> to vector<1x512xf32>
    %cst_19 = arith.constant 7.812500e-03 : f32
    %39 = vector.broadcast %cst_19 : f32 to vector<1x512xf32>
    %40 = arith.mulf %38, %39 : vector<1x512xf32>
    %41 = arith.mulf %35, %35 : vector<1x512xf32>
    %42 = arith.subf %40, %41 : vector<1x512xf32>
    %cst_20 = arith.constant 9.99999974E-6 : f32
    %43 = vector.broadcast %cst_20 : f32 to vector<1x512xf32>
    %44 = arith.addf %42, %43 : vector<1x512xf32>
    %45 = math.rsqrt %44 : vector<1x512xf32>
    %c0_21 = arith.constant 0 : index
    %c0_22 = arith.constant 0 : index
    %46 = vector.load %arg5[%c0_21, %c0_22] : memref<1x512xf32, #tpu.memory_space<vmem>>, vector<1x512xf32>
    %47 = arith.mulf %45, %46 : vector<1x512xf32>
    %48 = vector.broadcast %35 : vector<1x512xf32> to vector<128x512xf32>
    %49 = arith.subf %31, %48 : vector<128x512xf32>
    %50 = vector.broadcast %47 : vector<1x512xf32> to vector<128x512xf32>
    %51 = arith.mulf %49, %50 : vector<128x512xf32>
    %c0_23 = arith.constant 0 : index
    %c0_24 = arith.constant 0 : index
    %52 = vector.load %arg6[%c0_23, %c0_24] : memref<1x512xf32, #tpu.memory_space<vmem>>, vector<1x512xf32>
    %53 = vector.broadcast %52 : vector<1x512xf32> to vector<128x512xf32>
    %54 = arith.addf %51, %53 : vector<128x512xf32>
    %cst_25 = arith.constant 0.000000e+00 : f32
    %55 = vector.broadcast %cst_25 : f32 to vector<128x512xf32>
    %56 = arith.maximumf %54, %55 : vector<128x512xf32>
    %57 = arith.truncf %56 : vector<128x512xf32> to vector<128x512xbf16>
    %c0_26 = arith.constant 0 : index
    %c0_27 = arith.constant 0 : index
    %58 = vector.load %arg7[%c0_26, %c0_27] : memref<512x128xbf16, #tpu.memory_space<vmem>>, vector<512x128xbf16>
    %cst_28 = arith.constant dense<0.000000e+00> : vector<128x128xf32>
    %59 = tpu.matmul %57, %58, %cst_28 {dimension_numbers = #tpu.dot_dimension_numbers<[1], [0], [0], [1], [0, 0, 1, 1], [], []>} : vector<128x512xbf16>, vector<512x128xbf16>, vector<128x128xf32> -> vector<128x128xf32>
    %c0_29 = arith.constant 0 : index
    %c0_30 = arith.constant 0 : index
    %60 = vector.load %arg8[%c0_29, %c0_30] : memref<1x128xf32, #tpu.memory_space<vmem>>, vector<1x128xf32>
    %61 = vector.broadcast %60 : vector<1x128xf32> to vector<128x128xf32>
    %62 = arith.addf %59, %61 : vector<128x128xf32>
    %63 = arith.mulf %62, %62 : vector<128x128xf32>
    %cst_31 = arith.constant dense<0.000000e+00> : vector<128xf32>
    %64 = vector.multi_reduction <add>, %63, %cst_31 [1] : vector<128x128xf32> to vector<128xf32>
    %65 = vector.shape_cast %64 : vector<128xf32> to vector<128x1xf32>
    %66 = math.rsqrt %65 : vector<128x1xf32>
    %67 = vector.broadcast %66 : vector<128x1xf32> to vector<128x128xf32>
    %68 = arith.mulf %62, %67 : vector<128x128xf32>
    %c0_32 = arith.constant 0 : index
    %c0_33 = arith.constant 0 : index
    %69 = vector.load %arg9[%c0_32, %c0_33] : memref<128x128xf32, #tpu.memory_space<vmem>>, vector<128x128xf32>
    tpu.vector_store %arg9[%c0_32, %c0_33], %68 {strides = array<i32>} : memref<128x128xf32, #tpu.memory_space<vmem>>, vector<128x128xf32>,
    return
  }
}

</mosaic_0001>

<bundles_post_ra>
// kernel: contrastive_net.1
= control target key start
LH: loop header
LB: loop body
LE: loop exit
PB: predicated region body
PF: predicated region fallthrough
CT: control target
= control target key end

     0   :  { %14 = vsyncpa [#allocation3], 0  ;;  %s4851_s12 = smov [#allocation2]   ;;  %s4852_s14 = smov 256   ;;  %s7086_s0 = inlined_call_operand.vmem [shape: f32[128,64], index: 0, kind: input, shape index: {}]   ;;  %s7087_s1 = inlined_call_operand.vmem [shape: bf16[64,512], index: 1, kind: input, shape index: {}]   ;;  %s7088_s2 = inlined_call_operand.vmem [shape: f32[1,512], index: 2, kind: input, shape index: {}]   ;;  %s7089_s3 = inlined_call_operand.vmem [shape: f32[1,512], index: 3, kind: input, shape index: {}]   ;;  %s7090_s4 = inlined_call_operand.hbm [shape: bf16[512,512], index: 4, kind: input, shape index: {}]   ;;  %s7091_s5 = inlined_call_operand.vmem [shape: f32[1,512], index: 5, kind: input, shape index: {}]   ;;  %s7092_s6 = inlined_call_operand.vmem [shape: f32[1,512], index: 6, kind: input, shape index: {}]   ;;  %s7093_s7 = inlined_call_operand.vmem [shape: bf16[512,128], index: 7, kind: input, shape index: {}]   ;;  %s7094_s8 = inlined_call_operand.vmem [shape: f32[1,128], index: 8, kind: input, shape index: {}]   ;;  %s7095_s9 = inlined_call_operand.vmem [shape: f32[128,128], index: 9, kind: output, shape index: {}]  }
   0x1   :  { %s27_s11 = sshll.u32 %s7090_s4, 4  ;;  %s29_s13 = sshll.u32 %s4851_s12, 4  ;;  %s28_s11 = int_to_ptr.hbm [resolvable:$true] %s27_s11  ;;  %s30_s13 = int_to_ptr.vmem [resolvable:$true] %s29_s13 }
   0x2   :  { %s4853_s15 = smov 16  }
   0x3   :  { %35 = dma.hbm_to_vmem [thread:$0]  %s28_s11, 16384, %s30_s13, [#allocation3], %s4852_s14, %s4852_s14, %s4853_s15  }
   0x4   :  { %4849 = dma.done.wait [#allocation3], 16384  }
   0x5   :  { %4850 = vsyncadd [#allocation3], 4294950912  ;;  %v3909_v0 = vld [vmem:[%s7087_s1 + $0x60] sm:$0xf]  ;;  %v4609_v1 = vld [vmem:[%s7087_s1 + $0x6c] sm:$0xf0] }
   0x6   :  { %v4607_v2 = vld [vmem:[%s7087_s1 + $0x64] sm:$0xf]  ;;  %v3910_v3 = vor.u32 %v4609_v1, %v3909_v0  ;;  %v3911_v4 = vld [vmem:[%s7087_s1 + $0x70] sm:$0xf0]  ;;  %v3917_v5 = vld [vmem:[%s7087_s1 + $0x68] sm:$0xf] }
   0x7   :  { %v4610_v6 = vld [vmem:[%s7087_s1 + $0x74] sm:$0xf0]  ;;  %v3914_v7 = vor.u32 %v4607_v2, %v3911_v4  ;;  %v4608_v9 = vld [vmem:[%s7087_s1 + $0x6c] sm:$0xf]  ;;  %v3919_v10 = vld [vmem:[%s7087_s1 + $0x78] sm:$0xf0] }
   0x8   :  { %v3918_v8 = vor.u32 %v4610_v6, %v3917_v5  ;;  %v3893_v11 = vld [vmem:[%s7087_s1 + $0x40] sm:$0xf]  ;;  %198 = vmatpush.bf16.msra.mxu0 %v3910_v3  ;;  %v3922_v12 = vor.u32 %v4608_v9, %v3919_v10  ;;  %v4605_v13 = vld [vmem:[%s7087_s1 + $0x4c] sm:$0xf0]  ;;  %v4603_v14 = vld [vmem:[%s7087_s1 + $0x44] sm:$0xf] }
   0x9   :  { %v3895_v15 = vld [vmem:[%s7087_s1 + $0x50] sm:$0xf0]  ;;  %247 = vmatpush.bf16.msra.mxu1 %v3914_v7  ;;  %v3894_v16 = vor.u32 %v4605_v13, %v3893_v11  ;;  %v3901_v18 = vld [vmem:[%s7087_s1 + $0x48] sm:$0xf]  ;;  %v4606_v19 = vld [vmem:[%s7087_s1 + $0x54] sm:$0xf0] }
   0xa   :  { %296 = vmatpush.bf16.msra.mxu2 %v3918_v8  ;;  %v3898_v17 = vor.u32 %v4603_v14, %v3895_v15  ;;  %v4604_v20 = vld [vmem:[%s7087_s1 + $0x4c] sm:$0xf]  ;;  %345 = vmatpush.bf16.msra.mxu3 %v3922_v12  ;;  %v3902_v21 = vor.u32 %v4606_v19, %v3901_v18  ;;  %v3903_v22 = vld [vmem:[%s7087_s1 + $0x58] sm:$0xf0]  ;;  %v3877_v23 = vld [vmem:[%s7087_s1 + $0x20] sm:$0xf] }
   0xb   :  { %v4601_v24 = vld [vmem:[%s7087_s1 + $0x2c] sm:$0xf0]  ;;  %v3906_v25 = vor.u32 %v4604_v20, %v3903_v22  ;;  %v4599_v26 = vld [vmem:[%s7087_s1 + $0x24] sm:$0xf]  ;;  %v3879_v27 = vld [vmem:[%s7087_s1 + $0x30] sm:$0xf0] }
   0xc   :  { %v3885_v28 = vld [vmem:[%s7087_s1 + $0x28] sm:$0xf]  ;;  %199 = vmatpush.bf16.msra.mxu0 %v3894_v16  ;;  %v3878_v29 = vor.u32 %v4601_v24, %v3877_v23  ;;  %v4602_v30 = vld [vmem:[%s7087_s1 + $0x34] sm:$0xf0]  ;;  %v4600_v31 = vld [vmem:[%s7087_s1 + $0x2c] sm:$0xf]  ;;  %v3882_v33 = vor.u32 %v4599_v26, %v3879_v27 }
   0xd   :  { %v3887_v32 = vld [vmem:[%s7087_s1 + $0x38] sm:$0xf0]  ;;  %248 = vmatpush.bf16.msra.mxu1 %v3898_v17  ;;  %v3886_v34 = vor.u32 %v4602_v30, %v3885_v28  ;;  %v3861_v35 = vld [vmem:[%s7087_s1] sm:$0xf]  ;;  %v4597_v36 = vld [vmem:[%s7087_s1 + $0xc] sm:$0xf0] }
   0xe   :  { %297 = vmatpush.bf16.msra.mxu2 %v3902_v21  ;;  %v4595_v37 = vld [vmem:[%s7087_s1 + $0x4] sm:$0xf]  ;;  %346 = vmatpush.bf16.msra.mxu3 %v3906_v25  ;;  %v3890_v38 = vor.u32 %v4600_v31, %v3887_v32  ;;  %v3863_v39 = vld [vmem:[%s7087_s1 + $0x10] sm:$0xf0]  ;;  %v3869_v40 = vld [vmem:[%s7087_s1 + $0x8] sm:$0xf]  ;;  %v3862_v44 = vor.u32 %v4597_v36, %v3861_v35 }
   0xf   :  { %v4598_v41 = vld [vmem:[%s7087_s1 + $0x14] sm:$0xf0]  ;;  %v4596_v42 = vld [vmem:[%s7087_s1 + $0xc] sm:$0xf]  ;;  %v3871_v43 = vld [vmem:[%s7087_s1 + $0x18] sm:$0xf0]  ;;  %v3866_v47 = vor.u32 %v4595_v37, %v3863_v39 }
  0x10   :  { %200 = vmatpush.bf16.msra.mxu0 %v3878_v29  ;;  %v49_v45 = vld [vmem:[%s7086_s0] sm:$0xff]  ;;  %v50_v46 = vld [vmem:[%s7086_s0 + $0x8] sm:$0xff]  ;;  %v3870_v48 = vor.u32 %v4598_v41, %v3869_v40  ;;  %v3874_v49 = vor.u32 %v4596_v42, %v3871_v43  ;;  %vm169_vm0 = vcmask 523264   ;;  %v51_v51 = vld [vmem:[%s7086_s0 + $0x10] sm:$0xff] }
  0x11   :  { %249 = vmatpush.bf16.msra.mxu1 %v3882_v33  ;;  %v65_v50 = vpack.c.bf16 %v50_v46, %v49_v45  ;;  %v52_v52 = vld [vmem:[%s7086_s0 + $0x18] sm:$0xff]  ;;  %v53_v54 = vld [vmem:[%s7086_s0 + $0x20] sm:$0xff]  ;;  %v54_v55 = vld [vmem:[%s7086_s0 + $0x28] sm:$0xff] }
  0x12   :  { %298 = vmatpush.bf16.msra.mxu2 %v3886_v34  ;;  %347 = vmatpush.bf16.msra.mxu3 %v3890_v38  ;;  %v66_v53 = vpack.c.bf16 %v52_v52, %v51_v51  ;;  %v67_v56 = vpack.c.bf16 %v54_v55, %v53_v54  ;;  %v55_v57 = vld [vmem:[%s7086_s0 + $0x30] sm:$0xff]  ;;  %v56_v58 = vld [vmem:[%s7086_s0 + $0x38] sm:$0xff]  ;;  %v57_v60 = vld [vmem:[%s7086_s0 + $0x40] sm:$0xff] }
  0x13   :  { %v68_v59 = vpack.c.bf16 %v56_v58, %v55_v57  ;;  %v58_v61 = vld [vmem:[%s7086_s0 + $0x48] sm:$0xff]  ;;  %v59_v63 = vld [vmem:[%s7086_s0 + $0x50] sm:$0xff]  ;;  %v60_v0 = vld [vmem:[%s7086_s0 + $0x58] sm:$0xff] }
  0x14   :  { %201 = vmatpush.bf16.msra.mxu0 %v3862_v44  ;;  %v69_v62 = vpack.c.bf16 %v58_v61, %v57_v60  ;;  %v70_v1 = vpack.c.bf16 %v60_v0, %v59_v63  ;;  %v61_v2 = vld [vmem:[%s7086_s0 + $0x60] sm:$0xff]  ;;  %v62_v3 = vld [vmem:[%s7086_s0 + $0x68] sm:$0xff]  ;;  %v63_v5 = vld [vmem:[%s7086_s0 + $0x70] sm:$0xff] }
  0x15   :  { %250 = vmatpush.bf16.msra.mxu1 %v3866_v47  ;;  %v71_v4 = vpack.c.bf16 %v62_v3, %v61_v2  ;;  %v64_v6 = vld [vmem:[%s7086_s0 + $0x78] sm:$0xff]  ;;  %v4325_v18 = vld [vmem:[#allocation2 + $0x2e0] sm:$0xf]  ;;  %v4705_v19 = vld [vmem:[#allocation2 + $0x2ec] sm:$0xf0] }
  0x16   :  { %299 = vmatpush.bf16.msra.mxu2 %v3870_v48  ;;  %348 = vmatpush.bf16.msra.mxu3 %v3874_v49  ;;  %v72_v7 = vpack.c.bf16 %v64_v6, %v63_v5  ;;  %v4453_v20 = vld [vmem:[#allocation2 + $0x3e0] sm:$0xf]  ;;  %v4326_v21 = vor.u32 %v4705_v19, %v4325_v18  ;;  %v4737_v22 = vld [vmem:[#allocation2 + $0x3ec] sm:$0xf0] }
  0x17   :  { %3923 = vmatmul.msk.bf16.vlgmr.msra.gmra.mxu0 %vm169_vm0, %v65_v50  ;;  %v4454_v23 = vor.u32 %v4737_v22, %v4453_v20  ;;  %v4069_v28 = vld [vmem:[#allocation2 + $0xe0] sm:$0xf]  ;;  %v4641_v29 = vld [vmem:[#allocation2 + $0xec] sm:$0xf0] }
  0x18   :  { %3931 = vmatmul.msk.bf16.vlgmr.msra.gmra.mxu1 %vm169_vm0, %v65_v50  ;;  %v4197_v30 = vld [vmem:[#allocation2 + $0x1e0] sm:$0xf]  ;;  %v4070_v31 = vor.u32 %v4641_v29, %v4069_v28  ;;  %v4673_v32 = vld [vmem:[#allocation2 + $0x1ec] sm:$0xf0] }
  0x19   :  { %3939 = vmatmul.msk.bf16.vlgmr.msra.gmra.mxu2 %vm169_vm0, %v65_v50  ;;  %3947 = vmatmul.msk.bf16.vlgmr.msra.gmra.mxu3 %vm169_vm0, %v65_v50  ;;  %v4198_v33 = vor.u32 %v4673_v32, %v4197_v30  ;;  %v4309_v38 = vld [vmem:[#allocation2 + $0x2c0] sm:$0xf]  ;;  %v4701_v39 = vld [vmem:[#allocation2 + $0x2cc] sm:$0xf0] }
  0x1a   :  { %1864 = vmatpush.bf16.msrb.mxu2 %v4326_v21  ;;  %1913 = vmatpush.bf16.msrb.mxu3 %v4454_v23  ;;  %v4437_v40 = vld [vmem:[#allocation2 + $0x3c0] sm:$0xf]  ;;  %v4310_v41 = vor.u32 %v4701_v39, %v4309_v38  ;;  %v4733_v42 = vld [vmem:[#allocation2 + $0x3cc] sm:$0xf0] }
  0x1b   :  { %1766 = vmatpush.bf16.msrb.mxu0 %v4070_v31  ;;  %1815 = vmatpush.bf16.msrb.mxu1 %v4198_v33  ;;  %v4438_v43 = vor.u32 %v4733_v42, %v4437_v40  ;;  %v4053_v48 = vld [vmem:[#allocation2 + $0xc0] sm:$0xf]  ;;  %v4637_v49 = vld [vmem:[#allocation2 + $0xcc] sm:$0xf0] }
  0x1c   :  { %v4181_v50 = vld [vmem:[#allocation2 + $0x1c0] sm:$0xf]  ;;  %v4054_v51 = vor.u32 %v4637_v49, %v4053_v48  ;;  %v4669_v52 = vld [vmem:[#allocation2 + $0x1cc] sm:$0xf0] }
  0x1d   :  { %v4293_v58 = vld [vmem:[#allocation2 + $0x2a0] sm:$0xf]  ;;  %v4633_v5 = vld [vmem:[#allocation2 + $0xac] sm:$0xf0] }
  0x1e   :  { %1865 = vmatpush.bf16.msrb.mxu2 %v4310_v41  ;;  %1914 = vmatpush.bf16.msrb.mxu3 %v4438_v43  ;;  %v4421_v60 = vld [vmem:[#allocation2 + $0x3a0] sm:$0xf]  ;;  %v4665_v18 = vld [vmem:[#allocation2 + $0x1ac] sm:$0xf0] }
  0x1f   :  { %1767 = vmatpush.bf16.msrb.mxu0 %v4054_v51  ;;  %v4165_v6 = vld [vmem:[#allocation2 + $0x1a0] sm:$0xf]  ;;  %v4693_v29 = vld [vmem:[#allocation2 + $0x28c] sm:$0xf0] }
  0x20   :  { %v4166_v19 = vor.u32 %v4665_v18, %v4165_v6  ;;  %v4277_v28 = vld [vmem:[#allocation2 + $0x280] sm:$0xf]  ;;  %v4725_v32 = vld [vmem:[#allocation2 + $0x38c] sm:$0xf0] }
  0x21   :  { %v4405_v30 = vld [vmem:[#allocation2 + $0x380] sm:$0xf]  ;;  %v4278_v31 = vor.u32 %v4693_v29, %v4277_v28  ;;  %v4629_v43 = vld [vmem:[#allocation2 + $0x8c] sm:$0xf0] }
  0x22   :  { %v4406_v33 = vor.u32 %v4725_v32, %v4405_v30  ;;  %v4021_v42 = vld [vmem:[#allocation2 + $0x80] sm:$0xf] }
  0x23   :  { %v4149_v48 = vld [vmem:[#allocation2 + $0x180] sm:$0xf]  ;;  %v4022_v49 = vor.u32 %v4629_v43, %v4021_v42  ;;  %v4689_v42 = vld [vmem:[#allocation2 + $0x26c] sm:$0xf0] }
  0x24   :  { %v4389_v43 = vld [vmem:[#allocation2 + $0x360] sm:$0xf] }
  0x27   :  { %3924 = vmatmul.msk.bf16.gmra.mxu0 %vm169_vm0, %v66_v53 }
  0x28   :  { %3932 = vmatmul.msk.bf16.gmra.mxu1 %vm169_vm0, %v66_v53 }
  0x29   :  { %3940 = vmatmul.msk.bf16.gmra.mxu2 %vm169_vm0, %v66_v53  ;;  %3948 = vmatmul.msk.bf16.gmra.mxu3 %vm169_vm0, %v66_v53  ;;  %v4182_v53 = vor.u32 %v4669_v52, %v4181_v50  ;;  %v4661_v50 = vld [vmem:[#allocation2 + $0x18c] sm:$0xf0] }
  0x2a   :  { %v4150_v51 = vor.u32 %v4661_v50, %v4149_v48 }
  0x2b   :  { %1816 = vmatpush.bf16.msrb.mxu1 %v4182_v53 }
  0x2f   :  { %1817 = vmatpush.bf16.msrb.mxu1 %v4166_v19 }
  0x33   :  { %1818 = vmatpush.bf16.msrb.mxu1 %v4150_v51 }
  0x37   :  { %3925 = vmatmul.msk.bf16.gmra.mxu0 %vm169_vm0, %v67_v56 }
  0x38   :  { %3933 = vmatmul.msk.bf16.gmra.mxu1 %vm169_vm0, %v67_v56 }
  0x39   :  { %3941 = vmatmul.msk.bf16.gmra.mxu2 %vm169_vm0, %v67_v56  ;;  %3949 = vmatmul.msk.bf16.gmra.mxu3 %vm169_vm0, %v67_v56 }
  0x47   :  { %3926 = vmatmul.msk.bf16.gmra.mxu0 %vm169_vm0, %v68_v59 }
  0x48   :  { %3934 = vmatmul.msk.bf16.gmra.mxu1 %vm169_vm0, %v68_v59 }
  0x49   :  { %3942 = vmatmul.msk.bf16.gmra.mxu2 %vm169_vm0, %v68_v59  ;;  %3950 = vmatmul.msk.bf16.gmra.mxu3 %vm169_vm0, %v68_v59  ;;  %v4697_v59 = vld [vmem:[#allocation2 + $0x2ac] sm:$0xf0] }
  0x4a   :  { %v4294_v61 = vor.u32 %v4697_v59, %v4293_v58 }
  0x4c   :  { %1866 = vmatpush.bf16.msrb.mxu2 %v4294_v61 }
  0x50   :  { %1867 = vmatpush.bf16.msrb.mxu2 %v4278_v31 }
  0x57   :  { %3927 = vmatmul.msk.bf16.gmra.mxu0 %vm169_vm0, %v69_v62 }
  0x58   :  { %3935 = vmatmul.msk.bf16.gmra.mxu1 %vm169_vm0, %v69_v62 }
  0x59   :  { %3943 = vmatmul.msk.bf16.gmra.mxu2 %vm169_vm0, %v69_v62  ;;  %3951 = vmatmul.msk.bf16.gmra.mxu3 %vm169_vm0, %v69_v62  ;;  %v4729_v62 = vld [vmem:[#allocation2 + $0x3ac] sm:$0xf0] }
  0x5a   :  { %v4422_v63 = vor.u32 %v4729_v62, %v4421_v60 }
  0x5c   :  { %1915 = vmatpush.bf16.msrb.mxu3 %v4422_v63 }
  0x60   :  { %1916 = vmatpush.bf16.msrb.mxu3 %v4406_v33  ;;  %v4261_v33 = vld [vmem:[#allocation2 + $0x260] sm:$0xf] }
  0x61   :  { %v4262_v51 = vor.u32 %v4689_v42, %v4261_v33 }
  0x63   :  { %1868 = vmatpush.bf16.msrb.mxu2 %v4262_v51  ;;  %v4625_v51 = vld [vmem:[#allocation2 + $0x6c] sm:$0xf0] }
  0x67   :  { %3928 = vmatmul.msk.bf16.gmra.mxu0 %vm169_vm0, %v70_v1 }
  0x68   :  { %3936 = vmatmul.msk.bf16.gmra.mxu1 %vm169_vm0, %v70_v1 }
  0x69   :  { %3944 = vmatmul.msk.bf16.gmra.mxu2 %vm169_vm0, %v70_v1  ;;  %3952 = vmatmul.msk.bf16.gmra.mxu3 %vm169_vm0, %v70_v1 }
  0x77   :  { %3929 = vmatmul.msk.bf16.gmra.mxu0 %vm169_vm0, %v71_v4 }
  0x78   :  { %3937 = vmatmul.msk.bf16.gmra.mxu1 %vm169_vm0, %v71_v4 }
  0x79   :  { %3945 = vmatmul.msk.bf16.gmra.mxu2 %vm169_vm0, %v71_v4  ;;  %3953 = vmatmul.msk.bf16.gmra.mxu3 %vm169_vm0, %v71_v4  ;;  %v4037_v4 = vld [vmem:[#allocation2 + $0xa0] sm:$0xf] }
  0x87   :  { %3930 = vmatmul.msk.bf16.gmra.mxu0 %vm169_vm0, %v72_v7 }
  0x88   :  { %3938 = vmatmul.msk.bf16.gmra.mxu1 %vm169_vm0, %v72_v7 }
  0x89   :  { %3946 = vmatmul.msk.bf16.gmra.mxu2 %vm169_vm0, %v72_v7  ;;  %3954 = vmatmul.msk.bf16.gmra.mxu3 %vm169_vm0, %v72_v7  ;;  %v4038_v7 = vor.u32 %v4633_v5, %v4037_v4 }
  0x8b   :  { %1768 = vmatpush.bf16.msrb.mxu0 %v4038_v7 }
  0x8f   :  { %1769 = vmatpush.bf16.msrb.mxu0 %v4022_v49 }
  0x94   :  { %v5083_v8 = vpop.f32.mrf.mxu0 }
  0x95   :  { %v5085_v9 = vpop.f32.mrf.mxu1  ;;  %v478_v53 = vmul.f32 %v5083_v8, %v5083_v8 }
  0x96   :  { %7162 = vst [vmem:[#allocation5_spill] sm:$0xff] %v5085_v9  ;;  %v479_v58 = vmul.f32 %v5085_v9, %v5085_v9 }
  0x9c   :  { %v5087_v10 = vpop.f32.mrf.mxu2  ;;  %v5089_v11 = vpop.f32.mrf.mxu3 }
  0x9d   :  { %7163 = vst [vmem:[#allocation6_spill] sm:$0xff] %v5087_v10  ;;  %v5091_v12 = vpop.f32.mrf.mxu0  ;;  %v5093_v13 = vpop.f32.mrf.mxu1  ;;  %v480_v4 = vmul.f32 %v5087_v10, %v5087_v10  ;;  %v481_v5 = vmul.f32 %v5089_v11, %v5089_v11 }
  0x9e   :  { %7164 = vst [vmem:[#allocation7_spill] sm:$0xff] %v5089_v11  ;;  %v482_v59 = vmul.f32 %v5091_v12, %v5091_v12  ;;  %v483_v60 = vmul.f32 %v5093_v13, %v5093_v13  ;;  %v390_v6 = vadd.f32 %v5091_v12, %v5083_v8  ;;  %v411_v28 = vadd.f32 %v5093_v13, %v5085_v9 }
  0x9f   :  { %7165 = vst [vmem:[#allocation8_spill] sm:$0xff] %v5093_v13 }
  0xa0   :  { %v542_v29 = vadd.f32 %v482_v59, %v478_v53  ;;  %v563_v31 = vadd.f32 %v483_v60, %v479_v58  ;;  %v4721_v53 = vld [vmem:[#allocation2 + $0x36c] sm:$0xf0] }
  0xa4   :  { %v5095_v14 = vpop.f32.mrf.mxu2  ;;  %v5097_v15 = vpop.f32.mrf.mxu3 }
  0xa5   :  { %7166 = vst [vmem:[#allocation9_spill] sm:$0xff] %v5095_v14  ;;  %v5099_v16 = vpop.f32.mrf.mxu0  ;;  %v5101_v17 = vpop.f32.mrf.mxu1  ;;  %v484_v7 = vmul.f32 %v5095_v14, %v5095_v14  ;;  %v485_v18 = vmul.f32 %v5097_v15, %v5097_v15  ;;  %v432_v32 = vadd.f32 %v5095_v14, %v5087_v10  ;;  %v453_v58 = vadd.f32 %v5097_v15, %v5089_v11 }
  0xa6   :  { %7167 = vst [vmem:[#allocation10_spill] sm:$0xff] %v5097_v15  ;;  %v486_v19 = vmul.f32 %v5099_v16, %v5099_v16  ;;  %v487_v30 = vmul.f32 %v5101_v17, %v5101_v17  ;;  %v391_v48 = vadd.f32 %v390_v6, %v5099_v16  ;;  %v412_v59 = vadd.f32 %v411_v28, %v5101_v17 }
  0xa7   :  { %7168 = vst [vmem:[#allocation11_spill] sm:$0xff] %v5099_v16  ;;  %v4390_v14 = vor.u32 %v4721_v53, %v4389_v43  ;;  %v584_v13 = vadd.f32 %v484_v7, %v480_v4  ;;  %v605_v6 = vadd.f32 %v485_v18, %v481_v5  ;;  %v4133_v53 = vld [vmem:[#allocation2 + $0x160] sm:$0xf] }
  0xa8   :  { %v543_v10 = vadd.f32 %v542_v29, %v486_v19  ;;  %v564_v33 = vadd.f32 %v563_v31, %v487_v30 }
  0xa9   :  { %1917 = vmatpush.bf16.msrb.mxu3 %v4390_v14 }
  0xac   :  { %v5103_v24 = vpop.f32.mrf.mxu2  ;;  %v5105_v25 = vpop.f32.mrf.mxu3 }
  0xad   :  { %7169 = vst [vmem:[#allocation12_spill] sm:$0xff] %v5105_v25  ;;  %v5107_v26 = vpop.f32.mrf.mxu0  ;;  %v5109_v27 = vpop.f32.mrf.mxu1  ;;  %v488_v49 = vmul.f32 %v5103_v24, %v5103_v24  ;;  %v489_v50 = vmul.f32 %v5105_v25, %v5105_v25  ;;  %v433_v42 = vadd.f32 %v432_v32, %v5103_v24  ;;  %v454_v28 = vadd.f32 %v453_v58, %v5105_v25 }
  0xae   :  { %v490_v60 = vmul.f32 %v5107_v26, %v5107_v26  ;;  %v491_v16 = vmul.f32 %v5109_v27, %v5109_v27  ;;  %v392_v7 = vadd.f32 %v391_v48, %v5107_v26  ;;  %v413_v18 = vadd.f32 %v412_v59, %v5109_v27 }
  0xaf   :  { %v585_v4 = vadd.f32 %v584_v13, %v488_v49  ;;  %v606_v5 = vadd.f32 %v605_v6, %v489_v50  ;;  %v4005_v50 = vld [vmem:[#allocation2 + $0x60] sm:$0xf] }
  0xb0   :  { %v544_v31 = vadd.f32 %v543_v10, %v490_v60  ;;  %v565_v13 = vadd.f32 %v564_v33, %v491_v16  ;;  %v4006_v10 = vor.u32 %v4625_v51, %v4005_v50  ;;  %v4657_v60 = vld [vmem:[#allocation2 + $0x16c] sm:$0xf0] }
  0xb2   :  { %1770 = vmatpush.bf16.msrb.mxu0 %v4006_v10 }
  0xb4   :  { %v5111_v34 = vpop.f32.mrf.mxu2  ;;  %v5113_v35 = vpop.f32.mrf.mxu3 }
  0xb5   :  { %7170 = vst [vmem:[#allocation13_spill] sm:$0xff] %v5111_v34  ;;  %v5115_v36 = vpop.f32.mrf.mxu0  ;;  %v5117_v37 = vpop.f32.mrf.mxu1  ;;  %v492_v15 = vmul.f32 %v5111_v34, %v5111_v34  ;;  %v493_v29 = vmul.f32 %v5113_v35, %v5113_v35  ;;  %v434_v49 = vadd.f32 %v433_v42, %v5111_v34  ;;  %v455_v6 = vadd.f32 %v454_v28, %v5113_v35 }
  0xb6   :  { %7171 = vst [vmem:[#allocation14_spill] sm:$0xff] %v5115_v36  ;;  %v494_v30 = vmul.f32 %v5115_v36, %v5115_v36  ;;  %v495_v32 = vmul.f32 %v5117_v37, %v5117_v37  ;;  %v393_v14 = vadd.f32 %v392_v7, %v5115_v36  ;;  %v414_v59 = vadd.f32 %v413_v18, %v5117_v37 }
  0xb7   :  { %v586_v58 = vadd.f32 %v585_v4, %v492_v15  ;;  %v4134_v42 = vor.u32 %v4657_v60, %v4133_v53  ;;  %v607_v18 = vadd.f32 %v606_v5, %v493_v29 }
  0xb8   :  { %v545_v7 = vadd.f32 %v544_v31, %v494_v30  ;;  %v566_v36 = vadd.f32 %v565_v13, %v495_v32 }
  0xb9   :  { %1819 = vmatpush.bf16.msrb.mxu1 %v4134_v42 }
  0xbc   :  { %v5119_v44 = vpop.f32.mrf.mxu2  ;;  %v5121_v45 = vpop.f32.mrf.mxu3 }
  0xbd   :  { %7172 = vst [vmem:[#allocation15_spill] sm:$0xff] %v5121_v45  ;;  %v5123_v46 = vpop.f32.mrf.mxu0  ;;  %v5125_v47 = vpop.f32.mrf.mxu1  ;;  %v496_v48 = vmul.f32 %v5119_v44, %v5119_v44  ;;  %v497_v25 = vmul.f32 %v5121_v45, %v5121_v45  ;;  %v435_v34 = vadd.f32 %v434_v49, %v5119_v44  ;;  %v456_v28 = vadd.f32 %v455_v6, %v5121_v45 }
  0xbe   :  { %v498_v16 = vmul.f32 %v5123_v46, %v5123_v46  ;;  %v499_v33 = vmul.f32 %v5125_v47, %v5125_v47  ;;  %v394_v50 = vadd.f32 %v393_v14, %v5123_v46  ;;  %v415_v5 = vadd.f32 %v414_v59, %v5125_v47 }
  0xbf   :  { %v587_v15 = vadd.f32 %v586_v58, %v496_v48  ;;  %v608_v13 = vadd.f32 %v607_v18, %v497_v25 }
  0xc0   :  { %v546_v14 = vadd.f32 %v545_v7, %v498_v16  ;;  %v567_v49 = vadd.f32 %v566_v36, %v499_v33 }
  0xc4   :  { %v5127_v54 = vpop.f32.mrf.mxu2  ;;  %v5129_v55 = vpop.f32.mrf.mxu3 }
  0xc5   :  { %v5131_v56 = vpop.f32.mrf.mxu0  ;;  %v5133_v57 = vpop.f32.mrf.mxu1  ;;  %v500_v4 = vmul.f32 %v5127_v54, %v5127_v54  ;;  %v501_v53 = vmul.f32 %v5129_v55, %v5129_v55  ;;  %v436_v59 = vadd.f32 %v435_v34, %v5127_v54  ;;  %v457_v60 = vadd.f32 %v456_v28, %v5129_v55 }
  0xc6   :  { %v502_v30 = vmul.f32 %v5131_v56, %v5131_v56  ;;  %v503_v29 = vmul.f32 %v5133_v57, %v5133_v57  ;;  %v395_v6 = vadd.f32 %v394_v50, %v5131_v56  ;;  %v416_v10 = vadd.f32 %v415_v5, %v5133_v57 }
  0xc7   :  { %v588_v42 = vadd.f32 %v587_v15, %v500_v4  ;;  %v609_v18 = vadd.f32 %v608_v13, %v501_v53 }
  0xc8   :  { %v547_v16 = vadd.f32 %v546_v14, %v502_v30  ;;  %v568_v33 = vadd.f32 %v567_v49, %v503_v29 }
  0xcc   :  { %v5135_v0 = vpop.f32.mrf.mxu2  ;;  %v5137_v1 = vpop.f32.mrf.mxu3 }
  0xcd   :  { %7173 = vst [vmem:[#allocation16_spill] sm:$0xff] %v5137_v1  ;;  %v5139_v2 = vpop.f32.mrf.mxu0  ;;  %v5141_v3 = vpop.f32.mrf.mxu1  ;;  %v504_v48 = vmul.f32 %v5135_v0, %v5135_v0  ;;  %v505_v45 = vmul.f32 %v5137_v1, %v5137_v1  ;;  %v437_v7 = vadd.f32 %v436_v59, %v5135_v0  ;;  %v458_v34 = vadd.f32 %v457_v60, %v5137_v1 }
  0xce   :  { %v506_v25 = vmul.f32 %v5139_v2, %v5139_v2  ;;  %v507_v36 = vmul.f32 %v5141_v3, %v5141_v3  ;;  %v396_v28 = vadd.f32 %v395_v6, %v5139_v2  ;;  %v417_v30 = vadd.f32 %v416_v10, %v5141_v3 }
  0xcf   :  { %v589_v50 = vadd.f32 %v588_v42, %v504_v48  ;;  %v610_v53 = vadd.f32 %v609_v18, %v505_v45 }
  0xd0   :  { %v548_v13 = vadd.f32 %v547_v16, %v506_v25  ;;  %v569_v14 = vadd.f32 %v568_v33, %v507_v36 }
  0xd4   :  { %v5143_v20 = vpop.f32.mrf.mxu2  ;;  %v5145_v21 = vpop.f32.mrf.mxu3 }
  0xd5   :  { %7174 = vst [vmem:[#allocation17_spill] sm:$0xff] %v5145_v21  ;;  %v5147_v22 = vpop.f32.mrf.mxu0  ;;  %v5149_v23 = vpop.f32.mrf.mxu1  ;;  %v508_v15 = vmul.f32 %v5143_v20, %v5143_v20  ;;  %v509_v4 = vmul.f32 %v5145_v21, %v5145_v21  ;;  %v438_v49 = vadd.f32 %v437_v7, %v5143_v20  ;;  %v459_v42 = vadd.f32 %v458_v34, %v5145_v21 }
  0xd6   :  { %7175 = vst [vmem:[#allocation18_spill] sm:$0xff] %v5147_v22  ;;  %v510_v5 = vmul.f32 %v5147_v22, %v5147_v22  ;;  %v511_v29 = vmul.f32 %v5149_v23, %v5149_v23  ;;  %v397_v6 = vadd.f32 %v396_v28, %v5147_v22  ;;  %v418_v59 = vadd.f32 %v417_v30, %v5149_v23 }
  0xd7   :  { %7176 = vst [vmem:[#allocation19_spill] sm:$0xff] %v5149_v23  ;;  %v590_v45 = vadd.f32 %v589_v50, %v508_v15  ;;  %v611_v28 = vadd.f32 %v610_v53, %v509_v4 }
  0xd8   :  { %v549_v7 = vadd.f32 %v548_v13, %v510_v5  ;;  %v570_v18 = vadd.f32 %v569_v14, %v511_v29 }
  0xdc   :  { %v5151_v38 = vpop.f32.mrf.mxu2  ;;  %v5153_v39 = vpop.f32.mrf.mxu3 }
  0xdd   :  { %v5155_v40 = vpop.f32.mrf.mxu0  ;;  %v5157_v41 = vpop.f32.mrf.mxu1  ;;  %v512_v60 = vmul.f32 %v5151_v38, %v5151_v38  ;;  %v513_v25 = vmul.f32 %v5153_v39, %v5153_v39  ;;  %v439_v34 = vadd.f32 %v438_v49, %v5151_v38  ;;  %v460_v30 = vadd.f32 %v459_v42, %v5153_v39 }
  0xde   :  { %7177 = vst [vmem:[#allocation20_spill] sm:$0xff] %v5155_v40  ;;  %v514_v36 = vmul.f32 %v5155_v40, %v5155_v40  ;;  %v515_v16 = vmul.f32 %v5157_v41, %v5157_v41  ;;  %v398_v15 = vadd.f32 %v397_v6, %v5155_v40  ;;  %v419_v5 = vadd.f32 %v418_v59, %v5157_v41 }
  0xdf   :  { %7178 = vst [vmem:[#allocation21_spill] sm:$0xff] %v5157_v41  ;;  %v591_v22 = vadd.f32 %v590_v45, %v512_v60  ;;  %v612_v4 = vadd.f32 %v611_v28, %v513_v25 }
  0xe0   :  { %v550_v53 = vadd.f32 %v549_v7, %v514_v36  ;;  %v571_v13 = vadd.f32 %v570_v18, %v515_v16 }
  0xe4   :  { %v5159_v52 = vpop.f32.mrf.mxu2  ;;  %v5169_v61 = vpop.f32.mrf.mxu3 }
  0xe5   :  { %v5171_v62 = vpop.f32.mrf.mxu0  ;;  %v5173_v63 = vpop.f32.mrf.mxu1  ;;  %v516_v50 = vmul.f32 %v5159_v52, %v5159_v52  ;;  %v517_v21 = vmul.f32 %v5169_v61, %v5169_v61  ;;  %v440_v6 = vadd.f32 %v439_v34, %v5159_v52  ;;  %v461_v25 = vadd.f32 %v460_v30, %v5169_v61 }
  0xe6   :  { %7179 = vst [vmem:[#allocation22_spill] sm:$0xff] %v5171_v62  ;;  %v518_v23 = vmul.f32 %v5171_v62, %v5171_v62  ;;  %v519_v29 = vmul.f32 %v5173_v63, %v5173_v63  ;;  %v399_v49 = vadd.f32 %v398_v15, %v5171_v62  ;;  %v420_v45 = vadd.f32 %v419_v5, %v5173_v63 }
  0xe7   :  { %7180 = vst [vmem:[#allocation23_spill] sm:$0xff] %v5173_v63  ;;  %v592_v41 = vadd.f32 %v591_v22, %v516_v50  ;;  %v613_v18 = vadd.f32 %v612_v4, %v517_v21 }
  0xe8   :  { %v551_v59 = vadd.f32 %v550_v53, %v518_v23  ;;  %v572_v16 = vadd.f32 %v571_v13, %v519_v29 }
  0xec   :  { %v5205_v9 = vpop.f32.mrf.mxu2  ;;  %v5211_v11 = vpop.f32.mrf.mxu3 }
  0xed   :  { %v5213_v43 = vpop.f32.mrf.mxu0  ;;  %v5217_v19 = vpop.f32.mrf.mxu1  ;;  %v520_v14 = vmul.f32 %v5205_v9, %v5205_v9  ;;  %v521_v60 = vmul.f32 %v5211_v11, %v5211_v11  ;;  %v441_v7 = vadd.f32 %v440_v6, %v5205_v9  ;;  %v462_v23 = vadd.f32 %v461_v25, %v5211_v11 }
  0xee   :  { %7181 = vst [vmem:[#allocation24_spill] sm:$0xff] %v5213_v43  ;;  %v522_v42 = vmul.f32 %v5213_v43, %v5213_v43  ;;  %v523_v34 = vmul.f32 %v5217_v19, %v5217_v19  ;;  %v400_v22 = vadd.f32 %v399_v49, %v5213_v43  ;;  %v421_v21 = vadd.f32 %v420_v45, %v5217_v19 }
  0xef   :  { %7182 = vst [vmem:[#allocation25_spill] sm:$0xff] %v5217_v19  ;;  %v593_v62 = vadd.f32 %v592_v41, %v520_v14  ;;  %v614_v5 = vadd.f32 %v613_v18, %v521_v60 }
  0xf0   :  { %v552_v29 = vadd.f32 %v551_v59, %v522_v42  ;;  %v573_v6 = vadd.f32 %v572_v16, %v523_v34 }
  0xf4   :  { %v5242_v51 = vpop.f32.mrf.mxu2  ;;  %v5251_v31 = vpop.f32.mrf.mxu3 }
  0xf5   :  { %7183 = vst [vmem:[#allocation26_spill] sm:$0xff] %v5251_v31  ;;  %v5253_v32 = vpop.f32.mrf.mxu0  ;;  %v5257_v58 = vpop.f32.mrf.mxu1  ;;  %v524_v53 = vmul.f32 %v5242_v51, %v5242_v51  ;;  %v525_v41 = vmul.f32 %v5251_v31, %v5251_v31  ;;  %v442_v60 = vadd.f32 %v441_v7, %v5242_v51  ;;  %v463_v45 = vadd.f32 %v462_v23, %v5251_v31 }
  0xf6   :  { %7184 = vst [vmem:[#allocation27_spill] sm:$0xff] %v5253_v32  ;;  %v526_v30 = vmul.f32 %v5253_v32, %v5253_v32  ;;  %v527_v4 = vmul.f32 %v5257_v58, %v5257_v58  ;;  %v401_v13 = vadd.f32 %v400_v22, %v5253_v32  ;;  %v422_v49 = vadd.f32 %v421_v21, %v5257_v58 }
  0xf7   :  { %7185 = vst [vmem:[#allocation28_spill] sm:$0xff] %v5257_v58  ;;  %v594_v7 = vadd.f32 %v593_v62, %v524_v53  ;;  %v615_v34 = vadd.f32 %v614_v5, %v525_v41 }
  0xf8   :  { %v553_v59 = vadd.f32 %v552_v29, %v526_v30  ;;  %v574_v22 = vadd.f32 %v573_v6, %v527_v4 }
  0xfc   :  { %v5282_v48 = vpop.f32.mrf.mxu2  ;;  %v5289_v10 = vpop.f32.mrf.mxu3 }
  0xfd   :  { %7186 = vst [vmem:[#allocation29_spill] sm:$0xff] %v5282_v48  ;;  %v5291_v1 = vpop.f32.mrf.mxu0  ;;  %v5299_v33 = vpop.f32.mrf.mxu1  ;;  %v528_v32 = vmul.f32 %v5282_v48, %v5282_v48  ;;  %v529_v4 = vmul.f32 %v5289_v10, %v5289_v10 }
  0xfe   :  { %7187 = vst [vmem:[#allocation30_spill] sm:$0xff] %v5289_v10  ;;  %v530_v14 = vmul.f32 %v5291_v1, %v5291_v1  ;;  %v531_v42 = vmul.f32 %v5299_v33, %v5299_v33  ;;  %v402_v25 = vadd.f32 %v401_v13, %v5291_v1  ;;  %v423_v21 = vadd.f32 %v422_v49, %v5299_v33 }
  0xff   :  { %7188 = vst [vmem:[#allocation31_spill] sm:$0xff] %v5291_v1  ;;  %v443_v13 = vadd.f32 %v442_v60, %v5282_v48  ;;  %v595_v60 = vadd.f32 %v594_v7, %v528_v32 }
 0x100   :  { %7189 = vst [vmem:[#allocation32_spill] sm:$0xff] %v5299_v33  ;;  %v554_v29 = vadd.f32 %v553_v59, %v530_v14  ;;  %v575_v58 = vadd.f32 %v574_v22, %v531_v42 }
 0x104   :  { %v5323_v36 = vpop.f32.mrf.mxu2  ;;  %v5328_v28 = vpop.f32.mrf.mxu3 }
 0x105   :  { %7190 = vst [vmem:[#allocation33_spill] sm:$0xff] %v5323_v36  ;;  %v5330_v15 = vpop.f32.mrf.mxu0  ;;  %v5336_v50 = vpop.f32.mrf.mxu1  ;;  %v532_v62 = vmul.f32 %v5323_v36, %v5323_v36  ;;  %v533_v22 = vmul.f32 %v5328_v28, %v5328_v28 }
 0x106   :  { %7191 = vst [vmem:[#allocation34_spill] sm:$0xff] %v5328_v28  ;;  %v534_v18 = vmul.f32 %v5330_v15, %v5330_v15  ;;  %v535_v16 = vmul.f32 %v5336_v50, %v5336_v50  ;;  %v403_v30 = vadd.f32 %v402_v25, %v5330_v15  ;;  %v424_v6 = vadd.f32 %v423_v21, %v5336_v50 }
 0x107   :  { %7192 = vst [vmem:[#allocation35_spill] sm:$0xff] %v5330_v15 }
 0x108   :  { %7193 = vst [vmem:[#allocation36_spill] sm:$0xff] %v5336_v50  ;;  %v555_v5 = vadd.f32 %v554_v29, %v534_v18  ;;  %v576_v59 = vadd.f32 %v575_v58, %v535_v16  ;;  %v464_v29 = vadd.f32 %v463_v45, %v5289_v10  ;;  %v444_v50 = vadd.f32 %v443_v13, %v5323_v36  ;;  %v4681_v10 = vld [vmem:[#allocation2 + $0x22c] sm:$0xf0]  ;;  %v4357_v36 = vld [vmem:[#allocation2 + $0x320] sm:$0xf] }
 0x109   :  { %v616_v58 = vadd.f32 %v615_v34, %v529_v4  ;;  %v596_v16 = vadd.f32 %v595_v60, %v532_v62 }
 0x10b   :  { %v617_v43 = vadd.f32 %v616_v58, %v533_v22 }
 0x10c   :  { %v5362_v23 = vpop.f32.mrf.mxu2  ;;  %v5368_v1 = vpop.f32.mrf.mxu3 }
 0x10d   :  { %7194 = vst [vmem:[#allocation37_spill] sm:$0xff] %v5362_v23  ;;  %v5370_v49 = vpop.f32.mrf.mxu0  ;;  %v5377_v14 = vpop.f32.mrf.mxu1  ;;  %v536_v18 = vmul.f32 %v5362_v23, %v5362_v23 }
 0x10e   :  { %7195 = vst [vmem:[#allocation38_spill] sm:$0xff] %v5368_v1  ;;  %v404_v53 = vadd.f32 %v403_v30, %v5370_v49  ;;  %v538_v41 = vmul.f32 %v5370_v49, %v5370_v49  ;;  %v425_v25 = vadd.f32 %v424_v6, %v5377_v14  ;;  %v539_v42 = vmul.f32 %v5377_v14, %v5377_v14 }
 0x10f   :  { %7196 = vst [vmem:[#allocation39_spill] sm:$0xff] %v5370_v49  ;;  %v465_v49 = vadd.f32 %v464_v29, %v5328_v28  ;;  %v597_v63 = vadd.f32 %v596_v16, %v536_v18 }
 0x110   :  { %7197 = vst [vmem:[#allocation40_spill] sm:$0xff] %v5377_v14  ;;  %v405_v21 = vrot.slane %v404_v53, 4  ;;  %v556_v30 = vadd.f32 %v555_v5, %v538_v41  ;;  %v426_v15 = vrot.slane %v425_v25, 4  ;;  %v577_v32 = vadd.f32 %v576_v59, %v539_v42 }
 0x111   :  { %v445_v14 = vadd.f32 %v444_v50, %v5362_v23  ;;  %v466_v50 = vadd.f32 %v465_v49, %v5368_v1 }
 0x112   :  { %v406_v7 = vadd.f32 %v405_v21, %v404_v53  ;;  %v557_v6 = vrot.slane %v556_v30, 4  ;;  %v427_v33 = vadd.f32 %v426_v15, %v425_v25  ;;  %v578_v19 = vrot.slane %v577_v32, 4 }
 0x113   :  { %v537_v15 = vmul.f32 %v5368_v1, %v5368_v1 }
 0x114   :  { %v407_v48 = vrot.slane %v406_v7, 2  ;;  %v558_v5 = vadd.f32 %v557_v6, %v556_v30  ;;  %v5390_v41 = vpop.f32.mrf.mxu2  ;;  %v428_v45 = vrot.slane %v427_v33, 2  ;;  %v579_v13 = vadd.f32 %v578_v19, %v577_v32  ;;  %v5395_v4 = vpop.f32.mrf.mxu3 }
 0x115   :  { %v446_v59 = vadd.f32 %v445_v14, %v5390_v41  ;;  %v540_v34 = vmul.f32 %v5390_v41, %v5390_v41  ;;  %v467_v14 = vadd.f32 %v466_v50, %v5395_v4  ;;  %v541_v21 = vmul.f32 %v5395_v4, %v5395_v4 }
 0x116   :  { %v408_v62 = vadd.f32 %v407_v48, %v406_v7  ;;  %v559_v53 = vrot.slane %v558_v5, 2  ;;  %v429_v60 = vadd.f32 %v428_v45, %v427_v33  ;;  %v580_v25 = vrot.slane %v579_v13, 2 }
 0x117   :  { %v447_v42 = vrot.slane %v446_v59, 4  ;;  %v598_v22 = vadd.f32 %v597_v63, %v540_v34  ;;  %v618_v58 = vadd.f32 %v617_v43, %v537_v15  ;;  %v468_v45 = vrot.slane %v467_v14, 4 }
 0x118   :  { %v409_v18 = vrot.slane %v408_v62, 1  ;;  %v560_v19 = vadd.f32 %v559_v53, %v558_v5  ;;  %v430_v30 = vrot.slane %v429_v60, 1  ;;  %v581_v29 = vadd.f32 %v580_v25, %v579_v13  ;;  %v4621_v25 = vld [vmem:[#allocation2 + $0x4c] sm:$0xf0] }
 0x119   :  { %v448_v32 = vadd.f32 %v447_v42, %v446_v59  ;;  %v599_v49 = vrot.slane %v598_v22, 4  ;;  %v619_v34 = vadd.f32 %v618_v58, %v541_v21  ;;  %v4117_v21 = vld [vmem:[#allocation2 + $0x140] sm:$0xf] }
 0x11a   :  { %v410_v16 = vadd.f32 %v409_v18, %v408_v62  ;;  %v561_v6 = vrot.slane %v560_v19, 1  ;;  %v431_v48 = vadd.f32 %v430_v30, %v429_v60  ;;  %v582_v7 = vrot.slane %v581_v29, 1  ;;  %v3989_v60 = vld [vmem:[#allocation2 + $0x40] sm:$0xf]  ;;  %v4653_v30 = vld [vmem:[#allocation2 + $0x14c] sm:$0xf0] }
 0x11b   :  { %v449_v33 = vrot.slane %v448_v32, 2  ;;  %v600_v5 = vadd.f32 %v599_v49, %v598_v22  ;;  %v469_v22 = vadd.f32 %v468_v45, %v467_v14  ;;  %v3990_v49 = vor.u32 %v4621_v25, %v3989_v60  ;;  %v4717_v25 = vld [vmem:[#allocation2 + $0x34c] sm:$0xf0] }
 0x11c   :  { %v5403_v1 = vmul.f32 0.0078125, %v410_v16  ;;  %v562_v63 = vadd.f32 %v561_v6, %v560_v19  ;;  %v5405_v50 = vmul.f32 0.0078125, %v431_v48  ;;  %v583_v53 = vadd.f32 %v582_v7, %v581_v29 }
 0x11d   :  { %v450_v23 = vadd.f32 %v449_v33, %v448_v32  ;;  %v601_v43 = vrot.slane %v600_v5, 2  ;;  %v620_v19 = vrot.slane %v619_v34, 4  ;;  %v4118_v58 = vor.u32 %v4653_v30, %v4117_v21  ;;  %1771 = vmatpush.bf16.msrb.mxu0 %v3990_v49  ;;  %v4613_v30 = vld [vmem:[#allocation2 + $0xc] sm:$0xf0] }
 0x11e   :  { %v626_v28 = vmul.f32 0.0078125, %v562_v63  ;;  %v630_v13 = vmul.f32 %v5403_v1, %v5403_v1  ;;  %v627_v59 = vmul.f32 0.0078125, %v583_v53  ;;  %v631_v15 = vmul.f32 %v5405_v50, %v5405_v50  ;;  %v4649_v53 = vld [vmem:[#allocation2 + $0x12c] sm:$0xf0] }
 0x11f   :  { %v451_v62 = vrot.slane %v450_v23, 1  ;;  %v602_v18 = vadd.f32 %v601_v43, %v600_v5  ;;  %v470_v48 = vrot.slane %v469_v22, 2  ;;  %v621_v63 = vadd.f32 %v620_v19, %v619_v34  ;;  %1820 = vmatpush.bf16.msrb.mxu1 %v4118_v58  ;;  %v4617_v5 = vld [vmem:[#allocation2 + $0x2c] sm:$0xf0]  ;;  %v4245_v43 = vld [vmem:[#allocation2 + $0x240] sm:$0xf] }
 0x120   :  { %v634_v42 = vsub.f32 %v626_v28, %v630_v13  ;;  %v635_v29 = vsub.f32 %v627_v59, %v631_v15  ;;  %v3973_v28 = vld [vmem:[#allocation2 + $0x20] sm:$0xf]  ;;  %v4685_v59 = vld [vmem:[#allocation2 + $0x24c] sm:$0xf0] }
 0x121   :  { %v452_v32 = vadd.f32 %v451_v62, %v450_v23  ;;  %v603_v6 = vrot.slane %v602_v18, 1  ;;  %v471_v45 = vadd.f32 %v470_v48, %v469_v22  ;;  %v4101_v23 = vld [vmem:[#allocation2 + $0x120] sm:$0xf]  ;;  %v622_v60 = vrot.slane %v621_v63, 2 }
 0x122   :  { %v5411_v16 = vadd.f32 1e-05, %v634_v42  ;;  %v5413_v7 = vadd.f32 1e-05, %v635_v29  ;;  %v4373_v15 = vld [vmem:[#allocation2 + $0x340] sm:$0xf]  ;;  %v4246_v42 = vor.u32 %v4685_v59, %v4245_v43  ;;  %v3974_v21 = vor.u32 %v4617_v5, %v3973_v28 }
 0x123   :  { %v5415_v33 = vmul.f32 0.0078125, %v452_v32  ;;  %v604_v14 = vadd.f32 %v603_v6, %v602_v18  ;;  %v472_v34 = vrot.slane %v471_v45, 1  ;;  %v4374_v19 = vor.u32 %v4717_v25, %v4373_v15  ;;  %v3957_v22 = vld [vmem:[#allocation2] sm:$0xf]  ;;  %v4645_v6 = vld [vmem:[#allocation2 + $0x10c] sm:$0xf0] }
 0x124   :  { %4775 = vrsqrt.f32 %v5411_v16  ;;  %v4102_v18 = vor.u32 %v4649_v53, %v4101_v23  ;;  %v623_v49 = vadd.f32 %v622_v60, %v621_v63  ;;  %v4085_v58 = vld [vmem:[#allocation2 + $0x100] sm:$0xf]  ;;  %1869 = vmatpush.bf16.msrb.mxu2 %v4246_v42  ;;  %v4713_v23 = vld [vmem:[#allocation2 + $0x32c] sm:$0xf0]  ;;  %1772 = vmatpush.bf16.msrb.mxu0 %v3974_v21  ;;  %vm648_vm3 = vweird.f32 %v5411_v16 }
 0x125   :  { %4777 = vrsqrt.f32 %v5413_v7  ;;  %v632_v13 = vmul.f32 %v5415_v33, %v5415_v33  ;;  %v628_v62 = vmul.f32 0.0078125, %v604_v14  ;;  %v473_v32 = vadd.f32 %v472_v34, %v471_v45  ;;  %1918 = vmatpush.bf16.msrb.mxu3 %v4374_v19  ;;  %v4229_v48 = vld [vmem:[#allocation2 + $0x220] sm:$0xf]  ;;  %v4677_v60 = vld [vmem:[#allocation2 + $0x20c] sm:$0xf0] }
 0x126   :  { %v3958_v14 = vor.u32 %v4613_v30, %v3957_v22  ;;  %v624_v28 = vrot.slane %v623_v49, 1  ;;  %v4230_v5 = vor.u32 %v4681_v10, %v4229_v48  ;;  %1821 = vmatpush.bf16.msrb.mxu1 %v4102_v18  ;;  %v4358_v53 = vor.u32 %v4713_v23, %v4357_v36  ;;  %v4213_v34 = vld [vmem:[#allocation2 + $0x200] sm:$0xf]  ;;  %v4709_v19 = vld [vmem:[#allocation2 + $0x30c] sm:$0xf0] }
 0x127   :  { %v636_v29 = vsub.f32 %v628_v62, %v632_v13  ;;  %v5425_v43 = vmul.f32 0.0078125, %v473_v32  ;;  %v4086_v13 = vor.u32 %v4645_v6, %v4085_v58  ;;  %v4214_v42 = vor.u32 %v4677_v60, %v4213_v34  ;;  %v4341_v36 = vld [vmem:[#allocation2 + $0x300] sm:$0xf]  ;;  %v4735_v34 = vld [vmem:[#allocation2 + $0x3e4] sm:$0xf] }
 0x128   :  { %v625_v62 = vadd.f32 %v624_v28, %v623_v49  ;;  %1870 = vmatpush.bf16.msrb.mxu2 %v4230_v5  ;;  %1773 = vmatpush.bf16.msrb.mxu0 %v3958_v14  ;;  %v5441_v18 = vld [vmem:[%s7088_s2] sm:$0xf]  ;;  %v4342_v30 = vor.u32 %v4709_v19, %v4341_v36  ;;  %vm658_vm5 = vweird.f32 %v5413_v7  ;;  %v4455_v60 = vld [vmem:[#allocation2 + $0x3f0] sm:$0xf0]  ;;  %v4639_v36 = vld [vmem:[#allocation2 + $0xe4] sm:$0xf] }
 0x129   :  { %v5423_v31 = vadd.f32 1e-05, %v636_v29  ;;  %v633_v10 = vmul.f32 %v5425_v43, %v5425_v43  ;;  %1919 = vmatpush.bf16.msrb.mxu3 %v4358_v53  ;;  %v828_v49 = vld [vmem:[%s7089_s3] sm:$0xf]  ;;  %v684_v48 = vperm.slane %v5441_v18, 0  ;;  %v685_v28 = vperm.slane %v5441_v18, 1 }
 0x12a   :  { %v5421_v40 = vpop.eup %4775  ;;  %v629_v22 = vmul.f32 0.0078125, %v625_v62  ;;  %1822 = vmatpush.bf16.msrb.mxu1 %v4086_v13  ;;  %v4327_v13 = vld [vmem:[#allocation2 + $0x2f0] sm:$0xf0]  ;;  %v7203_v62 = vld [vmem:[#allocation8_spill] sm:$0xff] }
 0x12b   :  { %v5427_v63 = vpop.eup %4777  ;;  %v643_v45 = vmul.f32 %v5421_v40, %v5411_v16  ;;  %4779 = vrsqrt.f32 %v5423_v31  ;;  %vm649_vm1 = vweird.f32 %v5421_v40  ;;  %v4703_v16 = vld [vmem:[#allocation2 + $0x2e4] sm:$0xf]  ;;  %v4071_v19 = vld [vmem:[#allocation2 + $0xf0] sm:$0xf0]  ;;  %vm668_vm8 = vweird.f32 %v5423_v31 }
 0x12c   :  { %v653_v59 = vmul.f32 %v5427_v63, %v5413_v7  ;;  %vm659_vm2 = vweird.f32 %v5427_v63  ;;  %v637_v58 = vsub.f32 %v629_v22, %v633_v10  ;;  %1871 = vmatpush.bf16.msrb.mxu2 %v4214_v42  ;;  %vm5454_vm4 = vmor %vm648_vm3, %vm649_vm1  ;;  %v5472_v10 = vperm.slane %v828_v49, 1 }
 0x12d   :  { %v644_v15 = vmul.f32 %v5421_v40, %v643_v45  ;;  %1920 = vmatpush.bf16.msrb.mxu3 %v4342_v30  ;;  %vm5468_vm6 = vmor %vm658_vm5, %vm659_vm2  ;;  %v4330_v7 = vor.u32 %v4703_v16, %v4327_v13  ;;  %v7202_v13 = vld [vmem:[#allocation5_spill] sm:$0xff] }
 0x12e   :  { %v654_v25 = vmul.f32 %v5427_v63, %v653_v59  ;;  %v5461_v53 = vadd.f32 1e-05, %v637_v58  ;;  %v5463_v59 = vperm.slane %v828_v49, 0  ;;  %v4199_v58 = vld [vmem:[#allocation2 + $0x1f0] sm:$0xf0] }
 0x12f   :  { %v645_v21 = vmul.f32 0.5, %v644_v15 }
 0x130   :  { %v655_v29 = vmul.f32 0.5, %v654_v25  ;;  %4781 = vrsqrt.f32 %v5461_v53  ;;  %2060 = vmatpush.bf16.msra.mxu2 %v4330_v7  ;;  %v701_v7 = vsub.f32 %v7203_v62, %v5405_v50  ;;  %vm678_vm11 = vweird.f32 %v5461_v53 }
 0x131   :  { %v646_v32 = vsub.f32 1.5, %v645_v21  ;;  %v5448_v6 = vpop.eup %4779  ;;  %v4671_v21 = vld [vmem:[#allocation2 + $0x1e4] sm:$0xf] }
 0x132   :  { %v656_v14 = vsub.f32 1.5, %v655_v29  ;;  %v663_v45 = vmul.f32 %v5448_v6, %v5423_v31  ;;  %v4458_v29 = vor.u32 %v4735_v34, %v4455_v60  ;;  %vm669_vm7 = vweird.f32 %v5448_v6 }
 0x133   :  { %v647_v5 = vmul.f32 %v5421_v40, %v646_v32  ;;  %v4074_v32 = vor.u32 %v4639_v36, %v4071_v19  ;;  %v5498_v34 = vperm.slane %v828_v49, 2  ;;  %vm670_vm9 = vmor %vm668_vm8, %vm669_vm7 }
 0x134   :  { %v657_v15 = vmul.f32 %v5427_v63, %v656_v14  ;;  %v664_v42 = vmul.f32 %v5448_v6, %v663_v45  ;;  %v696_v45 = vsub.f32 %v5083_v8, %v5403_v1  ;;  %2109 = vmatpush.bf16.msra.mxu3 %v4458_v29  ;;  %v758_v8 = vsub.f32 %v5390_v41, %v5415_v33 }
 0x135   :  { %v651_v25 = vsel %vm5454_vm4, %v5421_v40, %v647_v5  ;;  %v686_v40 = vperm.slane %v5441_v18, 2  ;;  %v4202_v5 = vor.u32 %v4671_v21, %v4199_v58  ;;  %1962 = vmatpush.bf16.msra.mxu0 %v4074_v32  ;;  %v687_v41 = vperm.slane %v5441_v18, 3 }
 0x136   :  { %v692_v22 = vmul.f32 %v684_v48, %v651_v25  ;;  %v661_v30 = vsel %vm5468_vm6, %v5427_v63, %v657_v15  ;;  %v665_v16 = vmul.f32 0.5, %v664_v42  ;;  %v700_v48 = vsub.f32 %v5091_v12, %v5403_v1  ;;  %v4782_v25 = vpop.eup %4781 }
 0x137   :  { %v693_v14 = vmul.f32 %v685_v28, %v661_v30  ;;  %v697_v63 = vsub.f32 %v7202_v13, %v5405_v50  ;;  %2011 = vmatpush.bf16.msra.mxu1 %v4202_v5  ;;  %v673_v21 = vmul.f32 %v4782_v25, %v5461_v53  ;;  %vm679_vm10 = vweird.f32 %v4782_v25 }
 0x138   :  { %v5483_v23 = vperm.slane %v692_v22, 0  ;;  %v666_v28 = vsub.f32 1.5, %v665_v16  ;;  %v5508_v22 = vperm.slane %v828_v49, 3  ;;  %v7204_v49 = vld [vmem:[#allocation6_spill] sm:$0xff]  ;;  %vm5534_vm12 = vmor %vm678_vm11, %vm679_vm10 }
 0x139   :  { %v5491_v15 = vperm.slane %v693_v14, 0  ;;  %v674_v16 = vmul.f32 %v4782_v25, %v673_v21  ;;  %v698_v13 = vsub.f32 %v7204_v49, %v5415_v33 }
 0x13a   :  { %v764_v12 = vmul.f32 %v5483_v23, %v696_v45  ;;  %v768_v60 = vmul.f32 %v5483_v23, %v700_v48  ;;  %v667_v42 = vmul.f32 %v5448_v6, %v666_v28 }
 0x13b   :  { %v765_v36 = vmul.f32 %v5491_v15, %v697_v63  ;;  %v769_v19 = vmul.f32 %v5491_v15, %v701_v7  ;;  %v7205_v63 = vld [vmem:[#allocation9_spill] sm:$0xff]  ;;  %v675_v62 = vmul.f32 0.5, %v674_v16 }
 0x13c   :  { %v838_v30 = vadd.f32 %v5463_v59, %v764_v12  ;;  %v671_v29 = vsel %vm670_vm9, %v5448_v6, %v667_v42  ;;  %v842_v31 = vadd.f32 %v5463_v59, %v768_v60  ;;  %v702_v6 = vsub.f32 %v7205_v63, %v5415_v33  ;;  %v7207_v12 = vld [vmem:[#allocation11_spill] sm:$0xff] }
 0x13d   :  { %v839_v58 = vadd.f32 %v5472_v10, %v765_v36  ;;  %v694_v14 = vmul.f32 %v686_v40, %v671_v29  ;;  %v843_v45 = vadd.f32 %v5472_v10, %v769_v19  ;;  %v704_v60 = vsub.f32 %v7207_v12, %v5403_v1  ;;  %v4055_v12 = vld [vmem:[#allocation2 + $0xd0] sm:$0xf0] }
 0x13e   :  { %v902_v5 = vmax.f32 %v838_v30, 0.0  ;;  %v906_v48 = vmax.f32 %v842_v31, 0.0  ;;  %v708_v42 = vsub.f32 %v5107_v26, %v5403_v1  ;;  %v676_v19 = vsub.f32 1.5, %v675_v62  ;;  %v4439_v62 = vld [vmem:[#allocation2 + $0x3d0] sm:$0xf0] }
 0x13f   :  { %v903_v18 = vmax.f32 %v839_v58, 0.0  ;;  %v5521_v28 = vperm.slane %v694_v14, 0  ;;  %v907_v7 = vmax.f32 %v843_v45, 0.0  ;;  %v772_v31 = vmul.f32 %v5483_v23, %v704_v60  ;;  %v4699_v45 = vld [vmem:[#allocation2 + $0x2c4] sm:$0xf] }
 0x140   :  { %v5524_v40 = vpack.c.bf16 %v906_v48, %v902_v5  ;;  %v705_v26 = vsub.f32 %v5101_v17, %v5405_v50  ;;  %v677_v14 = vmul.f32 %v4782_v25, %v676_v19  ;;  %v776_v5 = vmul.f32 %v5483_v23, %v708_v42  ;;  %v4311_v48 = vld [vmem:[#allocation2 + $0x2d0] sm:$0xf0] }
 0x141   :  { %v826_v36 = vmul.f32 %v5521_v28, %v758_v8  ;;  %v5531_v21 = vpack.c.bf16 %v907_v7, %v903_v18  ;;  %v766_v30 = vmul.f32 %v5521_v28, %v698_v13  ;;  %v770_v53 = vmul.f32 %v5521_v28, %v702_v6  ;;  %v4731_v18 = vld [vmem:[#allocation2 + $0x3c4] sm:$0xf]  ;;  %v7212_v17 = vld [vmem:[#allocation7_spill] sm:$0xff] }
 0x142   :  { %7206 = vst [vmem:[#allocation5_spill] sm:$0xff] %v5524_v40  ;;  %1774 = vmatmul.bf16.vlgmr.msrb.gmra.mxu0 %v5524_v40  ;;  %v709_v8 = vsub.f32 %v5109_v27, %v5405_v50  ;;  %v699_v13 = vsub.f32 %v7212_v17, %v5425_v43  ;;  %v7213_v27 = vld [vmem:[#allocation10_spill] sm:$0xff]  ;;  %v773_v6 = vmul.f32 %v5491_v15, %v705_v26  ;;  %v4635_v7 = vld [vmem:[#allocation2 + $0xc4] sm:$0xf] }
 0x143   :  { %7208 = vst [vmem:[#allocation8_spill] sm:$0xff] %v5531_v21  ;;  %v5546_v58 = vadd.f32 %v5498_v34, %v826_v36  ;;  %1823 = vmatmul.bf16.vlgmr.msrb.gmra.mxu1 %v5531_v21  ;;  %v840_v16 = vadd.f32 %v5498_v34, %v766_v30  ;;  %v844_v49 = vadd.f32 %v5498_v34, %v770_v53  ;;  %v4667_v30 = vld [vmem:[#allocation2 + $0x1c4] sm:$0xf]  ;;  %v4183_v53 = vld [vmem:[#allocation2 + $0x1d0] sm:$0xf0] }
 0x144   :  { %v703_v63 = vsub.f32 %v7213_v27, %v5425_v43  ;;  %v681_v60 = vsel %vm5534_vm12, %v4782_v25, %v677_v14  ;;  %v777_v36 = vmul.f32 %v5491_v15, %v709_v8  ;;  %v706_v19 = vsub.f32 %v5103_v24, %v5415_v33  ;;  %v7214_v27 = vld [vmem:[#allocation13_spill] sm:$0xff] }
 0x145   :  { %7211 = vst [vmem:[#allocation6_spill] sm:$0xff] %v5546_v58  ;;  %v904_v42 = vmax.f32 %v840_v16, 0.0  ;;  %v695_v17 = vmul.f32 %v687_v41, %v681_v60  ;;  %v908_v32 = vmax.f32 %v844_v49, 0.0  ;;  %v710_v21 = vsub.f32 %v7214_v27, %v5415_v33 }
 0x146   :  { %v4314_v26 = vor.u32 %v4699_v45, %v4311_v48  ;;  %v846_v40 = vadd.f32 %v5463_v59, %v772_v31  ;;  %v850_v58 = vadd.f32 %v5463_v59, %v776_v5  ;;  %v4442_v29 = vor.u32 %v4731_v18, %v4439_v62 }
 0x147   :  { %v4058_v25 = vor.u32 %v4635_v7, %v4055_v12  ;;  %v5566_v14 = vperm.slane %v695_v17, 0  ;;  %v5568_v8 = vpack.c.bf16 %v908_v32, %v904_v42  ;;  %v847_v24 = vadd.f32 %v5472_v10, %v773_v6 }
 0x148   :  { %2061 = vmatpush.bf16.msra.mxu2 %v4314_v26  ;;  %v4186_v16 = vor.u32 %v4667_v30, %v4183_v53  ;;  %v851_v41 = vadd.f32 %v5472_v10, %v777_v36  ;;  %v774_v49 = vmul.f32 %v5521_v28, %v706_v19  ;;  %v778_v45 = vmul.f32 %v5521_v28, %v710_v21  ;;  %v7217_v30 = vld [vmem:[#allocation14_spill] sm:$0xff] }
 0x149   :  { %2110 = vmatpush.bf16.msra.mxu3 %v4442_v29  ;;  %1963 = vmatpush.bf16.msra.mxu0 %v4058_v25  ;;  %v7215_v31 = vsub.f32 %v5395_v4, %v5425_v43  ;;  %v767_v32 = vmul.f32 %v5566_v14, %v699_v13  ;;  %v771_v48 = vmul.f32 %v5566_v14, %v703_v63  ;;  %v910_v18 = vmax.f32 %v846_v40, 0.0  ;;  %v7216_v63 = vld [vmem:[#allocation12_spill] sm:$0xff] }
 0x14a   :  { %1872 = vmatmul.bf16.vlgmr.msrb.gmra.mxu2 %v5568_v8  ;;  %2012 = vmatpush.bf16.msra.mxu1 %v4186_v16  ;;  %v914_v7 = vmax.f32 %v850_v58, 0.0  ;;  %v911_v12 = vmax.f32 %v847_v24, 0.0  ;;  %v915_v4 = vmax.f32 %v851_v41, 0.0  ;;  %v848_v60 = vadd.f32 %v5498_v34, %v774_v49  ;;  %v4695_v49 = vld [vmem:[#allocation2 + $0x2a4] sm:$0xf] }
 0x14b   :  { %v827_v5 = vmul.f32 %v5566_v14, %v7215_v31  ;;  %v841_v21 = vadd.f32 %v5508_v22, %v767_v32  ;;  %v845_v62 = vadd.f32 %v5508_v22, %v771_v48  ;;  %v852_v42 = vadd.f32 %v5498_v34, %v778_v45  ;;  %v4727_v45 = vld [vmem:[#allocation2 + $0x3a4] sm:$0xf]  ;;  %v4423_v48 = vld [vmem:[#allocation2 + $0x3b0] sm:$0xf0] }
 0x14c   :  { %v707_v40 = vsub.f32 %v7216_v63, %v5425_v43  ;;  %v711_v19 = vsub.f32 %v5113_v35, %v5425_v43  ;;  %v712_v53 = vsub.f32 %v7217_v30, %v5403_v1  ;;  %v5596_v58 = vpack.c.bf16 %v914_v7, %v910_v18  ;;  %v4631_v18 = vld [vmem:[#allocation2 + $0xa4] sm:$0xf]  ;;  %v7219_v63 = vld [vmem:[#allocation15_spill] sm:$0xff] }
 0x14d   :  { %v5582_v6 = vadd.f32 %v5508_v22, %v827_v5  ;;  %v905_v36 = vmax.f32 %v841_v21, 0.0  ;;  %v909_v13 = vmax.f32 %v845_v62, 0.0  ;;  %v716_v27 = vsub.f32 %v5123_v46, %v5403_v1  ;;  %v4039_v21 = vld [vmem:[#allocation2 + $0xb0] sm:$0xf0] }
 0x14e   :  { %v713_v26 = vsub.f32 %v5117_v37, %v5405_v50  ;;  %v5602_v29 = vpack.c.bf16 %v915_v4, %v911_v12  ;;  %v912_v25 = vmax.f32 %v848_v60, 0.0  ;;  %v916_v24 = vmax.f32 %v852_v42, 0.0  ;;  %v4295_v37 = vld [vmem:[#allocation2 + $0x2b0] sm:$0xf0]  ;;  %v4663_v4 = vld [vmem:[#allocation2 + $0x1a4] sm:$0xf] }
 0x14f   :  { %v5594_v17 = vpack.c.bf16 %v909_v13, %v905_v36  ;;  %v717_v35 = vsub.f32 %v5125_v47, %v5405_v50  ;;  %v780_v16 = vmul.f32 %v5483_v23, %v712_v53  ;;  %v784_v41 = vmul.f32 %v5483_v23, %v716_v27  ;;  %v4167_v60 = vld [vmem:[#allocation2 + $0x1b0] sm:$0xf0] }
 0x150   :  { %7218 = vst [vmem:[#allocation9_spill] sm:$0xff] %v5602_v29  ;;  %v714_v46 = vsub.f32 %v5119_v44, %v5415_v33  ;;  %v775_v31 = vmul.f32 %v5566_v14, %v707_v40  ;;  %v779_v47 = vmul.f32 %v5566_v14, %v711_v19  ;;  %v718_v5 = vsub.f32 %v5127_v54, %v5415_v33 }
 0x151   :  { %1921 = vmatmul.bf16.vlgmr.msrb.gmra.mxu3 %v5594_v17  ;;  %v4298_v32 = vor.u32 %v4695_v49, %v4295_v37  ;;  %v781_v62 = vmul.f32 %v5491_v15, %v713_v26  ;;  %v785_v44 = vmul.f32 %v5491_v15, %v717_v35  ;;  %v4426_v7 = vor.u32 %v4727_v45, %v4423_v48 }
 0x152   :  { %1779 = vmatmul.bf16.gmra.mxu0 %v5596_v58  ;;  %v4042_v12 = vor.u32 %v4631_v18, %v4039_v21  ;;  %v782_v42 = vmul.f32 %v5521_v28, %v714_v46  ;;  %v786_v36 = vmul.f32 %v5521_v28, %v718_v5  ;;  %v4170_v13 = vor.u32 %v4663_v4, %v4167_v60 }
 0x153   :  { %1828 = vmatmul.bf16.gmra.mxu1 %v5602_v29  ;;  %2062 = vmatpush.bf16.msra.mxu2 %v4298_v32  ;;  %v854_v54 = vadd.f32 %v5463_v59, %v780_v16  ;;  %v715_v40 = vsub.f32 %v7219_v63, %v5425_v43  ;;  %v849_v19 = vadd.f32 %v5508_v22, %v775_v31 }
 0x154   :  { %2111 = vmatpush.bf16.msra.mxu3 %v4426_v7  ;;  %1964 = vmatpush.bf16.msra.mxu0 %v4042_v12  ;;  %v853_v30 = vadd.f32 %v5508_v22, %v779_v47  ;;  %v858_v53 = vadd.f32 %v5463_v59, %v784_v41  ;;  %v719_v27 = vsub.f32 %v5129_v55, %v5425_v43 }
 0x155   :  { %2013 = vmatpush.bf16.msra.mxu1 %v4170_v13  ;;  %v5629_v26 = vpack.c.bf16 %v916_v24, %v912_v25  ;;  %v855_v35 = vadd.f32 %v5472_v10, %v781_v62  ;;  %v859_v16 = vadd.f32 %v5472_v10, %v785_v44  ;;  %v783_v46 = vmul.f32 %v5566_v14, %v715_v40 }
 0x156   :  { %v856_v49 = vadd.f32 %v5498_v34, %v782_v42  ;;  %v860_v37 = vadd.f32 %v5498_v34, %v786_v36  ;;  %v787_v45 = vmul.f32 %v5566_v14, %v719_v27  ;;  %v913_v41 = vmax.f32 %v849_v19, 0.0  ;;  %v4691_v19 = vld [vmem:[#allocation2 + $0x284] sm:$0xf] }
 0x157   :  { %7220 = vst [vmem:[#allocation11_spill] sm:$0xff] %v5629_v26  ;;  %v917_v31 = vmax.f32 %v853_v30, 0.0  ;;  %v918_v55 = vmax.f32 %v854_v54, 0.0  ;;  %v922_v47 = vmax.f32 %v858_v53, 0.0  ;;  %v919_v25 = vmax.f32 %v855_v35, 0.0 }
 0x158   :  { %v923_v24 = vmax.f32 %v859_v16, 0.0  ;;  %v857_v5 = vadd.f32 %v5508_v22, %v783_v46  ;;  %v720_v32 = vsub.f32 %v5131_v56, %v5403_v1  ;;  %v920_v48 = vmax.f32 %v856_v49, 0.0  ;;  %v4723_v30 = vld [vmem:[#allocation2 + $0x384] sm:$0xf]  ;;  %v4407_v35 = vld [vmem:[#allocation2 + $0x390] sm:$0xf0] }
 0x159   :  { %v924_v18 = vmax.f32 %v860_v37, 0.0  ;;  %v861_v21 = vadd.f32 %v5508_v22, %v787_v45  ;;  %v724_v62 = vsub.f32 %v5139_v2, %v5403_v1  ;;  %v5645_v7 = vpack.c.bf16 %v917_v31, %v913_v41  ;;  %v4627_v16 = vld [vmem:[#allocation2 + $0x84] sm:$0xf]  ;;  %v4023_v46 = vld [vmem:[#allocation2 + $0x90] sm:$0xf0] }
 0x15a   :  { %1877 = vmatmul.bf16.gmra.mxu2 %v5629_v26  ;;  %v788_v44 = vmul.f32 %v5483_v23, %v720_v32  ;;  %v5647_v12 = vpack.c.bf16 %v922_v47, %v918_v55  ;;  %v5650_v60 = vpack.c.bf16 %v923_v24, %v919_v25  ;;  %v921_v42 = vmax.f32 %v857_v5, 0.0  ;;  %v4659_v31 = vld [vmem:[#allocation2 + $0x184] sm:$0xf]  ;;  %v4151_v55 = vld [vmem:[#allocation2 + $0x190] sm:$0xf0] }
 0x15b   :  { %7221 = vst [vmem:[#allocation7_spill] sm:$0xff] %v5645_v7  ;;  %v792_v4 = vmul.f32 %v5483_v23, %v724_v62  ;;  %v721_v56 = vsub.f32 %v5133_v57, %v5405_v50  ;;  %v730_v36 = vsub.f32 %v5151_v38, %v5415_v33  ;;  %v5656_v13 = vpack.c.bf16 %v924_v18, %v920_v48  ;;  %v4279_v38 = vld [vmem:[#allocation2 + $0x290] sm:$0xf0] }
 0x15c   :  { %7222 = vst [vmem:[#allocation10_spill] sm:$0xff] %v5647_v12  ;;  %v925_v2 = vmax.f32 %v861_v21, 0.0  ;;  %v725_v54 = vsub.f32 %v5141_v3, %v5405_v50  ;;  %v734_v63 = vsub.f32 %v5159_v52, %v5415_v33  ;;  %v862_v40 = vadd.f32 %v5463_v59, %v788_v44 }
 0x15d   :  { %v722_v57 = vsub.f32 %v5135_v0, %v5415_v33  ;;  %v798_v53 = vmul.f32 %v5521_v28, %v730_v36  ;;  %v866_v3 = vadd.f32 %v5463_v59, %v792_v4  ;;  %v789_v52 = vmul.f32 %v5491_v15, %v721_v56 }
 0x15e   :  { %v4282_v27 = vor.u32 %v4691_v19, %v4279_v38  ;;  %v802_v49 = vmul.f32 %v5521_v28, %v734_v63  ;;  %v793_v37 = vmul.f32 %v5491_v15, %v725_v54  ;;  %v726_v0 = vsub.f32 %v5143_v20, %v5415_v33  ;;  %v7223_v54 = vld [vmem:[#allocation16_spill] sm:$0xff] }
 0x15f   :  { %v4410_v45 = vor.u32 %v4723_v30, %v4407_v35  ;;  %v4026_v41 = vor.u32 %v4627_v16, %v4023_v46  ;;  %v790_v47 = vmul.f32 %v5521_v28, %v722_v57  ;;  %v4154_v25 = vor.u32 %v4659_v31, %v4151_v55 }
 0x160   :  { %2063 = vmatpush.bf16.msra.mxu2 %v4282_v27  ;;  %v872_v24 = vadd.f32 %v5498_v34, %v798_v53  ;;  %v731_v5 = vsub.f32 %v5153_v39, %v5425_v43  ;;  %v5679_v32 = vpack.c.bf16 %v925_v2, %v921_v42  ;;  %v876_v48 = vadd.f32 %v5498_v34, %v802_v49 }
 0x161   :  { %1926 = vmatmul.bf16.gmra.mxu3 %v5645_v7  ;;  %1965 = vmatpush.bf16.msra.mxu0 %v4026_v41  ;;  %v735_v20 = vsub.f32 %v5169_v61, %v5425_v43  ;;  %v926_v18 = vmax.f32 %v862_v40, 0.0  ;;  %v863_v21 = vadd.f32 %v5472_v10, %v789_v52  ;;  %v867_v4 = vadd.f32 %v5472_v10, %v793_v37  ;;  %v7224_v40 = vld [vmem:[#allocation17_spill] sm:$0xff] }
 0x162   :  { %1784 = vmatmul.bf16.gmra.mxu0 %v5647_v12  ;;  %2112 = vmatpush.bf16.msra.mxu3 %v4410_v45  ;;  %v936_v62 = vmax.f32 %v872_v24, 0.0  ;;  %v799_v44 = vmul.f32 %v5566_v14, %v731_v5  ;;  %v794_v39 = vmul.f32 %v5521_v28, %v726_v0  ;;  %v940_v42 = vmax.f32 %v876_v48, 0.0  ;;  %v7225_v0 = vld [vmem:[#allocation18_spill] sm:$0xff] }
 0x163   :  { %1833 = vmatmul.bf16.gmra.mxu1 %v5650_v60  ;;  %v803_v56 = vmul.f32 %v5566_v14, %v735_v20  ;;  %v930_v36 = vmax.f32 %v866_v3, 0.0  ;;  %v864_v2 = vadd.f32 %v5498_v34, %v790_v47  ;;  %v723_v61 = vsub.f32 %v7223_v54, %v5425_v43  ;;  %v7226_v5 = vld [vmem:[#allocation26_spill] sm:$0xff] }
 0x164   :  { %2014 = vmatpush.bf16.msra.mxu1 %v4154_v25  ;;  %v873_v63 = vadd.f32 %v5508_v22, %v799_v44  ;;  %v727_v57 = vsub.f32 %v7224_v40, %v5425_v43  ;;  %v5696_v19 = vpack.c.bf16 %v940_v42, %v936_v62  ;;  %v738_v30 = vsub.f32 %v5205_v9, %v5415_v33  ;;  %v4687_v40 = vld [vmem:[#allocation2 + $0x264] sm:$0xf] }
 0x165   :  { %v877_v38 = vadd.f32 %v5508_v22, %v803_v56  ;;  %v927_v53 = vmax.f32 %v863_v21, 0.0  ;;  %v791_v3 = vmul.f32 %v5566_v14, %v723_v61  ;;  %v742_v27 = vsub.f32 %v5242_v51, %v5415_v33  ;;  %v7227_v21 = vld [vmem:[#allocation20_spill] sm:$0xff]  ;;  %v7229_v61 = vld [vmem:[#allocation21_spill] sm:$0xff] }
 0x166   :  { %v937_v52 = vmax.f32 %v873_v63, 0.0  ;;  %v931_v35 = vmax.f32 %v867_v4, 0.0  ;;  %v868_v16 = vadd.f32 %v5498_v34, %v794_v39  ;;  %v806_v49 = vmul.f32 %v5521_v28, %v738_v30  ;;  %v7228_v4 = vld [vmem:[#allocation19_spill] sm:$0xff] }
 0x167   :  { %v941_v46 = vmax.f32 %v877_v38, 0.0  ;;  %v5706_v37 = vpack.c.bf16 %v930_v36, %v926_v18  ;;  %v728_v45 = vsub.f32 %v7225_v0, %v5403_v1  ;;  %v810_v9 = vmul.f32 %v5521_v28, %v742_v27  ;;  %v4719_v38 = vld [vmem:[#allocation2 + $0x364] sm:$0xf]  ;;  %v4007_v27 = vld [vmem:[#allocation2 + $0x70] sm:$0xf0] }
 0x168   :  { %v739_v41 = vsub.f32 %v5211_v11, %v5425_v43  ;;  %v928_v31 = vmax.f32 %v864_v2, 0.0  ;;  %v795_v55 = vmul.f32 %v5566_v14, %v727_v57  ;;  %v880_v47 = vadd.f32 %v5498_v34, %v806_v49  ;;  %v4263_v57 = vld [vmem:[#allocation2 + $0x270] sm:$0xf0] }
 0x169   :  { %v5714_v51 = vpack.c.bf16 %v941_v46, %v937_v52  ;;  %v5718_v25 = vadd.f32 %v5508_v22, %v791_v3  ;;  %v884_v24 = vadd.f32 %v5498_v34, %v810_v9  ;;  %v743_v48 = vsub.f32 %v7226_v5, %v5425_v43  ;;  %v4391_v3 = vld [vmem:[#allocation2 + $0x370] sm:$0xf0]  ;;  %v4623_v52 = vld [vmem:[#allocation2 + $0x64] sm:$0xf] }
 0x16a   :  { %1882 = vmatmul.bf16.gmra.mxu2 %v5656_v13  ;;  %v807_v20 = vmul.f32 %v5566_v14, %v739_v41  ;;  %v5724_v18 = vpack.c.bf16 %v931_v35, %v927_v53  ;;  %v932_v11 = vmax.f32 %v868_v16, 0.0  ;;  %v732_v62 = vsub.f32 %v7227_v21, %v5403_v1  ;;  %v4135_v9 = vld [vmem:[#allocation2 + $0x170] sm:$0xf0]  ;;  %v7230_v21 = vld [vmem:[#allocation29_spill] sm:$0xff] }
 0x16b   :  { %v944_v44 = vmax.f32 %v880_v47, 0.0  ;;  %v729_v39 = vsub.f32 %v7228_v4, %v5405_v50  ;;  %v948_v42 = vmax.f32 %v884_v24, 0.0  ;;  %v811_v56 = vmul.f32 %v5566_v14, %v743_v48 }
 0x16c   :  { %v881_v36 = vadd.f32 %v5508_v22, %v807_v20  ;;  %v796_v2 = vmul.f32 %v5483_v23, %v728_v45  ;;  %v800_v54 = vmul.f32 %v5483_v23, %v732_v62  ;;  %v733_v63 = vsub.f32 %v7229_v61, %v5405_v50  ;;  %v4655_v45 = vld [vmem:[#allocation2 + $0x164] sm:$0xf]  ;;  %v7233_v61 = vld [vmem:[#allocation34_spill] sm:$0xff] }
 0x16d   :  { %v797_v30 = vmul.f32 %v5491_v15, %v729_v39  ;;  %v4266_v53 = vor.u32 %v4687_v40, %v4263_v57  ;;  %v5740_v35 = vpack.c.bf16 %v948_v42, %v944_v44  ;;  %v885_v16 = vadd.f32 %v5508_v22, %v811_v56  ;;  %v7231_v44 = vld [vmem:[#allocation33_spill] sm:$0xff] }
 0x16e   :  { %v801_v46 = vmul.f32 %v5491_v15, %v733_v63  ;;  %v4394_v49 = vor.u32 %v4719_v38, %v4391_v3  ;;  %v4010_v0 = vor.u32 %v4623_v52, %v4007_v27  ;;  %v945_v41 = vmax.f32 %v881_v36, 0.0 }
 0x16f   :  { %v5744_v47 = vpack.c.bf16 %v932_v11, %v928_v31  ;;  %v869_v24 = vadd.f32 %v5508_v22, %v795_v55  ;;  %2064 = vmatpush.bf16.msra.mxu2 %v4266_v53  ;;  %v4138_v5 = vor.u32 %v4655_v45, %v4135_v9  ;;  %v949_v48 = vmax.f32 %v885_v16, 0.0  ;;  %v7232_v55 = vld [vmem:[#allocation30_spill] sm:$0xff] }
 0x170   :  { %v870_v20 = vadd.f32 %v5463_v59, %v796_v2  ;;  %2113 = vmatpush.bf16.msra.mxu3 %v4394_v49  ;;  %1966 = vmatpush.bf16.msra.mxu0 %v4010_v0  ;;  %v746_v62 = vsub.f32 %v7230_v21, %v5415_v33  ;;  %v750_v4 = vsub.f32 %v7231_v44, %v5415_v33  ;;  %v929_v40 = vmax.f32 %v5718_v25, 0.0 }
 0x171   :  { %1931 = vmatmul.bf16.gmra.mxu3 %v5679_v32  ;;  %v874_v39 = vadd.f32 %v5463_v59, %v800_v54  ;;  %v871_v31 = vadd.f32 %v5472_v10, %v797_v30  ;;  %2015 = vmatpush.bf16.msra.mxu1 %v4138_v5  ;;  %v5754_v11 = vpack.c.bf16 %v949_v48, %v945_v41  ;;  %v933_v57 = vmax.f32 %v869_v24, 0.0  ;;  %v7234_v24 = vld [vmem:[#allocation37_spill] sm:$0xff]  ;;  %v7235_v48 = vld [vmem:[#allocation38_spill] sm:$0xff] }
 0x172   :  { %1789 = vmatmul.bf16.gmra.mxu0 %v5706_v37  ;;  %v747_v42 = vsub.f32 %v7232_v55, %v5425_v43  ;;  %v875_v56 = vadd.f32 %v5472_v10, %v801_v46  ;;  %v814_v36 = vmul.f32 %v5521_v28, %v746_v62  ;;  %v818_v2 = vmul.f32 %v5521_v28, %v750_v4  ;;  %v7237_v55 = vld [vmem:[#allocation22_spill] sm:$0xff] }
 0x173   :  { %1838 = vmatmul.bf16.gmra.mxu1 %v5724_v18  ;;  %v751_v63 = vsub.f32 %v7233_v61, %v5425_v43  ;;  %v934_v3 = vmax.f32 %v870_v20, 0.0  ;;  %v938_v52 = vmax.f32 %v874_v39, 0.0  ;;  %v935_v27 = vmax.f32 %v871_v31, 0.0  ;;  %v7240_v61 = vld [vmem:[#allocation23_spill] sm:$0xff] }
 0x174   :  { %v815_v54 = vmul.f32 %v5566_v14, %v747_v42  ;;  %v888_v38 = vadd.f32 %v5498_v34, %v814_v36  ;;  %v892_v30 = vadd.f32 %v5498_v34, %v818_v2  ;;  %v939_v46 = vmax.f32 %v875_v56, 0.0  ;;  %v7239_v36 = vld [vmem:[#allocation6_spill] sm:$0xff] }
 0x175   :  { %v819_v53 = vmul.f32 %v5566_v14, %v751_v63  ;;  %v754_v5 = vsub.f32 %v7234_v24, %v5415_v33  ;;  %v755_v21 = vsub.f32 %v7235_v48, %v5425_v43  ;;  %v5777_v20 = vpack.c.bf16 %v933_v57, %v929_v40  ;;  %v7238_v33 = vld [vmem:[#allocation24_spill] sm:$0xff]  ;;  %v4247_v40 = vld [vmem:[#allocation2 + $0x250] sm:$0xf0] }
 0x176   :  { %v889_v16 = vadd.f32 %v5508_v22, %v815_v54  ;;  %v952_v49 = vmax.f32 %v888_v38, 0.0  ;;  %v956_v0 = vmax.f32 %v892_v30, 0.0  ;;  %v5779_v62 = vpack.c.bf16 %v938_v52, %v934_v3  ;;  %v7241_v30 = vld [vmem:[#allocation25_spill] sm:$0xff]  ;;  %v4375_v52 = vld [vmem:[#allocation2 + $0x350] sm:$0xf0] }
 0x177   :  { %v893_v25 = vadd.f32 %v5508_v22, %v819_v53  ;;  %v5781_v44 = vpack.c.bf16 %v939_v46, %v935_v27  ;;  %v822_v39 = vmul.f32 %v5521_v28, %v754_v5  ;;  %v823_v31 = vmul.f32 %v5566_v14, %v755_v21  ;;  %v4683_v28 = vld [vmem:[#allocation2 + $0x244] sm:$0xf] }
 0x178   :  { %v953_v45 = vmax.f32 %v889_v16, 0.0  ;;  %v5771_v9 = vpack.c.bf16 %v956_v0, %v952_v49  ;;  %v736_v42 = vsub.f32 %v7237_v55, %v5403_v1  ;;  %v740_v56 = vsub.f32 %v7238_v33, %v5403_v1  ;;  %v4715_v14 = vld [vmem:[#allocation2 + $0x344] sm:$0xf]  ;;  %v3991_v16 = vld [vmem:[#allocation2 + $0x50] sm:$0xf0] }
 0x179   :  { %v957_v41 = vmax.f32 %v893_v25, 0.0  ;;  %7236 = vst [vmem:[#allocation13_spill] sm:$0xff] %v5781_v44  ;;  %v964_v43 = vmax.f32 %v7239_v36, 0.0  ;;  %v965_v2 = vmax.f32 %v5582_v6, 0.0  ;;  %v737_v63 = vsub.f32 %v7240_v61, %v5405_v50  ;;  %v4619_v27 = vld [vmem:[#allocation2 + $0x44] sm:$0xf] }
 0x17a   :  { %1887 = vmatmul.bf16.gmra.mxu2 %v5744_v47  ;;  %v896_v54 = vadd.f32 %v5498_v34, %v822_v39  ;;  %v897_v57 = vadd.f32 %v5508_v22, %v823_v31  ;;  %v804_v38 = vmul.f32 %v5483_v23, %v736_v42  ;;  %v808_v6 = vmul.f32 %v5483_v23, %v740_v56  ;;  %v4651_v0 = vld [vmem:[#allocation2 + $0x144] sm:$0xf]  ;;  %v4119_v25 = vld [vmem:[#allocation2 + $0x150] sm:$0xf0] }
 0x17b   :  { %v5783_v4 = vpack.c.bf16 %v957_v41, %v953_v45  ;;  %v741_v53 = vsub.f32 %v7241_v30, %v5405_v50  ;;  %v4250_v3 = vor.u32 %v4683_v28, %v4247_v40  ;;  %v4378_v46 = vor.u32 %v4715_v14, %v4375_v52  ;;  %v7245_v28 = vld [vmem:[#allocation31_spill] sm:$0xff]  ;;  %v4679_v14 = vld [vmem:[#allocation2 + $0x224] sm:$0xf]  ;;  %v7247_v30 = vld [vmem:[#allocation32_spill] sm:$0xff] }
 0x17c   :  { %v3994_v49 = vor.u32 %v4619_v27, %v3991_v16  ;;  %v960_v34 = vmax.f32 %v896_v54, 0.0  ;;  %v961_v45 = vmax.f32 %v897_v57, 0.0  ;;  %v805_v22 = vmul.f32 %v5491_v15, %v737_v63  ;;  %v4231_v54 = vld [vmem:[#allocation2 + $0x230] sm:$0xf0]  ;;  %v4711_v57 = vld [vmem:[#allocation2 + $0x324] sm:$0xf] }
 0x17d   :  { %v809_v41 = vmul.f32 %v5491_v15, %v741_v53  ;;  %2065 = vmatpush.bf16.msra.mxu2 %v4250_v3  ;;  %v4122_v24 = vor.u32 %v4651_v0, %v4119_v25  ;;  %2114 = vmatpush.bf16.msra.mxu3 %v4378_v46  ;;  %v878_v21 = vadd.f32 %v5463_v59, %v804_v38  ;;  %v7246_v38 = vld [vmem:[#allocation28_spill] sm:$0xff]  ;;  %v4359_v52 = vld [vmem:[#allocation2 + $0x330] sm:$0xf0]  ;;  %v4615_v27 = vld [vmem:[#allocation2 + $0x24] sm:$0xf] }
 0x17e   :  { %1967 = vmatpush.bf16.msra.mxu0 %v3994_v49  ;;  %v5806_v5 = vpack.c.bf16 %v964_v43, %v960_v34  ;;  %v5808_v48 = vpack.c.bf16 %v965_v2, %v961_v45  ;;  %v882_v39 = vadd.f32 %v5463_v59, %v808_v6  ;;  %v879_v31 = vadd.f32 %v5472_v10, %v805_v22  ;;  %v7244_v2 = vld [vmem:[#allocation27_spill] sm:$0xff]  ;;  %v4647_v34 = vld [vmem:[#allocation2 + $0x124] sm:$0xf] }
 0x17f   :  { %2016 = vmatpush.bf16.msra.mxu1 %v4122_v24  ;;  %v883_v55 = vadd.f32 %v5472_v10, %v809_v41  ;;  %v942_v42 = vmax.f32 %v878_v21, 0.0  ;;  %v744_v63 = vsub.f32 %v7244_v2, %v5403_v1  ;;  %v748_v40 = vsub.f32 %v7245_v28, %v5403_v1  ;;  %v3975_v16 = vld [vmem:[#allocation2 + $0x30] sm:$0xf0] }
 0x180   :  { %7242 = vst [vmem:[#allocation12_spill] sm:$0xff] %v5806_v5  ;;  %v946_v33 = vmax.f32 %v882_v39, 0.0  ;;  %v943_v56 = vmax.f32 %v879_v31, 0.0  ;;  %v745_v6 = vsub.f32 %v7246_v38, %v5405_v50  ;;  %v749_v53 = vsub.f32 %v7247_v30, %v5405_v50  ;;  %v4103_v45 = vld [vmem:[#allocation2 + $0x130] sm:$0xf0]  ;;  %v7251_v30 = vld [vmem:[#allocation40_spill] sm:$0xff] }
 0x181   :  { %1936 = vmatmul.bf16.gmra.mxu3 %v5777_v20  ;;  %v947_v36 = vmax.f32 %v883_v55, 0.0  ;;  %v4234_v3 = vor.u32 %v4679_v14, %v4231_v54  ;;  %v812_v46 = vmul.f32 %v5483_v23, %v744_v63  ;;  %v816_v49 = vmul.f32 %v5483_v23, %v748_v40  ;;  %v7249_v28 = vld [vmem:[#allocation39_spill] sm:$0xff] }
 0x182   :  { %1794 = vmatmul.bf16.gmra.mxu0 %v5779_v62  ;;  %v5815_v61 = vpack.c.bf16 %v946_v33, %v942_v42  ;;  %v4362_v0 = vor.u32 %v4711_v57, %v4359_v52  ;;  %v3978_v25 = vor.u32 %v4615_v27, %v3975_v16  ;;  %v813_v22 = vmul.f32 %v5491_v15, %v745_v6  ;;  %v7250_v14 = vld [vmem:[#allocation35_spill] sm:$0xff]  ;;  %v4675_v57 = vld [vmem:[#allocation2 + $0x204] sm:$0xf] }
 0x183   :  { %1843 = vmatmul.bf16.gmra.mxu1 %v5781_v44  ;;  %v5817_v43 = vpack.c.bf16 %v947_v36, %v943_v56  ;;  %v817_v41 = vmul.f32 %v5491_v15, %v749_v53  ;;  %2066 = vmatpush.bf16.msra.mxu2 %v4234_v3  ;;  %v4106_v24 = vor.u32 %v4647_v34, %v4103_v45  ;;  %v4215_v38 = vld [vmem:[#allocation2 + $0x210] sm:$0xf0]  ;;  %v4707_v6 = vld [vmem:[#allocation2 + $0x304] sm:$0xf]  ;;  %v7252_v3 = vld [vmem:[#allocation36_spill] sm:$0xff] }
 0x184   :  { %2115 = vmatpush.bf16.msra.mxu3 %v4362_v0  ;;  %1968 = vmatpush.bf16.msra.mxu0 %v3978_v25  ;;  %v886_v21 = vadd.f32 %v5463_v59, %v812_v46  ;;  %v890_v39 = vadd.f32 %v5463_v59, %v816_v49  ;;  %v887_v31 = vadd.f32 %v5472_v10, %v813_v22  ;;  %v4343_v16 = vld [vmem:[#allocation2 + $0x310] sm:$0xf0]  ;;  %v4611_v46 = vld [vmem:[#allocation2 + $0x4] sm:$0xf] }
 0x185   :  { %7243 = vst [vmem:[#allocation14_spill] sm:$0xff] %v5817_v43  ;;  %2017 = vmatpush.bf16.msra.mxu1 %v4106_v24  ;;  %v891_v55 = vadd.f32 %v5472_v10, %v817_v41  ;;  %v756_v40 = vsub.f32 %v7249_v28, %v5403_v1  ;;  %v752_v54 = vsub.f32 %v7250_v14, %v5403_v1  ;;  %v3959_v49 = vld [vmem:[#allocation2 + $0x10] sm:$0xf0]  ;;  %v4643_v45 = vld [vmem:[#allocation2 + $0x104] sm:$0xf] }
 0x186   :  { %v950_v42 = vmax.f32 %v886_v21, 0.0  ;;  %v954_v33 = vmax.f32 %v890_v39, 0.0  ;;  %v951_v56 = vmax.f32 %v887_v31, 0.0  ;;  %v757_v53 = vsub.f32 %v7251_v30, %v5405_v50  ;;  %v4087_v22 = vld [vmem:[#allocation2 + $0x110] sm:$0xf0] }
 0x187   :  { %v955_v36 = vmax.f32 %v891_v55, 0.0  ;;  %v753_v52 = vsub.f32 %v7252_v3, %v5405_v50  ;;  %v4218_v27 = vor.u32 %v4675_v57, %v4215_v38  ;;  %v824_v0 = vmul.f32 %v5483_v23, %v756_v40  ;;  %v4333_v28 = vld [vmem:[#allocation2 + $0x2e8] sm:$0xf]  ;;  %v4738_v14 = vld [vmem:[#allocation2 + $0x3f4] sm:$0xf0] }
 0x188   :  { %v5839_v2 = vpack.c.bf16 %v954_v33, %v950_v42  ;;  %v820_v25 = vmul.f32 %v5483_v23, %v752_v54  ;;  %v4346_v1 = vor.u32 %v4707_v6, %v4343_v16  ;;  %v3962_v34 = vor.u32 %v4611_v46, %v3959_v49  ;;  %v4461_v40 = vld [vmem:[#allocation2 + $0x3e8] sm:$0xf]  ;;  %v4642_v38 = vld [vmem:[#allocation2 + $0xf4] sm:$0xf0]  ;;  %v7255_v46 = vld [vmem:[#allocation5_spill] sm:$0xff] }
 0x189   :  { %v5841_v63 = vpack.c.bf16 %v955_v36, %v951_v56  ;;  %v825_v41 = vmul.f32 %v5491_v15, %v757_v53  ;;  %v821_v24 = vmul.f32 %v5491_v15, %v753_v52  ;;  %2067 = vmatpush.bf16.msra.mxu2 %v4218_v27  ;;  %v4090_v21 = vor.u32 %v4643_v45, %v4087_v22  ;;  %v4077_v57 = vld [vmem:[#allocation2 + $0xe8] sm:$0xf]  ;;  %v4674_v53 = vld [vmem:[#allocation2 + $0x1f4] sm:$0xf0] }
 0x18a   :  { %1892 = vmatmul.bf16.gmra.mxu2 %v5696_v19  ;;  %2116 = vmatpush.bf16.msra.mxu3 %v4346_v1  ;;  %v898_v50 = vadd.f32 %v5463_v59, %v824_v0  ;;  %v894_v39 = vadd.f32 %v5463_v59, %v820_v25  ;;  %v4706_v59 = vld [vmem:[#allocation2 + $0x2f4] sm:$0xf0]  ;;  %v4462_v54 = vor.u32 %v4738_v14, %v4461_v40  ;;  %v4205_v6 = vld [vmem:[#allocation2 + $0x1e8] sm:$0xf] }
 0x18b   :  { %7248 = vst [vmem:[#allocation15_spill] sm:$0xff] %v5841_v63  ;;  %1969 = vmatpush.bf16.msra.mxu0 %v3962_v34  ;;  %2018 = vmatpush.bf16.msra.mxu1 %v4090_v21  ;;  %v899_v31 = vadd.f32 %v5472_v10, %v825_v41  ;;  %v895_v23 = vadd.f32 %v5472_v10, %v821_v24  ;;  %v4317_v49 = vld [vmem:[#allocation2 + $0x2c8] sm:$0xf]  ;;  %v4702_v0 = vld [vmem:[#allocation2 + $0x2d4] sm:$0xf0] }
 0x18c   :  { %v958_v55 = vmax.f32 %v894_v39, 0.0  ;;  %v962_v42 = vmax.f32 %v898_v50, 0.0  ;;  %v4334_v10 = vor.u32 %v4706_v59, %v4333_v28  ;;  %v4078_v30 = vor.u32 %v4642_v38, %v4077_v57  ;;  %v4445_v25 = vld [vmem:[#allocation2 + $0x3c8] sm:$0xf]  ;;  %v7256_v1 = vld [vmem:[#allocation8_spill] sm:$0xff] }
 0x18d   :  { %v959_v33 = vmax.f32 %v895_v23, 0.0  ;;  %v963_v56 = vmax.f32 %v899_v31, 0.0  ;;  %v4206_v3 = vor.u32 %v4674_v53, %v4205_v6  ;;  %v4318_v34 = vor.u32 %v4702_v0, %v4317_v49  ;;  %v4734_v45 = vld [vmem:[#allocation2 + $0x3d4] sm:$0xf0]  ;;  %v4061_v50 = vld [vmem:[#allocation2 + $0xc8] sm:$0xf] }
 0x18e   :  { %v5863_v15 = vpack.c.bf16 %v962_v42, %v958_v55  ;;  %2256 = vmatpush.bf16.msrb.mxu2 %v4334_v10  ;;  %2305 = vmatpush.bf16.msrb.mxu3 %v4462_v54  ;;  %v4446_v22 = vor.u32 %v4734_v45, %v4445_v25  ;;  %v4638_v39 = vld [vmem:[#allocation2 + $0xd4] sm:$0xf0]  ;;  %v4189_v31 = vld [vmem:[#allocation2 + $0x1c8] sm:$0xf] }
 0x18f   :  { %v5865_v36 = vpack.c.bf16 %v963_v56, %v959_v33  ;;  %2158 = vmatpush.bf16.msrb.mxu0 %v4078_v30  ;;  %2207 = vmatpush.bf16.msrb.mxu1 %v4206_v3  ;;  %v4062_v23 = vor.u32 %v4638_v39, %v4061_v50  ;;  %v4670_v55 = vld [vmem:[#allocation2 + $0x1d4] sm:$0xf0]  ;;  %v4301_v10 = vld [vmem:[#allocation2 + $0x2a8] sm:$0xf] }
 0x190   :  { %7253 = vst [vmem:[#allocation16_spill] sm:$0xff] %v5863_v15  ;;  %v4190_v42 = vor.u32 %v4670_v55, %v4189_v31  ;;  %v4698_v14 = vld [vmem:[#allocation2 + $0x2b4] sm:$0xf0]  ;;  %v4429_v54 = vld [vmem:[#allocation2 + $0x3a8] sm:$0xf] }
 0x191   :  { %1941 = vmatmul.bf16.gmra.mxu3 %v5714_v51  ;;  %7254 = vst [vmem:[#allocation17_spill] sm:$0xff] %v5865_v36  ;;  %v4302_v57 = vor.u32 %v4698_v14, %v4301_v10  ;;  %v4730_v38 = vld [vmem:[#allocation2 + $0x3b4] sm:$0xf0]  ;;  %v4045_v0 = vld [vmem:[#allocation2 + $0xa8] sm:$0xf] }
 0x192   :  { %1799 = vmatmul.bf16.gmra.mxu0 %v5815_v61  ;;  %2257 = vmatpush.bf16.msrb.mxu2 %v4318_v34  ;;  %v4430_v6 = vor.u32 %v4730_v38, %v4429_v54  ;;  %v4634_v25 = vld [vmem:[#allocation2 + $0xb4] sm:$0xf0]  ;;  %v4173_v34 = vld [vmem:[#allocation2 + $0x1a8] sm:$0xf] }
 0x193   :  { %1848 = vmatmul.bf16.gmra.mxu1 %v5817_v43  ;;  %2306 = vmatpush.bf16.msrb.mxu3 %v4446_v22  ;;  %v4046_v45 = vor.u32 %v4634_v25, %v4045_v0  ;;  %v4666_v22 = vld [vmem:[#allocation2 + $0x1b4] sm:$0xf0] }
 0x194   :  { %2159 = vmatpush.bf16.msrb.mxu0 %v4062_v23  ;;  %2208 = vmatpush.bf16.msrb.mxu1 %v4190_v42  ;;  %v4285_v42 = vld [vmem:[#allocation2 + $0x288] sm:$0xf]  ;;  %v4662_v0 = vld [vmem:[#allocation2 + $0x194] sm:$0xf0] }
 0x196   :  { %2258 = vmatpush.bf16.msrb.mxu2 %v4302_v57 }
 0x197   :  { %2307 = vmatpush.bf16.msrb.mxu3 %v4430_v6 }
 0x198   :  { %2160 = vmatpush.bf16.msrb.mxu0 %v4046_v45 }
 0x19a   :  { %1897 = vmatmul.bf16.gmra.mxu2 %v5740_v35 }
 0x1a1   :  { %1946 = vmatmul.bf16.gmra.mxu3 %v5754_v11 }
 0x1a2   :  { %1804 = vmatmul.bf16.gmra.mxu0 %v5839_v2 }
 0x1a3   :  { %1853 = vmatmul.bf16.gmra.mxu1 %v5841_v63 }
 0x1aa   :  { %1902 = vmatmul.bf16.gmra.mxu2 %v5771_v9 }
 0x1b1   :  { %1951 = vmatmul.bf16.gmra.mxu3 %v5783_v4 }
 0x1b2   :  { %1809 = vmatmul.bf16.gmra.mxu0 %v5863_v15 }
 0x1b3   :  { %1858 = vmatmul.bf16.gmra.mxu1 %v5865_v36 }
 0x1ba   :  { %1907 = vmatmul.bf16.gmra.mxu2 %v5806_v5 }
 0x1bf   :  { %v1775_v52 = vpop.f32.mrf.mxu0 }
 0x1c0   :  { %v1824_v27 = vpop.f32.mrf.mxu1 }
 0x1c1   :  { %v1825_v16 = vadd.f32 %v1824_v27, %v1775_v52  ;;  %1956 = vmatmul.bf16.gmra.mxu3 %v5808_v48 }
 0x1c2   :  { %1970 = vmatmul.bf16.vlgmr.msra.gmra.mxu0 %v7255_v46 }
 0x1c3   :  { %2019 = vmatmul.bf16.vlgmr.msra.gmra.mxu1 %v7256_v1 }
 0x1c7   :  { %v1777_v41 = vpop.f32.mrf.mxu0 }
 0x1c8   :  { %v1826_v24 = vpop.f32.mrf.mxu1 }
 0x1c9   :  { %v1827_v21 = vadd.f32 %v1826_v24, %v1777_v41  ;;  %v4174_v41 = vor.u32 %v4666_v22, %v4173_v34 }
 0x1ca   :  { %2068 = vmatmul.bf16.vlgmr.msra.gmra.mxu2 %v5568_v8 }
 0x1cb   :  { %2209 = vmatpush.bf16.msrb.mxu1 %v4174_v41 }
 0x1cd   :  { %v1873_v33 = vpop.f32.mrf.mxu2 }
 0x1ce   :  { %v1874_v56 = vadd.f32 %v1873_v33, %v1825_v16  ;;  %v4694_v33 = vld [vmem:[#allocation2 + $0x294] sm:$0xf0] }
 0x1cf   :  { %v1780_v28 = vpop.f32.mrf.mxu0 }
 0x1d0   :  { %v1829_v59 = vpop.f32.mrf.mxu1 }
 0x1d1   :  { %v1830_v40 = vadd.f32 %v1829_v59, %v1780_v28  ;;  %2117 = vmatmul.bf16.vlgmr.msra.gmra.mxu3 %v5594_v17  ;;  %v4286_v28 = vor.u32 %v4694_v33, %v4285_v42  ;;  %v4726_v59 = vld [vmem:[#allocation2 + $0x394] sm:$0xf0] }
 0x1d2   :  { %1975 = vmatmul.bf16.gmra.mxu0 %v5596_v58  ;;  %v4722_v33 = vld [vmem:[#allocation2 + $0x374] sm:$0xf0] }
 0x1d3   :  { %2024 = vmatmul.bf16.gmra.mxu1 %v5602_v29  ;;  %2259 = vmatpush.bf16.msrb.mxu2 %v4286_v28 }
 0x1d4   :  { %v1922_v30 = vpop.f32.mrf.mxu3 }
 0x1d5   :  { %v1875_v53 = vpop.f32.mrf.mxu2  ;;  %v5878_v3 = vadd.f32 %v1922_v30, %v1874_v56  ;;  %v4413_v56 = vld [vmem:[#allocation2 + $0x388] sm:$0xf] }
 0x1d6   :  { %v1876_v52 = vadd.f32 %v1875_v53, %v1827_v21  ;;  %v4414_v10 = vor.u32 %v4726_v59, %v4413_v56  ;;  %v4029_v53 = vld [vmem:[#allocation2 + $0x88] sm:$0xf] }
 0x1d7   :  { %7257 = vst [vmem:[#allocation18_spill] sm:$0xff] %v5878_v3  ;;  %v1782_v27 = vpop.f32.mrf.mxu0 }
 0x1d8   :  { %v1831_v16 = vpop.f32.mrf.mxu1  ;;  %2308 = vmatpush.bf16.msrb.mxu3 %v4414_v10 }
 0x1d9   :  { %v1832_v49 = vadd.f32 %v1831_v16, %v1782_v27  ;;  %v4157_v27 = vld [vmem:[#allocation2 + $0x188] sm:$0xf] }
 0x1da   :  { %2073 = vmatmul.bf16.gmra.mxu2 %v5629_v26  ;;  %v4158_v25 = vor.u32 %v4662_v0, %v4157_v27  ;;  %v4658_v27 = vld [vmem:[#allocation2 + $0x174] sm:$0xf0] }
 0x1dc   :  { %v1924_v24 = vpop.f32.mrf.mxu3  ;;  %2210 = vmatpush.bf16.msrb.mxu1 %v4158_v25 }
 0x1dd   :  { %v1878_v50 = vpop.f32.mrf.mxu2  ;;  %v5881_v39 = vadd.f32 %v1924_v24, %v1876_v52  ;;  %v4630_v52 = vld [vmem:[#allocation2 + $0x94] sm:$0xf0] }
 0x1de   :  { %v1879_v31 = vadd.f32 %v1878_v50, %v1830_v40  ;;  %v4030_v16 = vor.u32 %v4630_v52, %v4029_v53  ;;  %v4141_v53 = vld [vmem:[#allocation2 + $0x168] sm:$0xf] }
 0x1df   :  { %7258 = vst [vmem:[#allocation26_spill] sm:$0xff] %v5881_v39  ;;  %v1785_v21 = vpop.f32.mrf.mxu0 }
 0x1e0   :  { %v1834_v23 = vpop.f32.mrf.mxu1  ;;  %2161 = vmatpush.bf16.msrb.mxu0 %v4030_v16  ;;  %v4142_v16 = vor.u32 %v4658_v27, %v4141_v53  ;;  %v4125_v53 = vld [vmem:[#allocation2 + $0x148] sm:$0xf]  ;;  %v4654_v27 = vld [vmem:[#allocation2 + $0x154] sm:$0xf0] }
 0x1e1   :  { %v1835_v55 = vadd.f32 %v1834_v23, %v1785_v21  ;;  %2122 = vmatmul.bf16.gmra.mxu3 %v5645_v7  ;;  %v4690_v21 = vld [vmem:[#allocation2 + $0x274] sm:$0xf0]  ;;  %v4397_v23 = vld [vmem:[#allocation2 + $0x368] sm:$0xf] }
 0x1e2   :  { %1980 = vmatmul.bf16.gmra.mxu0 %v5647_v12  ;;  %v4398_v56 = vor.u32 %v4722_v33, %v4397_v23  ;;  %2211 = vmatpush.bf16.msrb.mxu1 %v4142_v16  ;;  %v4126_v16 = vor.u32 %v4654_v27, %v4125_v53  ;;  %v3981_v53 = vld [vmem:[#allocation2 + $0x28] sm:$0xf] }
 0x1e3   :  { %2029 = vmatmul.bf16.gmra.mxu1 %v5650_v60  ;;  %v4109_v27 = vld [vmem:[#allocation2 + $0x128] sm:$0xf] }
 0x1e4   :  { %v1927_v14 = vpop.f32.mrf.mxu3  ;;  %2309 = vmatpush.bf16.msrb.mxu3 %v4398_v56 }
 0x1e5   :  { %v1880_v54 = vpop.f32.mrf.mxu2  ;;  %v5886_v40 = vadd.f32 %v1927_v14, %v1879_v31  ;;  %v4269_v31 = vld [vmem:[#allocation2 + $0x268] sm:$0xf] }
 0x1e6   :  { %v1881_v57 = vadd.f32 %v1880_v54, %v1832_v49  ;;  %v4270_v42 = vor.u32 %v4690_v21, %v4269_v31  ;;  %v4686_v31 = vld [vmem:[#allocation2 + $0x254] sm:$0xf0]  ;;  %v4381_v21 = vld [vmem:[#allocation2 + $0x348] sm:$0xf]  ;;  %2212 = vmatpush.bf16.msrb.mxu1 %v4126_v16 }
 0x1e7   :  { %7259 = vst [vmem:[#allocation20_spill] sm:$0xff] %v5886_v40  ;;  %v1787_v38 = vpop.f32.mrf.mxu0 }
 0x1e8   :  { %v1836_v6 = vpop.f32.mrf.mxu1  ;;  %2260 = vmatpush.bf16.msrb.mxu2 %v4270_v42  ;;  %v4718_v42 = vld [vmem:[#allocation2 + $0x354] sm:$0xf0] }
 0x1e9   :  { %v1837_v30 = vadd.f32 %v1836_v6, %v1787_v38  ;;  %v4013_v38 = vld [vmem:[#allocation2 + $0x68] sm:$0xf]  ;;  %v4626_v6 = vld [vmem:[#allocation2 + $0x74] sm:$0xf0]  ;;  %v4382_v33 = vor.u32 %v4718_v42, %v4381_v21 }
 0x1ea   :  { %2078 = vmatmul.bf16.gmra.mxu2 %v5656_v13  ;;  %v4014_v52 = vor.u32 %v4626_v6, %v4013_v38  ;;  %v3997_v38 = vld [vmem:[#allocation2 + $0x48] sm:$0xf]  ;;  %v4622_v6 = vld [vmem:[#allocation2 + $0x54] sm:$0xf0] }
 0x1eb   :  { %2310 = vmatpush.bf16.msrb.mxu3 %v4382_v33  ;;  %v4682_v21 = vld [vmem:[#allocation2 + $0x234] sm:$0xf0] }
 0x1ec   :  { %v1929_v34 = vpop.f32.mrf.mxu3  ;;  %2162 = vmatpush.bf16.msrb.mxu0 %v4014_v52  ;;  %v3998_v52 = vor.u32 %v4622_v6, %v3997_v38  ;;  %v4714_v33 = vld [vmem:[#allocation2 + $0x334] sm:$0xf0] }
 0x1ed   :  { %v1883_v45 = vpop.f32.mrf.mxu2  ;;  %v5889_v22 = vadd.f32 %v1929_v34, %v1881_v57 }
 0x1ee   :  { %v1884_v41 = vadd.f32 %v1883_v45, %v1835_v55 }
 0x1ef   :  { %7260 = vst [vmem:[#allocation19_spill] sm:$0xff] %v5889_v22  ;;  %v1790_v49 = vpop.f32.mrf.mxu0 }
 0x1f0   :  { %v1839_v24 = vpop.f32.mrf.mxu1  ;;  %2163 = vmatpush.bf16.msrb.mxu0 %v3998_v52  ;;  %v4618_v52 = vld [vmem:[#allocation2 + $0x34] sm:$0xf0] }
 0x1f1   :  { %v1840_v50 = vadd.f32 %v1839_v24, %v1790_v49  ;;  %2127 = vmatmul.bf16.gmra.mxu3 %v5679_v32  ;;  %v4253_v24 = vld [vmem:[#allocation2 + $0x248] sm:$0xf]  ;;  %v3982_v16 = vor.u32 %v4618_v52, %v3981_v53 }
 0x1f2   :  { %1985 = vmatmul.bf16.gmra.mxu0 %v5706_v37  ;;  %v4254_v23 = vor.u32 %v4686_v31, %v4253_v24  ;;  %v4237_v31 = vld [vmem:[#allocation2 + $0x228] sm:$0xf] }
 0x1f3   :  { %2034 = vmatmul.bf16.gmra.mxu1 %v5724_v18  ;;  %v4238_v42 = vor.u32 %v4682_v21, %v4237_v31 }
 0x1f4   :  { %v1932_v28 = vpop.f32.mrf.mxu3  ;;  %2261 = vmatpush.bf16.msrb.mxu2 %v4254_v23  ;;  %v4365_v23 = vld [vmem:[#allocation2 + $0x328] sm:$0xf]  ;;  %2164 = vmatpush.bf16.msrb.mxu0 %v3982_v16 }
 0x1f5   :  { %v1885_v59 = vpop.f32.mrf.mxu2  ;;  %v5894_v55 = vadd.f32 %v1932_v28, %v1884_v41 }
 0x1f6   :  { %v1886_v10 = vadd.f32 %v1885_v59, %v1837_v30 }
 0x1f7   :  { %7261 = vst [vmem:[#allocation21_spill] sm:$0xff] %v5894_v55  ;;  %v1792_v14 = vpop.f32.mrf.mxu0 }
 0x1f8   :  { %v1841_v54 = vpop.f32.mrf.mxu1  ;;  %2262 = vmatpush.bf16.msrb.mxu2 %v4238_v42  ;;  %v4221_v42 = vld [vmem:[#allocation2 + $0x208] sm:$0xf] }
 0x1f9   :  { %v1842_v57 = vadd.f32 %v1841_v54, %v1792_v14 }
 0x1fa   :  { %2083 = vmatmul.bf16.gmra.mxu2 %v5744_v47 }
 0x1fc   :  { %v1934_v0 = vpop.f32.mrf.mxu3 }
 0x1fd   :  { %v1888_v25 = vpop.f32.mrf.mxu2  ;;  %v5897_v34 = vadd.f32 %v1934_v0, %v1886_v10 }
 0x1fe   :  { %v1889_v45 = vadd.f32 %v1888_v25, %v1840_v50 }
 0x1ff   :  { %7262 = vst [vmem:[#allocation29_spill] sm:$0xff] %v5897_v34  ;;  %v1795_v30 = vpop.f32.mrf.mxu0 }
 0x200   :  { %v1844_v41 = vpop.f32.mrf.mxu1 }
 0x201   :  { %v1845_v49 = vadd.f32 %v1844_v41, %v1795_v30  ;;  %2132 = vmatmul.bf16.gmra.mxu3 %v5777_v20 }
 0x202   :  { %1990 = vmatmul.bf16.gmra.mxu0 %v5779_v62 }
 0x203   :  { %2039 = vmatmul.bf16.gmra.mxu1 %v5781_v44 }
 0x204   :  { %v1937_v56 = vpop.f32.mrf.mxu3 }
 0x205   :  { %v1890_v28 = vpop.f32.mrf.mxu2  ;;  %v5902_v50 = vadd.f32 %v1937_v56, %v1889_v45  ;;  %v4366_v56 = vor.u32 %v4714_v33, %v4365_v23  ;;  %v4678_v33 = vld [vmem:[#allocation2 + $0x214] sm:$0xf0] }
 0x206   :  { %v1891_v59 = vadd.f32 %v1890_v28, %v1842_v57 }
 0x207   :  { %7263 = vst [vmem:[#allocation33_spill] sm:$0xff] %v5902_v50  ;;  %v1797_v10 = vpop.f32.mrf.mxu0  ;;  %2311 = vmatpush.bf16.msrb.mxu3 %v4366_v56  ;;  %v4349_v56 = vld [vmem:[#allocation2 + $0x308] sm:$0xf] }
 0x208   :  { %v1846_v14 = vpop.f32.mrf.mxu1 }
 0x209   :  { %v1847_v54 = vadd.f32 %v1846_v14, %v1797_v10 }
 0x20a   :  { %2088 = vmatmul.bf16.gmra.mxu2 %v5696_v19 }
 0x20c   :  { %v1939_v0 = vpop.f32.mrf.mxu3 }
 0x20d   :  { %v1893_v25 = vpop.f32.mrf.mxu2  ;;  %v5905_v30 = vadd.f32 %v1939_v0, %v1891_v59  ;;  %v4650_v0 = vld [vmem:[#allocation2 + $0x134] sm:$0xf0] }
 0x20e   :  { %v1894_v45 = vadd.f32 %v1893_v25, %v1845_v49  ;;  %v4110_v25 = vor.u32 %v4650_v0, %v4109_v27  ;;  %v3965_v0 = vld [vmem:[#allocation2 + $0x8] sm:$0xf] }
 0x20f   :  { %7264 = vst [vmem:[#allocation30_spill] sm:$0xff] %v5905_v30  ;;  %v1800_v57 = vpop.f32.mrf.mxu0 }
 0x210   :  { %v1849_v41 = vpop.f32.mrf.mxu1  ;;  %2213 = vmatpush.bf16.msrb.mxu1 %v4110_v25  ;;  %v4614_v25 = vld [vmem:[#allocation2 + $0x14] sm:$0xf0] }
 0x211   :  { %v1850_v24 = vadd.f32 %v1849_v41, %v1800_v57  ;;  %2137 = vmatmul.bf16.gmra.mxu3 %v5714_v51 }
 0x212   :  { %1995 = vmatmul.bf16.gmra.mxu0 %v5815_v61 }
 0x213   :  { %2044 = vmatmul.bf16.gmra.mxu1 %v5817_v43 }
 0x214   :  { %v1942_v28 = vpop.f32.mrf.mxu3 }
 0x215   :  { %v1895_v59 = vpop.f32.mrf.mxu2  ;;  %v5910_v49 = vadd.f32 %v1942_v28, %v1894_v45  ;;  %v4222_v28 = vor.u32 %v4678_v33, %v4221_v42 }
 0x216   :  { %v1896_v10 = vadd.f32 %v1895_v59, %v1847_v54  ;;  %v4710_v59 = vld [vmem:[#allocation2 + $0x314] sm:$0xf0] }
 0x217   :  { %v1802_v14 = vpop.f32.mrf.mxu0  ;;  %2263 = vmatpush.bf16.msrb.mxu2 %v4222_v28 }
 0x218   :  { %v1851_v38 = vpop.f32.mrf.mxu1 }
 0x219   :  { %v1852_v6 = vadd.f32 %v1851_v38, %v1802_v14  ;;  %v4350_v14 = vor.u32 %v4710_v59, %v4349_v56 }
 0x21a   :  { %2093 = vmatmul.bf16.gmra.mxu2 %v5740_v35 }
 0x21b   :  { %2312 = vmatpush.bf16.msrb.mxu3 %v4350_v14  ;;  %v2550_v14 = vadd.f32 %v5881_v39, %v5878_v3 }
 0x21c   :  { %v1944_v57 = vpop.f32.mrf.mxu3 }
 0x21d   :  { %v1898_v41 = vpop.f32.mrf.mxu2  ;;  %v5913_v31 = vadd.f32 %v1944_v57, %v1896_v10  ;;  %v4093_v57 = vld [vmem:[#allocation2 + $0x108] sm:$0xf] }
 0x21e   :  { %v1899_v45 = vadd.f32 %v1898_v41, %v1850_v24  ;;  %v3966_v41 = vor.u32 %v4614_v25, %v3965_v0 }
 0x21f   :  { %v1805_v54 = vpop.f32.mrf.mxu0 }
 0x220   :  { %v1854_v21 = vpop.f32.mrf.mxu1  ;;  %2165 = vmatpush.bf16.msrb.mxu0 %v3966_v41 }
 0x221   :  { %v1855_v23 = vadd.f32 %v1854_v21, %v1805_v54  ;;  %2142 = vmatmul.bf16.gmra.mxu3 %v5754_v11  ;;  %v4646_v54 = vld [vmem:[#allocation2 + $0x114] sm:$0xf0] }
 0x222   :  { %2000 = vmatmul.bf16.gmra.mxu0 %v5839_v2  ;;  %v4094_v21 = vor.u32 %v4646_v54, %v4093_v57 }
 0x223   :  { %2049 = vmatmul.bf16.gmra.mxu1 %v5841_v63 }
 0x224   :  { %v1947_v38 = vpop.f32.mrf.mxu3  ;;  %2214 = vmatpush.bf16.msrb.mxu1 %v4094_v21 }
 0x225   :  { %v1900_v10 = vpop.f32.mrf.mxu2  ;;  %v5918_v24 = vadd.f32 %v1947_v38, %v1899_v45 }
 0x226   :  { %v1901_v53 = vadd.f32 %v1900_v10, %v1852_v6 }
 0x227   :  { %v1807_v52 = vpop.f32.mrf.mxu0 }
 0x228   :  { %v1856_v27 = vpop.f32.mrf.mxu1 }
 0x229   :  { %v1857_v16 = vadd.f32 %v1856_v27, %v1807_v52  ;;  %v2551_v52 = vadd.f32 %v2550_v14, %v5886_v40 }
 0x22a   :  { %2098 = vmatmul.bf16.gmra.mxu2 %v5771_v9 }
 0x22b   :  { %v2552_v0 = vadd.f32 %v2551_v52, %v5889_v22 }
 0x22c   :  { %v1949_v42 = vpop.f32.mrf.mxu3 }
 0x22d   :  { %v1903_v33 = vpop.f32.mrf.mxu2  ;;  %v5921_v56 = vadd.f32 %v1949_v42, %v1901_v53  ;;  %v2553_v41 = vadd.f32 %v2552_v0, %v5894_v55 }
 0x22e   :  { %v1904_v45 = vadd.f32 %v1903_v33, %v1855_v23 }
 0x22f   :  { %v1810_v6 = vpop.f32.mrf.mxu0  ;;  %v2554_v54 = vadd.f32 %v2553_v41, %v5897_v34 }
 0x230   :  { %v1859_v28 = vpop.f32.mrf.mxu1 }
 0x231   :  { %v1860_v59 = vadd.f32 %v1859_v28, %v1810_v6  ;;  %2147 = vmatmul.bf16.gmra.mxu3 %v5783_v4  ;;  %v2555_v33 = vadd.f32 %v2554_v54, %v5902_v50  ;;  %v2638_v54 = vmul.f32 %v5878_v3, %v5878_v3 }
 0x232   :  { %2005 = vmatmul.bf16.gmra.mxu0 %v5863_v15 }
 0x233   :  { %2054 = vmatmul.bf16.gmra.mxu1 %v5865_v36 }
 0x234   :  { %v1952_v38 = vpop.f32.mrf.mxu3 }
 0x235   :  { %v1905_v10 = vpop.f32.mrf.mxu2  ;;  %v5929_v53 = vadd.f32 %v1952_v38, %v1904_v45 }
 0x236   :  { %v1906_v23 = vadd.f32 %v1905_v10, %v1857_v16  ;;  %v2556_v16 = vadd.f32 %v2555_v33, %v5905_v30 }
 0x237   :  { %v1812_v27 = vpop.f32.mrf.mxu0 }
 0x238   :  { %v1861_v25 = vpop.f32.mrf.mxu1  ;;  %v2557_v10 = vadd.f32 %v2556_v16, %v5910_v49 }
 0x239   :  { %v1862_v57 = vadd.f32 %v1861_v25, %v1812_v27 }
 0x23a   :  { %2103 = vmatmul.bf16.gmra.mxu2 %v5806_v5  ;;  %v2558_v52 = vadd.f32 %v2557_v10, %v5913_v31 }
 0x23c   :  { %v1954_v21 = vpop.f32.mrf.mxu3  ;;  %v2559_v0 = vadd.f32 %v2558_v52, %v5918_v24  ;;  %v2658_v52 = vmul.f32 %v5897_v34, %v5897_v34 }
 0x23d   :  { %v1908_v42 = vpop.f32.mrf.mxu2  ;;  %v5936_v6 = vadd.f32 %v1954_v21, %v1906_v23  ;;  %v2642_v23 = vmul.f32 %v5881_v39, %v5881_v39  ;;  %v2646_v21 = vmul.f32 %v5886_v40, %v5886_v40  ;;  %v4672_v39 = vld [vmem:[#allocation2 + $0x1ec] sm:$0xf] }
 0x23e   :  { %v1909_v45 = vadd.f32 %v1908_v42, %v1860_v59  ;;  %v2560_v42 = vadd.f32 %v2559_v0, %v5921_v56 }
 0x23f   :  { %v1971_v28 = vpop.f32.mrf.mxu0  ;;  %v2702_v33 = vadd.f32 %v2642_v23, %v2638_v54  ;;  %v2662_v54 = vmul.f32 %v5902_v50, %v5902_v50  ;;  %v4704_v50 = vld [vmem:[#allocation2 + $0x2ec] sm:$0xf]  ;;  %v2690_v40 = vmul.f32 %v5936_v6, %v5936_v6 }
 0x240   :  { %v2020_v14 = vpop.f32.mrf.mxu1  ;;  %v2561_v16 = vadd.f32 %v2560_v42, %v5929_v53 }
 0x241   :  { %v5939_v38 = vadd.f32 %v2020_v14, %v1971_v28  ;;  %2152 = vmatmul.bf16.gmra.mxu3 %v5808_v48  ;;  %v2650_v28 = vmul.f32 %v5889_v22, %v5889_v22  ;;  %v2703_v14 = vadd.f32 %v2702_v33, %v2646_v21  ;;  %v2666_v33 = vmul.f32 %v5905_v30, %v5905_v30  ;;  %v4640_v22 = vld [vmem:[#allocation2 + $0xec] sm:$0xf] }
 0x242   :  { %2166 = vmatmul.bf16.vlgmr.msrb.gmra.mxu0 %v7255_v46 }
 0x243   :  { %2215 = vmatmul.bf16.vlgmr.msrb.gmra.mxu1 %v7256_v1  ;;  %v2704_v10 = vadd.f32 %v2703_v14, %v2650_v28 }
 0x244   :  { %v1957_v59 = vpop.f32.mrf.mxu3 }
 0x245   :  { %v1910_v27 = vpop.f32.mrf.mxu2  ;;  %v5949_v25 = vadd.f32 %v1957_v59, %v1909_v45  ;;  %v2562_v45 = vadd.f32 %v2561_v16, %v5936_v6 }
 0x246   :  { %v1911_v41 = vadd.f32 %v1910_v27, %v1862_v57  ;;  %v2654_v57 = vmul.f32 %v5894_v55, %v5894_v55 }
 0x247   :  { %v2563_v23 = vadd.f32 %v2562_v45, %v5949_v25  ;;  %v2674_v45 = vmul.f32 %v5913_v31, %v5913_v31 }
 0x248   :  { %v2705_v0 = vadd.f32 %v2704_v10, %v2654_v57 }
 0x24a   :  { %2264 = vmatmul.bf16.vlgmr.msrb.gmra.mxu2 %v5568_v8  ;;  %v2706_v42 = vadd.f32 %v2705_v0, %v2658_v52 }
 0x24c   :  { %v1959_v59 = vpop.f32.mrf.mxu3  ;;  %v2707_v28 = vadd.f32 %v2706_v42, %v2662_v54  ;;  %v2682_v54 = vmul.f32 %v5921_v56, %v5921_v56 }
 0x24d   :  { %v5966_v27 = vadd.f32 %v1959_v59, %v1911_v41  ;;  %v2670_v41 = vmul.f32 %v5910_v49, %v5910_v49  ;;  %v2678_v59 = vmul.f32 %v5918_v24, %v5918_v24 }
 0x24e   :  { %v2708_v57 = vadd.f32 %v2707_v28, %v2666_v33  ;;  %v2022_v28 = vpop.f32.mrf.mxu1 }
 0x24f   :  { %v2564_v21 = vadd.f32 %v2563_v23, %v5966_v27 }
 0x250   :  { %v2709_v52 = vadd.f32 %v2708_v57, %v2670_v41  ;;  %v4335_v41 = vld [vmem:[#allocation2 + $0x2f8] sm:$0xf0] }
 0x251   :  { %v2565_v16 = vrot.slane %v2564_v21, 4  ;;  %2313 = vmatmul.bf16.vlgmr.msrb.gmra.mxu3 %v5594_v17  ;;  %v4338_v55 = vor.u32 %v4704_v50, %v4335_v41  ;;  %v4319_v50 = vld [vmem:[#allocation2 + $0x2d8] sm:$0xf0] }
 0x252   :  { %2171 = vmatmul.bf16.gmra.mxu0 %v5596_v58  ;;  %v2710_v0 = vadd.f32 %v2709_v52, %v2674_v45  ;;  %v4463_v45 = vld [vmem:[#allocation2 + $0x3f8] sm:$0xf0] }
 0x253   :  { %2220 = vmatmul.bf16.gmra.mxu1 %v5602_v29  ;;  %v2566_v14 = vadd.f32 %v2565_v16, %v2564_v21  ;;  %v2686_v21 = vmul.f32 %v5929_v53, %v5929_v53  ;;  %v1973_v16 = vpop.f32.mrf.mxu0  ;;  %2452 = vmatpush.bf16.msra.mxu2 %v4338_v55  ;;  %v4191_v41 = vld [vmem:[#allocation2 + $0x1d8] sm:$0xf0] }
 0x254   :  { %v2711_v30 = vadd.f32 %v2710_v0, %v2678_v59  ;;  %v2023_v34 = vadd.f32 %v2022_v28, %v1973_v16  ;;  %v2118_v52 = vpop.f32.mrf.mxu3  ;;  %v2694_v28 = vmul.f32 %v5949_v25, %v5949_v25 }
 0x255   :  { %v2567_v10 = vrot.slane %v2566_v14, 2 }
 0x256   :  { %v2712_v57 = vadd.f32 %v2711_v30, %v2682_v54  ;;  %v4207_v30 = vld [vmem:[#allocation2 + $0x1f8] sm:$0xf0]  ;;  %v4700_v54 = vld [vmem:[#allocation2 + $0x2cc] sm:$0xf] }
 0x257   :  { %v2568_v23 = vadd.f32 %v2567_v10, %v2566_v14  ;;  %v4736_v14 = vld [vmem:[#allocation2 + $0x3ec] sm:$0xf]  ;;  %v2069_v10 = vpop.f32.mrf.mxu2 }
 0x258   :  { %v4466_v0 = vor.u32 %v4736_v14, %v4463_v45  ;;  %v2713_v16 = vadd.f32 %v2712_v57, %v2686_v21  ;;  %v4732_v14 = vld [vmem:[#allocation2 + $0x3cc] sm:$0xf]  ;;  %v4447_v45 = vld [vmem:[#allocation2 + $0x3d8] sm:$0xf0]  ;;  %v2698_v21 = vmul.f32 %v5966_v27, %v5966_v27 }
 0x259   :  { %v2569_v42 = vrot.slane %v2568_v23, 1  ;;  %v4450_v55 = vor.u32 %v4732_v14, %v4447_v45  ;;  %v4632_v14 = vld [vmem:[#allocation2 + $0xac] sm:$0xf]  ;;  %v4047_v45 = vld [vmem:[#allocation2 + $0xb8] sm:$0xf0] }
 0x25a   :  { %2269 = vmatmul.bf16.gmra.mxu2 %v5629_v26  ;;  %2501 = vmatpush.bf16.msra.mxu3 %v4466_v0  ;;  %v4668_v26 = vld [vmem:[#allocation2 + $0x1cc] sm:$0xf]  ;;  %v2714_v29 = vadd.f32 %v2713_v16, %v2690_v40  ;;  %v4303_v0 = vld [vmem:[#allocation2 + $0x2b8] sm:$0xf0]  ;;  %v2025_v40 = vpop.f32.mrf.mxu1 }
 0x25b   :  { %v2570_v33 = vadd.f32 %v2569_v42, %v2568_v23  ;;  %v2070_v23 = vadd.f32 %v2069_v10, %v5939_v38  ;;  %v4079_v42 = vld [vmem:[#allocation2 + $0xf8] sm:$0xf0]  ;;  %v4210_v38 = vor.u32 %v4672_v39, %v4207_v30  ;;  %v4322_v10 = vor.u32 %v4700_v54, %v4319_v50  ;;  %v1976_v50 = vpop.f32.mrf.mxu0 }
 0x25c   :  { %v4082_v3 = vor.u32 %v4640_v22, %v4079_v42  ;;  %v4636_v22 = vld [vmem:[#allocation2 + $0xcc] sm:$0xf]  ;;  %v4063_v42 = vld [vmem:[#allocation2 + $0xd8] sm:$0xf0]  ;;  %v2715_v54 = vadd.f32 %v2714_v29, %v2694_v28 }
 0x25d   :  { %v5989_v59 = vmul.f32 0.0078125, %v2570_v33  ;;  %v5996_v33 = vadd.f32 %v2118_v52, %v2070_v23  ;;  %v4066_v57 = vor.u32 %v4636_v22, %v4063_v42  ;;  %v4696_v52 = vld [vmem:[#allocation2 + $0x2ac] sm:$0xf]  ;;  %2403 = vmatpush.bf16.msra.mxu1 %v4210_v38  ;;  %2453 = vmatpush.bf16.msra.mxu2 %v4322_v10  ;;  %v4431_v30 = vld [vmem:[#allocation2 + $0x3b8] sm:$0xf0]  ;;  %v2026_v22 = vadd.f32 %v2025_v40, %v1976_v50 }
 0x25e   :  { %2354 = vmatpush.bf16.msra.mxu0 %v4082_v3  ;;  %v4194_v3 = vor.u32 %v4668_v26, %v4191_v41  ;;  %v4306_v39 = vor.u32 %v4696_v52, %v4303_v0  ;;  %v4728_v23 = vld [vmem:[#allocation2 + $0x3ac] sm:$0xf]  ;;  %2502 = vmatpush.bf16.msra.mxu3 %v4450_v55  ;;  %v4175_v10 = vld [vmem:[#allocation2 + $0x1b8] sm:$0xf0]  ;;  %v2716_v26 = vadd.f32 %v2715_v54, %v2698_v21 }
 0x25f   :  { %7265 = vst [vmem:[#allocation34_spill] sm:$0xff] %v5996_v33  ;;  %v4434_v16 = vor.u32 %v4728_v23, %v4431_v30  ;;  %v2071_v42 = vpop.f32.mrf.mxu2  ;;  %v4664_v38 = vld [vmem:[#allocation2 + $0x1ac] sm:$0xf]  ;;  %v4287_v40 = vld [vmem:[#allocation2 + $0x298] sm:$0xf0] }
 0x260   :  { %v2072_v41 = vadd.f32 %v2071_v42, %v2023_v34  ;;  %v4178_v29 = vor.u32 %v4664_v38, %v4175_v10  ;;  %v2717_v55 = vrot.slane %v2716_v26, 4  ;;  %v4692_v50 = vld [vmem:[#allocation2 + $0x28c] sm:$0xf]  ;;  %v4415_v54 = vld [vmem:[#allocation2 + $0x398] sm:$0xf0] }
 0x261   :  { %2318 = vmatmul.bf16.gmra.mxu3 %v5645_v7  ;;  %v4050_v7 = vor.u32 %v4632_v14, %v4047_v45  ;;  %2404 = vmatpush.bf16.msra.mxu1 %v4194_v3  ;;  %v4724_v21 = vld [vmem:[#allocation2 + $0x38c] sm:$0xf]  ;;  %v4031_v38 = vld [vmem:[#allocation2 + $0x98] sm:$0xf0] }
 0x262   :  { %2176 = vmatmul.bf16.gmra.mxu0 %v5647_v12  ;;  %v2120_v12 = vpop.f32.mrf.mxu3  ;;  %2454 = vmatpush.bf16.msra.mxu2 %v4306_v39  ;;  %v2027_v0 = vpop.f32.mrf.mxu1  ;;  %v2718_v34 = vadd.f32 %v2717_v55, %v2716_v26  ;;  %v4290_v39 = vor.u32 %v4692_v50, %v4287_v40  ;;  %v4628_v42 = vld [vmem:[#allocation2 + $0x8c] sm:$0xf]  ;;  %v4159_v55 = vld [vmem:[#allocation2 + $0x198] sm:$0xf0] }
 0x263   :  { %2225 = vmatmul.bf16.gmra.mxu1 %v5650_v60  ;;  %2355 = vmatpush.bf16.msra.mxu0 %v4066_v57  ;;  %v6003_v28 = vadd.f32 %v2120_v12, %v2072_v41  ;;  %v1978_v52 = vpop.f32.mrf.mxu0  ;;  %v4418_v12 = vor.u32 %v4724_v21, %v4415_v54  ;;  %v4660_v10 = vld [vmem:[#allocation2 + $0x18c] sm:$0xf] }
 0x264   :  { %2503 = vmatpush.bf16.msra.mxu3 %v4434_v16  ;;  %v2028_v23 = vadd.f32 %v2027_v0, %v1978_v52 }
 0x265   :  { %7266 = vst [vmem:[#allocation37_spill] sm:$0xff] %v6003_v28  ;;  %2405 = vmatpush.bf16.msra.mxu1 %v4178_v29  ;;  %v4034_v29 = vor.u32 %v4628_v42, %v4031_v38 }
 0x266   :  { %2455 = vmatpush.bf16.msra.mxu2 %v4290_v39 }
 0x267   :  { %2356 = vmatpush.bf16.msra.mxu0 %v4050_v7  ;;  %v2074_v57 = vpop.f32.mrf.mxu2  ;;  %v2719_v7 = vrot.slane %v2718_v34, 2 }
 0x268   :  { %v2075_v3 = vadd.f32 %v2074_v57, %v2026_v22  ;;  %2504 = vmatpush.bf16.msra.mxu3 %v4418_v12  ;;  %v4162_v57 = vor.u32 %v4660_v10, %v4159_v55  ;;  %v4688_v12 = vld [vmem:[#allocation2 + $0x26c] sm:$0xf] }
 0x269   :  { %v2720_v52 = vadd.f32 %v2719_v7, %v2718_v34 }
 0x26a   :  { %2274 = vmatmul.bf16.gmra.mxu2 %v5656_v13  ;;  %v2123_v30 = vpop.f32.mrf.mxu3  ;;  %v2030_v45 = vpop.f32.mrf.mxu1  ;;  %2406 = vmatpush.bf16.msra.mxu1 %v4162_v57 }
 0x26b   :  { %v6006_v14 = vadd.f32 %v2123_v30, %v2075_v3  ;;  %v1981_v16 = vpop.f32.mrf.mxu0  ;;  %2357 = vmatpush.bf16.msra.mxu0 %v4034_v29  ;;  %v2721_v50 = vrot.slane %v2720_v52, 1 }
 0x26c   :  { %v2031_v22 = vadd.f32 %v2030_v45, %v1981_v16  ;;  %v4271_v16 = vld [vmem:[#allocation2 + $0x278] sm:$0xf0]  ;;  %v4720_v45 = vld [vmem:[#allocation2 + $0x36c] sm:$0xf] }
 0x26d   :  { %7267 = vst [vmem:[#allocation38_spill] sm:$0xff] %v6006_v14  ;;  %v2722_v42 = vadd.f32 %v2721_v50, %v2720_v52  ;;  %v4274_v34 = vor.u32 %v4688_v12, %v4271_v16  ;;  %v4015_v52 = vld [vmem:[#allocation2 + $0x78] sm:$0xf0] }
 0x26f   :  { %v2076_v26 = vpop.f32.mrf.mxu2  ;;  %2456 = vmatpush.bf16.msra.mxu2 %v4274_v34 }
 0x270   :  { %v2077_v0 = vadd.f32 %v2076_v26, %v2028_v23  ;;  %v4399_v23 = vld [vmem:[#allocation2 + $0x378] sm:$0xf0]  ;;  %v2786_v26 = vmul.f32 0.0078125, %v2722_v42 }
 0x271   :  { %2323 = vmatmul.bf16.gmra.mxu3 %v5679_v32  ;;  %v4402_v7 = vor.u32 %v4720_v45, %v4399_v23 }
 0x272   :  { %2181 = vmatmul.bf16.gmra.mxu0 %v5706_v37  ;;  %v2125_v41 = vpop.f32.mrf.mxu3  ;;  %v2032_v21 = vpop.f32.mrf.mxu1 }
 0x273   :  { %2230 = vmatmul.bf16.gmra.mxu1 %v5724_v18  ;;  %v6011_v30 = vadd.f32 %v2125_v41, %v2077_v0  ;;  %v1983_v40 = vpop.f32.mrf.mxu0  ;;  %2505 = vmatpush.bf16.msra.mxu3 %v4402_v7  ;;  %v2790_v41 = vmul.f32 %v5989_v59, %v5989_v59  ;;  %v4656_v0 = vld [vmem:[#allocation2 + $0x16c] sm:$0xf] }
 0x274   :  { %v2033_v3 = vadd.f32 %v2032_v21, %v1983_v40 }
 0x277   :  { %v2079_v39 = vpop.f32.mrf.mxu2 }
 0x278   :  { %v2080_v38 = vadd.f32 %v2079_v39, %v2031_v22  ;;  %v4624_v22 = vld [vmem:[#allocation2 + $0x6c] sm:$0xf]  ;;  %v4143_v39 = vld [vmem:[#allocation2 + $0x178] sm:$0xf0] }
 0x279   :  { %v4018_v21 = vor.u32 %v4624_v22, %v4015_v52  ;;  %v4146_v16 = vor.u32 %v4656_v0, %v4143_v39  ;;  %v4716_v22 = vld [vmem:[#allocation2 + $0x34c] sm:$0xf] }
 0x27a   :  { %2279 = vmatmul.bf16.gmra.mxu2 %v5744_v47  ;;  %v2128_v54 = vpop.f32.mrf.mxu3  ;;  %v2035_v55 = vpop.f32.mrf.mxu1  ;;  %v4620_v39 = vld [vmem:[#allocation2 + $0x4c] sm:$0xf] }
 0x27b   :  { %v6014_v10 = vadd.f32 %v2128_v54, %v2080_v38  ;;  %v1986_v29 = vpop.f32.mrf.mxu0  ;;  %v2794_v54 = vsub.f32 %v2786_v26, %v2790_v41  ;;  %2358 = vmatpush.bf16.msra.mxu0 %v4018_v21  ;;  %2407 = vmatpush.bf16.msra.mxu1 %v4146_v16  ;;  %v4383_v41 = vld [vmem:[#allocation2 + $0x358] sm:$0xf0] }
 0x27c   :  { %v2036_v57 = vadd.f32 %v2035_v55, %v1986_v29  ;;  %v4684_v55 = vld [vmem:[#allocation2 + $0x24c] sm:$0xf]  ;;  %v4386_v52 = vor.u32 %v4716_v22, %v4383_v41 }
 0x27d   :  { %7268 = vst [vmem:[#allocation22_spill] sm:$0xff] %v6014_v10  ;;  %v6023_v42 = vadd.f32 1e-05, %v2794_v54  ;;  %v3999_v54 = vld [vmem:[#allocation2 + $0x58] sm:$0xf0] }
 0x27e   :  { %2506 = vmatpush.bf16.msra.mxu3 %v4386_v52 }
 0x27f   :  { %v2081_v50 = vpop.f32.mrf.mxu2  ;;  %4783 = vrsqrt.f32 %v6023_v42  ;;  %vm2808_vm14 = vweird.f32 %v6023_v42 }
 0x280   :  { %v2082_v12 = vadd.f32 %v2081_v50, %v2033_v3 }
 0x281   :  { %2328 = vmatmul.bf16.gmra.mxu3 %v5777_v20 }
 0x282   :  { %2186 = vmatmul.bf16.gmra.mxu0 %v5779_v62  ;;  %v2130_v40 = vpop.f32.mrf.mxu3  ;;  %v2037_v34 = vpop.f32.mrf.mxu1 }
 0x283   :  { %2235 = vmatmul.bf16.gmra.mxu1 %v5781_v44  ;;  %v6021_v45 = vadd.f32 %v2130_v40, %v2082_v12  ;;  %v1988_v38 = vpop.f32.mrf.mxu0  ;;  %v4255_v44 = vld [vmem:[#allocation2 + $0x258] sm:$0xf0] }
 0x284   :  { %v2038_v23 = vadd.f32 %v2037_v34, %v1988_v38  ;;  %v4258_v26 = vor.u32 %v4684_v55, %v4255_v44  ;;  %v4002_v38 = vor.u32 %v4620_v39, %v3999_v54  ;;  %v4127_v34 = vld [vmem:[#allocation2 + $0x158] sm:$0xf0]  ;;  %v4680_v39 = vld [vmem:[#allocation2 + $0x22c] sm:$0xf] }
 0x285   :  { %7269 = vst [vmem:[#allocation24_spill] sm:$0xff] %v6021_v45  ;;  %v6031_v50 = vpop.eup %4783  ;;  %v4239_v54 = vld [vmem:[#allocation2 + $0x238] sm:$0xf0] }
 0x286   :  { %2457 = vmatpush.bf16.msra.mxu2 %v4258_v26  ;;  %v2803_v55 = vmul.f32 %v6031_v50, %v6023_v42  ;;  %2359 = vmatpush.bf16.msra.mxu0 %v4002_v38  ;;  %vm2809_vm13 = vweird.f32 %v6031_v50 }
 0x287   :  { %v2084_v7 = vpop.f32.mrf.mxu2  ;;  %vm2810_vm15 = vmor %vm2808_vm14, %vm2809_vm13 }
 0x288   :  { %v2085_v3 = vadd.f32 %v2084_v7, %v2036_v57  ;;  %v4652_v57 = vld [vmem:[#allocation2 + $0x14c] sm:$0xf] }
 0x28a   :  { %2284 = vmatmul.bf16.gmra.mxu2 %v5696_v19  ;;  %v2133_v29 = vpop.f32.mrf.mxu3  ;;  %v2040_v21 = vpop.f32.mrf.mxu1 }
 0x28b   :  { %v6027_v0 = vadd.f32 %v2133_v29, %v2085_v3  ;;  %v1991_v40 = vpop.f32.mrf.mxu0  ;;  %v4130_v29 = vor.u32 %v4652_v57, %v4127_v34  ;;  %v2804_v3 = vmul.f32 %v6031_v50, %v2803_v55  ;;  %v4367_v34 = vld [vmem:[#allocation2 + $0x338] sm:$0xf0] }
 0x28c   :  { %v2041_v44 = vadd.f32 %v2040_v21, %v1991_v40 }
 0x28d   :  { %7270 = vst [vmem:[#allocation6_spill] sm:$0xff] %v6027_v0  ;;  %2408 = vmatpush.bf16.msra.mxu1 %v4130_v29 }
 0x28f   :  { %v2086_v12 = vpop.f32.mrf.mxu2 }
 0x290   :  { %v2087_v7 = vadd.f32 %v2086_v12, %v2038_v23  ;;  %v4712_v23 = vld [vmem:[#allocation2 + $0x32c] sm:$0xf]  ;;  %v4242_v12 = vor.u32 %v4680_v39, %v4239_v54 }
 0x291   :  { %2333 = vmatmul.bf16.gmra.mxu3 %v5714_v51  ;;  %v4370_v38 = vor.u32 %v4712_v23, %v4367_v34 }
 0x292   :  { %2191 = vmatmul.bf16.gmra.mxu0 %v5815_v61  ;;  %v2135_v16 = vpop.f32.mrf.mxu3  ;;  %v2042_v41 = vpop.f32.mrf.mxu1  ;;  %2458 = vmatpush.bf16.msra.mxu2 %v4242_v12 }
 0x293   :  { %2240 = vmatmul.bf16.gmra.mxu1 %v5817_v43  ;;  %v6036_v22 = vadd.f32 %v2135_v16, %v2087_v7  ;;  %v1993_v26 = vpop.f32.mrf.mxu0  ;;  %v2805_v43 = vmul.f32 0.5, %v2804_v3  ;;  %2507 = vmatpush.bf16.msra.mxu3 %v4370_v38 }
 0x294   :  { %v2043_v52 = vadd.f32 %v2042_v41, %v1993_v26  ;;  %v4616_v26 = vld [vmem:[#allocation2 + $0x2c] sm:$0xf]  ;;  %v3983_v41 = vld [vmem:[#allocation2 + $0x38] sm:$0xf0] }
 0x295   :  { %7271 = vst [vmem:[#allocation23_spill] sm:$0xff] %v6036_v22  ;;  %v2806_v7 = vsub.f32 1.5, %v2805_v43  ;;  %v3986_v54 = vor.u32 %v4616_v26, %v3983_v41  ;;  %v6050_v43 = vld [vmem:[%s7091_s5] sm:$0xf] }
 0x297   :  { %v2089_v40 = vpop.f32.mrf.mxu2  ;;  %2360 = vmatpush.bf16.msra.mxu0 %v3986_v54  ;;  %v2807_v12 = vmul.f32 %v6031_v50, %v2806_v7  ;;  %v4708_v54 = vld [vmem:[#allocation2 + $0x30c] sm:$0xf] }
 0x298   :  { %v2090_v57 = vadd.f32 %v2089_v40, %v2041_v44  ;;  %v4648_v44 = vld [vmem:[#allocation2 + $0x12c] sm:$0xf] }
 0x299   :  { %v2811_v38 = vsel %vm2810_vm15, %v6031_v50, %v2807_v12  ;;  %v6067_v12 = vld [vmem:[%s7092_s6] sm:$0xf] }
 0x29a   :  { %2289 = vmatmul.bf16.gmra.mxu2 %v5740_v35  ;;  %v2138_v21 = vpop.f32.mrf.mxu3  ;;  %v2045_v55 = vpop.f32.mrf.mxu1  ;;  %7272 = vst [vmem:[#allocation25_spill] sm:$0xff] %v6067_v12 }
 0x29b   :  { %v6040_v16 = vadd.f32 %v2138_v21, %v2090_v57  ;;  %v1996_v29 = vpop.f32.mrf.mxu0  ;;  %v4111_v21 = vld [vmem:[#allocation2 + $0x138] sm:$0xf0] }
 0x29c   :  { %v2046_v40 = vadd.f32 %v2045_v55, %v1996_v29  ;;  %v4114_v57 = vor.u32 %v4648_v44, %v4111_v21  ;;  %v4676_v44 = vld [vmem:[#allocation2 + $0x20c] sm:$0xf] }
 0x29e   :  { %2409 = vmatpush.bf16.msra.mxu1 %v4114_v57 }
 0x29f   :  { %v2091_v39 = vpop.f32.mrf.mxu2 }
 0x2a0   :  { %v2092_v23 = vadd.f32 %v2091_v39, %v2043_v52  ;;  %v2844_v52 = vperm.slane %v6050_v43, 0  ;;  %v4223_v39 = vld [vmem:[#allocation2 + $0x218] sm:$0xf0] }
 0x2a1   :  { %2338 = vmatmul.bf16.gmra.mxu3 %v5754_v11  ;;  %v4226_v21 = vor.u32 %v4676_v44, %v4223_v39 }
 0x2a2   :  { %2196 = vmatmul.bf16.gmra.mxu0 %v5839_v2  ;;  %v2140_v3 = vpop.f32.mrf.mxu3  ;;  %v2047_v29 = vpop.f32.mrf.mxu1  ;;  %v2852_v57 = vmul.f32 %v2844_v52, %v2811_v38  ;;  %v4612_v52 = vld [vmem:[#allocation2 + $0xc] sm:$0xf]  ;;  %v3967_v38 = vld [vmem:[#allocation2 + $0x18] sm:$0xf0] }
 0x2a3   :  { %2245 = vmatmul.bf16.gmra.mxu1 %v5841_v63  ;;  %v6052_v34 = vadd.f32 %v2140_v3, %v2092_v23  ;;  %v1998_v7 = vpop.f32.mrf.mxu0  ;;  %v4351_v23 = vld [vmem:[#allocation2 + $0x318] sm:$0xf0]  ;;  %2459 = vmatpush.bf16.msra.mxu2 %v4226_v21 }
 0x2a4   :  { %v2048_v55 = vadd.f32 %v2047_v29, %v1998_v7  ;;  %v4354_v42 = vor.u32 %v4708_v54, %v4351_v23  ;;  %v6062_v50 = vperm.slane %v2852_v57, 0  ;;  %v4644_v29 = vld [vmem:[#allocation2 + $0x10c] sm:$0xf]  ;;  %v3970_v54 = vor.u32 %v4612_v52, %v3967_v38 }
 0x2a5   :  { %v6073_v57 = vperm.slane %v6067_v12, 0 }
 0x2a6   :  { %2508 = vmatpush.bf16.msra.mxu3 %v4354_v42  ;;  %v2888_v42 = vsub.f32 %v5910_v49, %v5989_v59  ;;  %2361 = vmatpush.bf16.msra.mxu0 %v3970_v54  ;;  %v2896_v49 = vsub.f32 %v5918_v24, %v5989_v59  ;;  %v2647_v24 = vmul.f32 %v6006_v14, %v6006_v14 }
 0x2a7   :  { %v2094_v26 = vpop.f32.mrf.mxu2 }
 0x2a8   :  { %v2095_v3 = vadd.f32 %v2094_v26, %v2046_v40  ;;  %v2643_v26 = vmul.f32 %v6003_v28, %v6003_v28  ;;  %v2964_v54 = vmul.f32 %v6062_v50, %v2896_v49  ;;  %v2912_v49 = vsub.f32 %v5949_v25, %v5989_v59 }
 0x2aa   :  { %2294 = vmatmul.bf16.gmra.mxu2 %v5771_v9  ;;  %v2143_v41 = vpop.f32.mrf.mxu3  ;;  %v2050_v7 = vpop.f32.mrf.mxu1  ;;  %v2980_v12 = vmul.f32 %v6062_v50, %v2912_v49 }
 0x2ab   :  { %v6058_v63 = vadd.f32 %v2143_v41, %v2095_v3  ;;  %v2001_v40 = vpop.f32.mrf.mxu0  ;;  %v4095_v3 = vld [vmem:[#allocation2 + $0x118] sm:$0xf0] }
 0x2ac   :  { %v2051_v41 = vadd.f32 %v2050_v7, %v2001_v40  ;;  %v4098_v23 = vor.u32 %v4644_v29, %v4095_v3  ;;  %v2571_v40 = vadd.f32 %v6003_v28, %v5996_v33 }
 0x2ae   :  { %2410 = vmatpush.bf16.msra.mxu1 %v4098_v23  ;;  %v2572_v29 = vadd.f32 %v2571_v40, %v6006_v14 }
 0x2af   :  { %v2096_v44 = vpop.f32.mrf.mxu2 }
 0x2b0   :  { %v2097_v21 = vadd.f32 %v2096_v44, %v2048_v55  ;;  %v2956_v55 = vmul.f32 %v6062_v50, %v2888_v42  ;;  %v2900_v44 = vsub.f32 %v5921_v56, %v5989_v59 }
 0x2b1   :  { %2343 = vmatmul.bf16.gmra.mxu3 %v5783_v4 }
 0x2b2   :  { %2201 = vmatmul.bf16.gmra.mxu0 %v5863_v15  ;;  %v2145_v39 = vpop.f32.mrf.mxu3  ;;  %v2892_v15 = vsub.f32 %v5913_v31, %v5989_v59  ;;  %v3030_v31 = vadd.f32 %v6073_v57, %v2956_v55  ;;  %v2968_v56 = vmul.f32 %v6062_v50, %v2900_v44 }
 0x2b3   :  { %2250 = vmatmul.bf16.gmra.mxu1 %v5865_v36  ;;  %v2639_v36 = vmul.f32 %v5996_v33, %v5996_v33  ;;  %v6083_v7 = vadd.f32 %v2145_v39, %v2097_v21  ;;  %v2904_v39 = vsub.f32 %v5929_v53, %v5989_v59  ;;  %v2003_v3 = vpop.f32.mrf.mxu0  ;;  %v2052_v21 = vpop.f32.mrf.mxu1  ;;  %v2908_v53 = vsub.f32 %v5936_v6, %v5989_v59 }
 0x2b4   :  { %v2960_v38 = vmul.f32 %v6062_v50, %v2892_v15  ;;  %v3094_v23 = vmax.f32 %v3030_v31, 0.0  ;;  %v3042_v31 = vadd.f32 %v6073_v57, %v2968_v56  ;;  %v2655_v56 = vmul.f32 %v6014_v10, %v6014_v10 }
 0x2b5   :  { %v2723_v52 = vadd.f32 %v2643_v26, %v2639_v36  ;;  %v7273_v36 = vsub.f32 %v5966_v27, %v5989_v59  ;;  %v2972_v42 = vmul.f32 %v6062_v50, %v2904_v39  ;;  %v2651_v27 = vmul.f32 %v6011_v30, %v6011_v30 }
 0x2b6   :  { %v3034_v26 = vadd.f32 %v6073_v57, %v2960_v38  ;;  %v3038_v38 = vadd.f32 %v6073_v57, %v2964_v54  ;;  %v2976_v44 = vmul.f32 %v6062_v50, %v2908_v53  ;;  %v3106_v54 = vmax.f32 %v3042_v31, 0.0 }
 0x2b7   :  { %v2984_v15 = vmul.f32 %v6062_v50, %v7273_v36  ;;  %v2099_v40 = vpop.f32.mrf.mxu2  ;;  %v3046_v6 = vadd.f32 %v6073_v57, %v2972_v42  ;;  %v3054_v53 = vadd.f32 %v6073_v57, %v2980_v12 }
 0x2b8   :  { %v3098_v36 = vmax.f32 %v3034_v26, 0.0  ;;  %v2100_v14 = vadd.f32 %v2099_v40, %v2051_v41  ;;  %v3102_v39 = vmax.f32 %v3038_v38, 0.0  ;;  %v3050_v33 = vadd.f32 %v6073_v57, %v2976_v44 }
 0x2b9   :  { %v3058_v28 = vadd.f32 %v6073_v57, %v2984_v15  ;;  %v3110_v25 = vmax.f32 %v3046_v6, 0.0  ;;  %v2724_v41 = vadd.f32 %v2723_v52, %v2647_v24  ;;  %v3118_v52 = vmax.f32 %v3054_v53, 0.0 }
 0x2ba   :  { %2299 = vmatmul.bf16.gmra.mxu2 %v5806_v5  ;;  %v2148_v55 = vpop.f32.mrf.mxu3  ;;  %v6116_v5 = vpack.c.bf16 %v3098_v36, %v3094_v23  ;;  %v2573_v23 = vadd.f32 %v2572_v29, %v6011_v30  ;;  %v6129_v15 = vpack.c.bf16 %v3106_v54, %v3102_v39  ;;  %v2667_v44 = vmul.f32 %v6036_v22, %v6036_v22 }
 0x2bb   :  { %v6120_v26 = vadd.f32 %v2148_v55, %v2100_v14  ;;  %v3122_v42 = vmax.f32 %v3058_v28, 0.0  ;;  %v3114_v14 = vmax.f32 %v3050_v33, 0.0  ;;  %v2725_v40 = vadd.f32 %v2724_v41, %v2651_v27  ;;  %v2006_v36 = vpop.f32.mrf.mxu0  ;;  %v2055_v38 = vpop.f32.mrf.mxu1 }
 0x2bc   :  { %7274 = vst [vmem:[#allocation27_spill] sm:$0xff] %v6116_v5  ;;  %v2659_v55 = vmul.f32 %v6021_v45, %v6021_v45  ;;  %v2574_v24 = vadd.f32 %v2573_v23, %v6014_v10 }
 0x2bd   :  { %7275 = vst [vmem:[#allocation31_spill] sm:$0xff] %v6129_v15  ;;  %v6135_v28 = vpack.c.bf16 %v3114_v14, %v3110_v25  ;;  %v2726_v12 = vadd.f32 %v2725_v40, %v2655_v56  ;;  %v6139_v33 = vpack.c.bf16 %v3122_v42, %v3118_v52  ;;  %v2053_v25 = vadd.f32 %v2052_v21, %v2003_v3 }
 0x2be   :  { %v2575_v27 = vadd.f32 %v2574_v24, %v6021_v45  ;;  %v2675_v56 = vmul.f32 %v6052_v34, %v6052_v34  ;;  %v2056_v42 = vadd.f32 %v2055_v38, %v2006_v36  ;;  %v2679_v52 = vmul.f32 %v6058_v63, %v6058_v63 }
 0x2bf   :  { %7276 = vst [vmem:[#allocation28_spill] sm:$0xff] %v6135_v28  ;;  %v2101_v29 = vpop.f32.mrf.mxu2  ;;  %v2727_v31 = vadd.f32 %v2726_v12, %v2659_v55 }
 0x2c0   :  { %7277 = vst [vmem:[#allocation32_spill] sm:$0xff] %v6139_v33  ;;  %v2576_v6 = vadd.f32 %v2575_v27, %v6027_v0  ;;  %v2102_v23 = vadd.f32 %v2101_v29, %v2053_v25  ;;  %v2683_v27 = vmul.f32 %v6083_v7, %v6083_v7  ;;  %v2687_v29 = vmul.f32 %v6120_v26, %v6120_v26  ;;  %v7292_v33 = vld [vmem:[#allocation25_spill] sm:$0xff] }
 0x2c1   :  { %2348 = vmatmul.bf16.gmra.mxu3 %v5808_v48  ;;  %v6319_v28 = vperm.slane %v7292_v33, 1  ;;  %v4749_v33 = vld [vmem:[%s7093_s7 + $0x50] sm:$0xff] }
 0x2c2   :  { %2362 = vmatmul.bf16.vlgmr.msra.gmra.mxu0 %v7255_v46  ;;  %v2663_v46 = vmul.f32 %v6027_v0, %v6027_v0  ;;  %v2150_v49 = vpop.f32.mrf.mxu3  ;;  %v2577_v54 = vadd.f32 %v2576_v6, %v6036_v22  ;;  %v7294_v0 = vld [vmem:[#allocation12_spill] sm:$0xff] }
 0x2c3   :  { %2411 = vmatmul.bf16.vlgmr.msra.gmra.mxu1 %v7256_v1  ;;  %v2671_v1 = vmul.f32 %v6040_v16, %v6040_v16  ;;  %v2008_v14 = vpop.f32.mrf.mxu0  ;;  %v2057_v40 = vpop.f32.mrf.mxu1 }
 0x2c4   :  { %v2728_v39 = vadd.f32 %v2727_v31, %v2663_v46  ;;  %v2578_v53 = vadd.f32 %v2577_v54, %v6040_v16  ;;  %v6158_v31 = vadd.f32 %v2150_v49, %v2102_v23  ;;  %v2058_v49 = vadd.f32 %v2057_v40, %v2008_v14 }
 0x2c6   :  { %v2729_v41 = vadd.f32 %v2728_v39, %v2667_v44  ;;  %v2579_v3 = vadd.f32 %v2578_v53, %v6052_v34 }
 0x2c7   :  { %v2104_v24 = vpop.f32.mrf.mxu2 }
 0x2c8   :  { %v2730_v55 = vadd.f32 %v2729_v41, %v2671_v1  ;;  %v2105_v21 = vadd.f32 %v2104_v24, %v2056_v42  ;;  %v2580_v46 = vadd.f32 %v2579_v3, %v6058_v63  ;;  %v2691_v1 = vmul.f32 %v6158_v31, %v6158_v31  ;;  %v7278_v41 = vld [vmem:[#allocation9_spill] sm:$0xff] }
 0x2ca   :  { %2460 = vmatmul.bf16.vlgmr.msra.gmra.mxu2 %v5568_v8  ;;  %v2153_v12 = vpop.f32.mrf.mxu3  ;;  %v2731_v8 = vadd.f32 %v2730_v55, %v2675_v56  ;;  %v2581_v38 = vadd.f32 %v2580_v46, %v6083_v7 }
 0x2cb   :  { %v6163_v44 = vadd.f32 %v2153_v12, %v2105_v21  ;;  %v2167_v54 = vpop.f32.mrf.mxu0  ;;  %v2216_v25 = vpop.f32.mrf.mxu1  ;;  %v7279_v21 = vld [vmem:[#allocation11_spill] sm:$0xff] }
 0x2cc   :  { %v2732_v36 = vadd.f32 %v2731_v8, %v2679_v52  ;;  %v2582_v39 = vadd.f32 %v2581_v38, %v6120_v26  ;;  %v2217_v56 = vadd.f32 %v2216_v25, %v2167_v54 }
 0x2ce   :  { %v2733_v6 = vadd.f32 %v2732_v36, %v2683_v27  ;;  %v2583_v23 = vadd.f32 %v2582_v39, %v6158_v31 }
 0x2cf   :  { %v2106_v53 = vpop.f32.mrf.mxu2 }
 0x2d0   :  { %v2734_v42 = vadd.f32 %v2733_v6, %v2687_v29  ;;  %v2584_v24 = vadd.f32 %v2583_v23, %v6163_v44 }
 0x2d1   :  { %2509 = vmatmul.bf16.vlgmr.msra.gmra.mxu3 %v5594_v17  ;;  %v2695_v17 = vmul.f32 %v6163_v44, %v6163_v44 }
 0x2d2   :  { %2367 = vmatmul.bf16.gmra.mxu0 %v5596_v58  ;;  %v2107_v58 = vadd.f32 %v2106_v53, %v2058_v49  ;;  %v2155_v55 = vpop.f32.mrf.mxu3  ;;  %v2735_v52 = vadd.f32 %v2734_v42, %v2691_v1  ;;  %v7280_v1 = vld [vmem:[#allocation7_spill] sm:$0xff]  ;;  %v7281_v49 = vld [vmem:[#allocation10_spill] sm:$0xff] }
 0x2d3   :  { %2416 = vmatmul.bf16.gmra.mxu1 %v7278_v41  ;;  %v2169_v42 = vpop.f32.mrf.mxu0  ;;  %v2218_v23 = vpop.f32.mrf.mxu1 }
 0x2d4   :  { %v6175_v12 = vadd.f32 %v2155_v55, %v2107_v58  ;;  %v2736_v14 = vadd.f32 %v2735_v52, %v2695_v17  ;;  %v2219_v17 = vadd.f32 %v2218_v23, %v2169_v42 }
 0x2d6   :  { %v2585_v40 = vadd.f32 %v2584_v24, %v6175_v12  ;;  %v2699_v3 = vmul.f32 %v6175_v12, %v6175_v12 }
 0x2d7   :  { %v2265_v58 = vpop.f32.mrf.mxu2 }
 0x2d8   :  { %v2586_v8 = vrot.slane %v2585_v40, 4  ;;  %v2737_v46 = vadd.f32 %v2736_v14, %v2699_v3  ;;  %v2266_v14 = vadd.f32 %v2265_v58, %v2217_v56 }
 0x2da   :  { %2465 = vmatmul.bf16.gmra.mxu2 %v7279_v21  ;;  %v2587_v27 = vadd.f32 %v2586_v8, %v2585_v40  ;;  %v2738_v36 = vrot.slane %v2737_v46, 4  ;;  %v2314_v55 = vpop.f32.mrf.mxu3 }
 0x2db   :  { %v6190_v8 = vadd.f32 %v2314_v55, %v2266_v14 }
 0x2dc   :  { %v2588_v38 = vrot.slane %v2587_v27, 2  ;;  %v2739_v29 = vadd.f32 %v2738_v36, %v2737_v46  ;;  %v2221_v36 = vpop.f32.mrf.mxu1 }
 0x2de   :  { %v2589_v6 = vadd.f32 %v2588_v38, %v2587_v27  ;;  %v2740_v39 = vrot.slane %v2739_v29, 2  ;;  %v2172_v27 = vpop.f32.mrf.mxu0 }
 0x2df   :  { %v2222_v38 = vadd.f32 %v2221_v36, %v2172_v27 }
 0x2e0   :  { %v2590_v54 = vrot.slane %v2589_v6, 1  ;;  %v2741_v25 = vadd.f32 %v2740_v39, %v2739_v29  ;;  %v2267_v29 = vpop.f32.mrf.mxu2 }
 0x2e1   :  { %2514 = vmatmul.bf16.gmra.mxu3 %v7280_v1  ;;  %v2268_v56 = vadd.f32 %v2267_v29, %v2219_v17 }
 0x2e2   :  { %2372 = vmatmul.bf16.gmra.mxu0 %v7281_v49  ;;  %v2591_v41 = vadd.f32 %v2590_v54, %v2589_v6  ;;  %v2742_v53 = vrot.slane %v2741_v25, 1  ;;  %v2316_v6 = vpop.f32.mrf.mxu3 }
 0x2e3   :  { %2421 = vmatmul.bf16.gmra.mxu1 %v5650_v60  ;;  %v6193_v39 = vadd.f32 %v2316_v6, %v2268_v56 }
 0x2e4   :  { %v6184_v52 = vmul.f32 0.0078125, %v2591_v41  ;;  %v2743_v24 = vadd.f32 %v2742_v53, %v2741_v25 }
 0x2e6   :  { %v2787_v40 = vmul.f32 0.0078125, %v2743_v24  ;;  %v2791_v3 = vmul.f32 %v6184_v52, %v6184_v52  ;;  %v2917_v21 = vsub.f32 %v6175_v12, %v6184_v52  ;;  %v2174_v1 = vpop.f32.mrf.mxu0  ;;  %v2889_v15 = vsub.f32 %v6040_v16, %v6184_v52  ;;  %v7293_v16 = vld [vmem:[#allocation20_spill] sm:$0xff] }
 0x2e7   :  { %v2864_v5 = vsub.f32 %v7293_v16, %v5989_v59  ;;  %v2905_v16 = vsub.f32 %v6120_v26, %v6184_v52 }
 0x2e8   :  { %v2795_v60 = vsub.f32 %v2787_v40, %v2791_v3  ;;  %v2270_v25 = vpop.f32.mrf.mxu2 }
 0x2e9   :  { %v2271_v53 = vadd.f32 %v2270_v25, %v2222_v38 }
 0x2ea   :  { %2470 = vmatmul.bf16.gmra.mxu2 %v5656_v13  ;;  %v2799_v46 = vadd.f32 1e-05, %v2795_v60  ;;  %v2223_v13 = vpop.f32.mrf.mxu1  ;;  %v2319_v41 = vpop.f32.mrf.mxu3 }
 0x2eb   :  { %v2224_v54 = vadd.f32 %v2223_v13, %v2174_v1  ;;  %v6198_v23 = vadd.f32 %v2319_v41, %v2271_v53 }
 0x2ec   :  { %4785 = vrsqrt.f32 %v2799_v46  ;;  %vm2818_vm1 = vweird.f32 %v2799_v46 }
 0x2f0   :  { %v2272_v14 = vpop.f32.mrf.mxu2 }
 0x2f1   :  { %2519 = vmatmul.bf16.gmra.mxu3 %v5679_v32  ;;  %v2845_v32 = vperm.slane %v6050_v43, 1  ;;  %v2273_v3 = vadd.f32 %v2272_v14, %v2224_v54  ;;  %v7282_v43 = vld [vmem:[#allocation13_spill] sm:$0xff] }
 0x2f2   :  { %2377 = vmatmul.bf16.gmra.mxu0 %v5706_v37  ;;  %v4786_v12 = vpop.eup %4785  ;;  %v2177_v37 = vpop.f32.mrf.mxu0 }
 0x2f3   :  { %2426 = vmatmul.bf16.gmra.mxu1 %v5724_v18  ;;  %v2813_v49 = vmul.f32 %v4786_v12, %v2799_v46  ;;  %vm2819_vm0 = vweird.f32 %v4786_v12  ;;  %v2226_v18 = vpop.f32.mrf.mxu1  ;;  %v2321_v40 = vpop.f32.mrf.mxu3 }
 0x2f4   :  { %v2227_v24 = vadd.f32 %v2226_v18, %v2177_v37  ;;  %vm2820_vm2 = vmor %vm2818_vm1, %vm2819_vm0  ;;  %v6202_v36 = vadd.f32 %v2321_v40, %v2273_v3  ;;  %v4754_v37 = vld [vmem:[%s7093_s7 + $0x78] sm:$0xff]  ;;  %v4744_v40 = vld [vmem:[%s7093_s7 + $0x28] sm:$0xff] }
 0x2f5   :  { %v2814_v42 = vmul.f32 %v4786_v12, %v2813_v49  ;;  %3467 = vmatpush.bf16.msrb.mxu1 %v4754_v37  ;;  %v4752_v3 = vld [vmem:[%s7093_s7 + $0x68] sm:$0xff] }
 0x2f7   :  { %v2815_v17 = vmul.f32 0.5, %v2814_v42 }
 0x2f8   :  { %v2275_v6 = vpop.f32.mrf.mxu2 }
 0x2f9   :  { %v2816_v58 = vsub.f32 1.5, %v2815_v17 }
 0x2fa   :  { %2475 = vmatmul.bf16.gmra.mxu2 %v5744_v47  ;;  %v6212_v46 = vpop.f32.mrf.mxu0 }
 0x2fb   :  { %v2817_v55 = vmul.f32 %v4786_v12, %v2816_v58  ;;  %v6214_v29 = vpop.f32.mrf.mxu1  ;;  %v2324_v56 = vpop.f32.mrf.mxu3 }
 0x2fd   :  { %v2821_v60 = vsel %vm2820_vm2, %v4786_v12, %v2817_v55  ;;  %v2276_v12 = vadd.f32 %v2275_v6, %v2227_v24  ;;  %v7285_v6 = vld [vmem:[#allocation16_spill] sm:$0xff] }
 0x2fe   :  { %v2853_v27 = vmul.f32 %v2845_v32, %v2821_v60 }
 0x2ff   :  { %v6216_v1 = vadd.f32 %v2324_v56, %v2276_v12  ;;  %v7286_v56 = vld [vmem:[#allocation18_spill] sm:$0xff] }
 0x300   :  { %v6206_v47 = vperm.slane %v2853_v27, 0  ;;  %v6223_v13 = vpop.f32.mrf.mxu2  ;;  %v2856_v12 = vsub.f32 %v7286_v56, %v5989_v59 }
 0x301   :  { %2524 = vmatmul.bf16.gmra.mxu3 %v5777_v20 }
 0x302   :  { %2382 = vmatmul.bf16.gmra.mxu0 %v5779_v62  ;;  %v6210_v38 = vmul.f32 %v6206_v47, %v2917_v21  ;;  %v6219_v20 = vpop.f32.mrf.mxu0  ;;  %v7283_v21 = vld [vmem:[#allocation14_spill] sm:$0xff] }
 0x303   :  { %2431 = vmatmul.bf16.gmra.mxu1 %v7282_v43  ;;  %v6221_v62 = vpop.f32.mrf.mxu1  ;;  %v6225_v49 = vpop.f32.mrf.mxu3  ;;  %v4751_v43 = vld [vmem:[%s7093_s7 + $0x60] sm:$0xff] }
 0x308   :  { %v6234_v41 = vpop.f32.mrf.mxu2 }
 0x30a   :  { %2480 = vmatmul.bf16.gmra.mxu2 %v5696_v19  ;;  %v6230_v54 = vpop.f32.mrf.mxu0 }
 0x30b   :  { %v6232_v25 = vpop.f32.mrf.mxu1  ;;  %v6236_v19 = vpop.f32.mrf.mxu3 }
 0x310   :  { %v6243_v17 = vpop.f32.mrf.mxu2 }
 0x311   :  { %2529 = vmatmul.bf16.gmra.mxu3 %v5714_v51 }
 0x312   :  { %2387 = vmatmul.bf16.gmra.mxu0 %v5815_v61  ;;  %v6239_v53 = vpop.f32.mrf.mxu0  ;;  %v7284_v61 = vld [vmem:[#allocation15_spill] sm:$0xff] }
 0x313   :  { %2436 = vmatmul.bf16.gmra.mxu1 %v7283_v21  ;;  %v6241_v42 = vpop.f32.mrf.mxu1  ;;  %v6245_v51 = vpop.f32.mrf.mxu3  ;;  %v7287_v21 = vld [vmem:[#allocation26_spill] sm:$0xff] }
 0x318   :  { %v6260_v18 = vpop.f32.mrf.mxu2 }
 0x31a   :  { %2485 = vmatmul.bf16.gmra.mxu2 %v5740_v35  ;;  %v6250_v58 = vpop.f32.mrf.mxu0  ;;  %v4746_v35 = vld [vmem:[%s7093_s7 + $0x38] sm:$0xff] }
 0x31b   :  { %v6252_v32 = vpop.f32.mrf.mxu1  ;;  %v6262_v55 = vpop.f32.mrf.mxu3  ;;  %3418 = vmatpush.bf16.msrb.mxu0 %v4746_v35  ;;  %v7288_v35 = vld [vmem:[#allocation17_spill] sm:$0xff] }
 0x320   :  { %v6281_v60 = vpop.f32.mrf.mxu2 }
 0x321   :  { %2534 = vmatmul.bf16.gmra.mxu3 %v5754_v11  ;;  %v4745_v11 = vld [vmem:[%s7093_s7 + $0x30] sm:$0xff] }
 0x322   :  { %2392 = vmatmul.bf16.gmra.mxu0 %v5839_v2  ;;  %v4753_v2 = vld [vmem:[%s7093_s7 + $0x70] sm:$0xff]  ;;  %v6271_v24 = vpop.f32.mrf.mxu0 }
 0x323   :  { %2441 = vmatmul.bf16.gmra.mxu1 %v7284_v61  ;;  %3419 = vmatpush.bf16.msrb.mxu0 %v4745_v11  ;;  %v6273_v14 = vpop.f32.mrf.mxu1  ;;  %v6283_v27 = vpop.f32.mrf.mxu3  ;;  %v2860_v61 = vsub.f32 %v7287_v21, %v5989_v59 }
 0x324   :  { %3468 = vmatpush.bf16.msrb.mxu1 %v4753_v2  ;;  %v4750_v2 = vld [vmem:[%s7093_s7 + $0x58] sm:$0xff] }
 0x327   :  { %3420 = vmatpush.bf16.msrb.mxu0 %v4744_v40  ;;  %v2924_v40 = vmul.f32 %v6062_v50, %v2856_v12  ;;  %v2893_v12 = vsub.f32 %v6052_v34, %v6184_v52  ;;  %v2901_v34 = vsub.f32 %v6083_v7, %v6184_v52 }
 0x328   :  { %3469 = vmatpush.bf16.msrb.mxu1 %v4752_v3  ;;  %v2928_v3 = vmul.f32 %v6062_v50, %v2860_v61  ;;  %v6314_v21 = vpop.f32.mrf.mxu2  ;;  %v2897_v61 = vsub.f32 %v6058_v63, %v6184_v52 }
 0x329   :  { %v2998_v45 = vadd.f32 %v6073_v57, %v2924_v40  ;;  %v2969_v10 = vmul.f32 %v6206_v47, %v2901_v34 }
 0x32a   :  { %2490 = vmatmul.bf16.gmra.mxu2 %v5771_v9  ;;  %v4743_v9 = vld [vmem:[%s7093_s7 + $0x20] sm:$0xff]  ;;  %v6298_v37 = vpop.f32.mrf.mxu0  ;;  %v2965_v22 = vmul.f32 %v6206_v47, %v2897_v61 }
 0x32b   :  { %3421 = vmatpush.bf16.msrb.mxu0 %v4743_v9  ;;  %v6300_v11 = vpop.f32.mrf.mxu1  ;;  %v7289_v9 = vld [vmem:[#allocation34_spill] sm:$0xff]  ;;  %v3043_v40 = vadd.f32 %v6319_v28, %v2969_v10 }
 0x32c   :  { %3470 = vmatpush.bf16.msrb.mxu1 %v4751_v43  ;;  %v2857_v43 = vsub.f32 %v7289_v9, %v6184_v52  ;;  %v4741_v9 = vld [vmem:[%s7093_s7 + $0x10] sm:$0xff]  ;;  %v4748_v10 = vld [vmem:[%s7093_s7 + $0x48] sm:$0xff] }
 0x330   :  { %3471 = vmatpush.bf16.msrb.mxu1 %v4750_v2  ;;  %v2961_v2 = vmul.f32 %v6206_v47, %v2893_v12  ;;  %v2909_v12 = vsub.f32 %v6158_v31, %v6184_v52  ;;  %v4740_v31 = vld [vmem:[%s7093_s7 + $0x8] sm:$0xff] }
 0x331   :  { %2539 = vmatmul.bf16.gmra.mxu3 %v5783_v4  ;;  %v4742_v4 = vld [vmem:[%s7093_s7 + $0x18] sm:$0xff] }
 0x332   :  { %2397 = vmatmul.bf16.gmra.mxu0 %v7285_v6  ;;  %v7290_v6 = vld [vmem:[#allocation37_spill] sm:$0xff] }
 0x333   :  { %2446 = vmatmul.bf16.gmra.mxu1 %v7288_v35  ;;  %v2861_v56 = vsub.f32 %v7290_v6, %v6184_v52  ;;  %v6316_v35 = vpop.f32.mrf.mxu3  ;;  %3422 = vmatpush.bf16.msrb.mxu0 %v4742_v4  ;;  %v2925_v6 = vmul.f32 %v6206_v47, %v2857_v43  ;;  %v2957_v4 = vmul.f32 %v6206_v47, %v2889_v15 }
 0x334   :  { %7291 = vst [vmem:[#allocation39_spill] sm:$0xff] %v6316_v35  ;;  %v3002_v43 = vadd.f32 %v6073_v57, %v2928_v3  ;;  %v3039_v15 = vadd.f32 %v6319_v28, %v2965_v22  ;;  %3472 = vmatpush.bf16.msrb.mxu1 %v4749_v33  ;;  %v2913_v3 = vsub.f32 %v6163_v44, %v6184_v52  ;;  %v6360_v22 = vpop.f32.mrf.mxu1  ;;  %v3107_v33 = vmax.f32 %v3043_v40, 0.0 }
 0x335   :  { %v2929_v63 = vmul.f32 %v6206_v47, %v2861_v56  ;;  %v3031_v7 = vadd.f32 %v6319_v28, %v2957_v4  ;;  %v3035_v56 = vadd.f32 %v6319_v28, %v2961_v2  ;;  %v6358_v2 = vpop.f32.mrf.mxu0  ;;  %7296 = vst [vmem:[#allocation40_spill] sm:$0xff] %v6360_v22 }
 0x336   :  { %v3103_v4 = vmax.f32 %v3039_v15, 0.0  ;;  %7295 = vst [vmem:[#allocation35_spill] sm:$0xff] %v6358_v2  ;;  %v3062_v15 = vmax.f32 %v2998_v45, 0.0  ;;  %v2981_v22 = vmul.f32 %v6206_v47, %v2913_v3  ;;  %v3059_v2 = vadd.f32 %v6319_v28, %v6210_v38 }
 0x337   :  { %3423 = vmatpush.bf16.msrb.mxu0 %v4741_v9  ;;  %v3003_v26 = vadd.f32 %v6319_v28, %v2929_v63  ;;  %v3095_v61 = vmax.f32 %v3031_v7, 0.0  ;;  %v3099_v34 = vmax.f32 %v3035_v56, 0.0  ;;  %v7297_v9 = vld [vmem:[#allocation19_spill] sm:$0xff]  ;;  %v2977_v63 = vmul.f32 %v6206_v47, %v2909_v12  ;;  %v6372_v7 = vpop.f32.mrf.mxu2  ;;  %v4747_v12 = vld [vmem:[%s7093_s7 + $0x40] sm:$0xff] }
 0x338   :  { %v2868_v44 = vsub.f32 %v7297_v9, %v5989_v59  ;;  %3473 = vmatpush.bf16.msrb.mxu1 %v4748_v10  ;;  %v3066_v40 = vmax.f32 %v3002_v43, 0.0  ;;  %v6387_v45 = vpack.c.bf16 %v3107_v33, %v3103_v4  ;;  %v3055_v38 = vadd.f32 %v6319_v28, %v2981_v22 }
 0x339   :  { %v6376_v35 = vpack.c.bf16 %v3099_v34, %v3095_v61  ;;  %v3067_v3 = vmax.f32 %v3003_v26, 0.0  ;;  %v3051_v34 = vadd.f32 %v6319_v28, %v2977_v63  ;;  %v2229_v10 = vadd.f32 %v6214_v29, %v6212_v46 }
 0x33a   :  { %2495 = vmatmul.bf16.gmra.mxu2 %v7294_v0  ;;  %v2999_v0 = vadd.f32 %v6319_v28, %v2925_v6  ;;  %v2973_v6 = vmul.f32 %v6206_v47, %v2905_v16  ;;  %v4739_v16 = vld [vmem:[%s7093_s7] sm:$0xff]  ;;  %v2936_v43 = vmul.f32 %v6062_v50, %v2868_v44  ;;  %v3119_v4 = vmax.f32 %v3055_v38, 0.0 }
 0x33b   :  { %v6374_v56 = vpop.f32.mrf.mxu3  ;;  %7299 = vst [vmem:[#allocation5_spill] sm:$0xff] %v6376_v35  ;;  %3424 = vmatpush.bf16.msrb.mxu0 %v4740_v31  ;;  %v3123_v31 = vmax.f32 %v3059_v2, 0.0  ;;  %v2644_v26 = vmul.f32 %v6193_v39, %v6193_v39  ;;  %v2278_v33 = vadd.f32 %v6223_v13, %v2229_v10  ;;  %v3126_v2 = vpack.c.bf16 %v3066_v40, %v3062_v15  ;;  %v7300_v15 = vld [vmem:[#allocation38_spill] sm:$0xff] }
 0x33c   :  { %7298 = vst [vmem:[#allocation36_spill] sm:$0xff] %v6374_v56  ;;  %v3063_v9 = vmax.f32 %v2999_v0, 0.0  ;;  %v3047_v61 = vadd.f32 %v6319_v28, %v2973_v6  ;;  %v2932_v56 = vmul.f32 %v6062_v50, %v2864_v5  ;;  %v3115_v0 = vmax.f32 %v3051_v34, 0.0  ;;  %3474 = vmatpush.bf16.msrb.mxu1 %v4747_v12  ;;  %v2248_v63 = vpop.f32.mrf.mxu1 }
 0x33d   :  { %v2232_v46 = vadd.f32 %v6221_v62, %v6219_v20  ;;  %v6404_v22 = vpack.c.bf16 %v3123_v31, %v3119_v4  ;;  %v2640_v5 = vmul.f32 %v6190_v8, %v6190_v8  ;;  %v2592_v44 = vadd.f32 %v6193_v39, %v6190_v8  ;;  %v2199_v6 = vpop.f32.mrf.mxu0 }
 0x33e   :  { %v3111_v35 = vmax.f32 %v3047_v61, 0.0  ;;  %v3127_v29 = vpack.c.bf16 %v3067_v3, %v3063_v9  ;;  %v2648_v13 = vmul.f32 %v6198_v23, %v6198_v23  ;;  %v2234_v20 = vadd.f32 %v6232_v25, %v6230_v54 }
 0x33f   :  { %3425 = vmatpush.bf16.msrb.mxu0 %v4739_v16  ;;  %v2865_v16 = vsub.f32 %v7300_v15, %v6184_v52  ;;  %v2281_v62 = vadd.f32 %v6234_v41, %v2232_v46  ;;  %v2869_v40 = vsub.f32 %v6011_v30, %v6184_v52  ;;  %v2744_v9 = vadd.f32 %v2644_v26, %v2640_v5 }
 0x340   :  { %v2593_v61 = vadd.f32 %v2592_v44, %v6198_v23  ;;  %v2652_v3 = vmul.f32 %v6202_v36, %v6202_v36  ;;  %v6425_v34 = vadd.f32 %v6225_v49, %v2278_v33  ;;  %v2237_v54 = vadd.f32 %v6241_v42, %v6239_v53 }
 0x341   :  { %2544 = vmatmul.bf16.gmra.mxu3 %v5808_v48  ;;  %v6402_v48 = vpack.c.bf16 %v3115_v0, %v3111_v35  ;;  %v2295_v35 = vpop.f32.mrf.mxu2  ;;  %v2283_v25 = vadd.f32 %v6243_v17, %v2234_v20  ;;  %v2933_v41 = vmul.f32 %v6206_v47, %v2865_v16  ;;  %v2937_v38 = vmul.f32 %v6206_v47, %v2869_v40 }
 0x342   :  { %3426 = vmatmul.bf16.vlgmr.msrb.gmra.mxu0 %v3126_v2  ;;  %v2745_v31 = vadd.f32 %v2744_v9, %v2648_v13  ;;  %v2656_v30 = vmul.f32 %v6216_v1, %v6216_v1  ;;  %v2594_v10 = vadd.f32 %v2593_v61, %v6202_v36  ;;  %v6436_v0 = vadd.f32 %v6236_v19, %v2281_v62  ;;  %v7301_v61 = vld [vmem:[#allocation35_spill] sm:$0xff] }
 0x343   :  { %v6417_v12 = vpop.f32.mrf.mxu3  ;;  %3475 = vmatmul.bf16.vlgmr.msrb.gmra.mxu1 %v3127_v29  ;;  %v2286_v49 = vadd.f32 %v6260_v18, %v2237_v54  ;;  %v3006_v4 = vadd.f32 %v6073_v57, %v2932_v56  ;;  %v2660_v42 = vmul.f32 %v6425_v34, %v6425_v34  ;;  %v2239_v17 = vadd.f32 %v6252_v32, %v6250_v58 }
 0x344   :  { %v2746_v53 = vadd.f32 %v2745_v31, %v2652_v3  ;;  %v3010_v26 = vadd.f32 %v6073_v57, %v2936_v43  ;;  %v2595_v33 = vadd.f32 %v2594_v10, %v6216_v1  ;;  %v6447_v2 = vadd.f32 %v6245_v51, %v2283_v25  ;;  %v2251_v44 = vpop.f32.mrf.mxu1  ;;  %v7302_v3 = vld [vmem:[#allocation40_spill] sm:$0xff]  ;;  %v7304_v31 = vld [vmem:[#allocation39_spill] sm:$0xff] }
 0x345   :  { %v3007_v19 = vadd.f32 %v6319_v28, %v2933_v41  ;;  %v3011_v18 = vadd.f32 %v6319_v28, %v2937_v38  ;;  %v2242_v56 = vadd.f32 %v6273_v14, %v6271_v24  ;;  %v2288_v29 = vadd.f32 %v6281_v60, %v2239_v17  ;;  %v2202_v5 = vpop.f32.mrf.mxu0 }
 0x346   :  { %v2747_v46 = vadd.f32 %v2746_v53, %v2656_v30  ;;  %v2596_v58 = vadd.f32 %v2595_v33, %v6425_v34  ;;  %v2664_v32 = vmul.f32 %v6436_v0, %v6436_v0  ;;  %v6458_v51 = vadd.f32 %v6262_v55, %v2286_v49  ;;  %v7305_v49 = vld [vmem:[#allocation29_spill] sm:$0xff]  ;;  %v7306_v33 = vld [vmem:[#allocation36_spill] sm:$0xff] }
 0x347   :  { %v3070_v15 = vmax.f32 %v3006_v4, 0.0  ;;  %v2244_v20 = vadd.f32 %v6300_v11, %v6298_v37  ;;  %v2291_v24 = vadd.f32 %v6314_v21, %v2242_v56  ;;  %v3074_v14 = vmax.f32 %v3010_v26, 0.0  ;;  %v7303_v21 = vld [vmem:[#allocation21_spill] sm:$0xff] }
 0x348   :  { %v2748_v16 = vadd.f32 %v2747_v46, %v2660_v42  ;;  %v2597_v60 = vadd.f32 %v2596_v58, %v6436_v0  ;;  %v2668_v62 = vmul.f32 %v6447_v2, %v6447_v2  ;;  %v3071_v40 = vmax.f32 %v3007_v19, 0.0  ;;  %v7307_v58 = vld [vmem:[#allocation22_spill] sm:$0xff] }
 0x349   :  { %v2297_v43 = vpop.f32.mrf.mxu2  ;;  %v3075_v9 = vmax.f32 %v3011_v18, 0.0  ;;  %v6467_v55 = vadd.f32 %v6283_v27, %v2288_v29  ;;  %v2247_v54 = vadd.f32 %v7302_v3, %v7301_v61  ;;  %v2293_v25 = vadd.f32 %v6372_v7, %v2244_v20 }
 0x34a   :  { %v2749_v41 = vadd.f32 %v2748_v16, %v2664_v32  ;;  %v2598_v37 = vadd.f32 %v2597_v60, %v6447_v2  ;;  %v2672_v11 = vmul.f32 %v6458_v51, %v6458_v51  ;;  %v2872_v38 = vsub.f32 %v7303_v21, %v5989_v59 }
 0x34b   :  { %v2346_v13 = vpop.f32.mrf.mxu3  ;;  %v6478_v30 = vadd.f32 %v7304_v31, %v2291_v24  ;;  %v2249_v10 = vadd.f32 %v2248_v63, %v2199_v6  ;;  %v2296_v27 = vadd.f32 %v2295_v35, %v2247_v54  ;;  %v2876_v4 = vsub.f32 %v7305_v49, %v5989_v59 }
 0x34c   :  { %v2750_v53 = vadd.f32 %v2749_v41, %v2668_v62  ;;  %v2599_v7 = vadd.f32 %v2598_v37, %v6458_v51  ;;  %v3130_v42 = vpack.c.bf16 %v3074_v14, %v3070_v15  ;;  %v3131_v17 = vpack.c.bf16 %v3075_v9, %v3071_v40  ;;  %v2253_v29 = vpop.f32.mrf.mxu1  ;;  %v7308_v15 = vld [vmem:[#allocation24_spill] sm:$0xff] }
 0x34d   :  { %v2676_v26 = vmul.f32 %v6467_v55, %v6467_v55  ;;  %v6486_v19 = vadd.f32 %v7306_v33, %v2293_v25  ;;  %v2252_v18 = vadd.f32 %v2251_v44, %v2202_v5  ;;  %v2298_v46 = vadd.f32 %v2297_v43, %v2249_v10  ;;  %v2204_v56 = vpop.f32.mrf.mxu0 }
 0x34e   :  { %v2751_v6 = vadd.f32 %v2750_v53, %v2672_v11  ;;  %v2873_v32 = vsub.f32 %v7307_v58, %v6184_v52  ;;  %v2877_v16 = vsub.f32 %v7308_v15, %v6184_v52  ;;  %v2600_v20 = vadd.f32 %v2599_v7, %v6467_v55 }
 0x34f   :  { %v2680_v24 = vmul.f32 %v6478_v30, %v6478_v30  ;;  %v6496_v5 = vadd.f32 %v6417_v12, %v2296_v27  ;;  %v2940_v43 = vmul.f32 %v6062_v50, %v2872_v38  ;;  %v2944_v14 = vmul.f32 %v6062_v50, %v2876_v4 }
 0x350   :  { %v2941_v60 = vmul.f32 %v6206_v47, %v2873_v32  ;;  %v2945_v62 = vmul.f32 %v6206_v47, %v2877_v16  ;;  %v2752_v40 = vadd.f32 %v2751_v6, %v2676_v26  ;;  %v2601_v9 = vadd.f32 %v2600_v20, %v6478_v30 }
 0x351   :  { %v2300_v63 = vpop.f32.mrf.mxu2  ;;  %v2684_v61 = vmul.f32 %v6486_v19, %v6486_v19  ;;  %v6505_v3 = vadd.f32 %v2346_v13, %v2298_v46  ;;  %v2688_v25 = vmul.f32 %v6496_v5, %v6496_v5  ;;  %v3014_v37 = vadd.f32 %v6073_v57, %v2940_v43 }
 0x352   :  { %3431 = vmatmul.bf16.gmra.mxu0 %v3130_v42  ;;  %v2301_v44 = vadd.f32 %v2300_v63, %v2252_v18  ;;  %v2753_v54 = vadd.f32 %v2752_v40, %v2680_v24  ;;  %v2602_v12 = vadd.f32 %v2601_v9, %v6486_v19  ;;  %v3018_v11 = vadd.f32 %v6073_v57, %v2944_v14  ;;  %v7309_v14 = vld [vmem:[#allocation33_spill] sm:$0xff]  ;;  %v7311_v9 = vld [vmem:[#allocation6_spill] sm:$0xff] }
 0x353   :  { %v2349_v35 = vpop.f32.mrf.mxu3  ;;  %3480 = vmatmul.bf16.gmra.mxu1 %v3131_v17  ;;  %v3015_v21 = vadd.f32 %v6319_v28, %v2941_v60  ;;  %v3019_v38 = vadd.f32 %v6319_v28, %v2945_v62  ;;  %v2692_v10 = vmul.f32 %v6505_v3, %v6505_v3  ;;  %v2254_v27 = vadd.f32 %v2253_v29, %v2204_v56  ;;  %v7310_v62 = vld [vmem:[#allocation30_spill] sm:$0xff] }
 0x354   :  { %v6510_v41 = vadd.f32 %v2349_v35, %v2301_v44  ;;  %v2754_v31 = vadd.f32 %v2753_v54, %v2684_v61  ;;  %v2603_v13 = vadd.f32 %v2602_v12, %v6496_v5  ;;  %v2412_v4 = vpop.f32.mrf.mxu1  ;;  %v3078_v46 = vmax.f32 %v3014_v37, 0.0  ;;  %v7312_v54 = vld [vmem:[#allocation23_spill] sm:$0xff] }
 0x355   :  { %v2363_v49 = vpop.f32.mrf.mxu0  ;;  %v3082_v6 = vmax.f32 %v3018_v11, 0.0  ;;  %v3079_v63 = vmax.f32 %v3015_v21, 0.0  ;;  %v3083_v35 = vmax.f32 %v3019_v38, 0.0  ;;  %v2880_v60 = vsub.f32 %v7309_v14, %v5989_v59 }
 0x356   :  { %v2413_v53 = vadd.f32 %v2412_v4, %v2363_v49  ;;  %v2755_v42 = vadd.f32 %v2754_v31, %v2688_v25  ;;  %v2604_v17 = vadd.f32 %v2603_v13, %v6505_v3  ;;  %v2696_v26 = vmul.f32 %v6510_v41, %v6510_v41 }
 0x357   :  { %v3134_v20 = vpack.c.bf16 %v3082_v6, %v3078_v46  ;;  %v3135_v24 = vpack.c.bf16 %v3083_v35, %v3079_v63  ;;  %v2884_v40 = vsub.f32 %v7310_v62, %v5989_v59  ;;  %v2881_v61 = vsub.f32 %v7311_v9, %v6184_v52 }
 0x358   :  { %v2756_v58 = vadd.f32 %v2755_v42, %v2692_v10  ;;  %v2605_v32 = vadd.f32 %v2604_v17, %v6510_v41  ;;  %v2885_v12 = vsub.f32 %v7312_v54, %v6184_v52  ;;  %v2948_v11 = vmul.f32 %v6062_v50, %v2880_v60 }
 0x359   :  { %v2302_v7 = vpop.f32.mrf.mxu2  ;;  %v2952_v21 = vmul.f32 %v6062_v50, %v2884_v40  ;;  %v2949_v38 = vmul.f32 %v6206_v47, %v2881_v61 }
 0x35a   :  { %v2303_v33 = vadd.f32 %v2302_v7, %v2254_v27  ;;  %v2757_v29 = vadd.f32 %v2756_v58, %v2696_v26  ;;  %v2953_v31 = vmul.f32 %v6206_v47, %v2885_v12  ;;  %v3022_v49 = vadd.f32 %v6073_v57, %v2948_v11  ;;  %v4762_v47 = vld [vmem:[%s7093_s7 + $0xb8] sm:$0xff] }
 0x35b   :  { %v2351_v18 = vpop.f32.mrf.mxu3  ;;  %v3026_v4 = vadd.f32 %v6073_v57, %v2952_v21  ;;  %v3023_v52 = vadd.f32 %v6319_v28, %v2949_v38  ;;  %3516 = vmatpush.bf16.msrb.mxu2 %v4762_v47 }
 0x35c   :  { %v6523_v56 = vadd.f32 %v2351_v18, %v2303_v33  ;;  %v3027_v7 = vadd.f32 %v6319_v28, %v2953_v31  ;;  %v2414_v18 = vpop.f32.mrf.mxu1  ;;  %v3086_v46 = vmax.f32 %v3022_v49, 0.0  ;;  %v4757_v49 = vld [vmem:[%s7093_s7 + $0x90] sm:$0xff] }
 0x35d   :  { %v2365_v33 = vpop.f32.mrf.mxu0  ;;  %v3090_v57 = vmax.f32 %v3026_v4, 0.0  ;;  %v3087_v58 = vmax.f32 %v3023_v52, 0.0 }
 0x35e   :  { %v2606_v15 = vadd.f32 %v2605_v32, %v6523_v56  ;;  %v2700_v16 = vmul.f32 %v6523_v56, %v6523_v56  ;;  %v6547_v6 = vadd.f32 %v2414_v18, %v2365_v33  ;;  %v3091_v32 = vmax.f32 %v3027_v7, 0.0  ;;  %v6588_v33 = vld [vmem:[%s7091_s5] sm:$0xf] }
 0x35f   :  { %v3138_v14 = vpack.c.bf16 %v3090_v57, %v3086_v46  ;;  %v2846_v18 = vperm.slane %v6588_v33, 2 }
 0x360   :  { %v2607_v44 = vrot.slane %v2606_v15, 4  ;;  %v2758_v43 = vadd.f32 %v2757_v29, %v2700_v16  ;;  %v4761_v16 = vld [vmem:[%s7093_s7 + $0xb0] sm:$0xff]  ;;  %v3139_v60 = vpack.c.bf16 %v3091_v32, %v3087_v58 }
 0x361   :  { %v2461_v63 = vpop.f32.mrf.mxu2  ;;  %3517 = vmatpush.bf16.msrb.mxu2 %v4761_v16 }
 0x362   :  { %3436 = vmatmul.bf16.gmra.mxu0 %v3134_v20  ;;  %v2608_v25 = vadd.f32 %v2607_v44, %v2606_v15  ;;  %v2759_v37 = vrot.slane %v2758_v43, 4  ;;  %v2462_v15 = vadd.f32 %v2461_v63, %v2413_v53  ;;  %v4760_v53 = vld [vmem:[%s7093_s7 + $0xa8] sm:$0xff]  ;;  %v4770_v63 = vld [vmem:[%s7093_s7 + $0xf8] sm:$0xff] }
 0x363   :  { %3485 = vmatmul.bf16.gmra.mxu1 %v3135_v24  ;;  %v2510_v35 = vpop.f32.mrf.mxu3  ;;  %3565 = vmatpush.bf16.msrb.mxu3 %v4770_v63 }
 0x364   :  { %v2609_v13 = vrot.slane %v2608_v25, 2  ;;  %v2760_v10 = vadd.f32 %v2759_v37, %v2758_v43  ;;  %v6558_v43 = vadd.f32 %v2510_v35, %v2462_v15  ;;  %v2417_v61 = vpop.f32.mrf.mxu1  ;;  %v4758_v37 = vld [vmem:[%s7093_s7 + $0x98] sm:$0xff] }
 0x365   :  { %v2368_v9 = vpop.f32.mrf.mxu0  ;;  %3518 = vmatpush.bf16.msrb.mxu2 %v4760_v53 }
 0x366   :  { %v2610_v27 = vadd.f32 %v2609_v13, %v2608_v25  ;;  %v2761_v59 = vrot.slane %v2760_v10, 2  ;;  %v2418_v54 = vadd.f32 %v2417_v61, %v2368_v9 }
 0x368   :  { %v2611_v42 = vrot.slane %v2610_v27, 1  ;;  %v2762_v17 = vadd.f32 %v2761_v59, %v2760_v10 }
 0x369   :  { %v6563_v12 = vpop.f32.mrf.mxu2 }
 0x36a   :  { %v2612_v26 = vadd.f32 %v2611_v42, %v2610_v27  ;;  %v2763_v50 = vrot.slane %v2762_v17, 1  ;;  %v4756_v42 = vld [vmem:[%s7093_s7 + $0x88] sm:$0xff] }
 0x36b   :  { %v6565_v25 = vpop.f32.mrf.mxu3 }
 0x36c   :  { %v6549_v29 = vmul.f32 0.0078125, %v2612_v26  ;;  %v2764_v28 = vadd.f32 %v2763_v50, %v2762_v17  ;;  %v2419_v38 = vpop.f32.mrf.mxu1  ;;  %v7313_v26 = vld [vmem:[#allocation27_spill] sm:$0xff]  ;;  %v7314_v50 = vld [vmem:[#allocation5_spill] sm:$0xff] }
 0x36d   :  { %v2370_v21 = vpop.f32.mrf.mxu0 }
 0x36e   :  { %v2788_v20 = vmul.f32 0.0078125, %v2764_v28  ;;  %v2792_v24 = vmul.f32 %v6549_v29, %v6549_v29  ;;  %v2918_v44 = vsub.f32 %v6523_v56, %v6549_v29  ;;  %v4759_v56 = vld [vmem:[%s7093_s7 + $0xa0] sm:$0xff]  ;;  %v6573_v13 = vadd.f32 %v2419_v38, %v2370_v21 }
 0x36f   :  { %3519 = vmatpush.bf16.msrb.mxu2 %v4759_v56  ;;  %v4755_v28 = vld [vmem:[%s7093_s7 + $0x80] sm:$0xff] }
 0x370   :  { %v2796_v62 = vsub.f32 %v2788_v20, %v2792_v24  ;;  %v2858_v24 = vsub.f32 %v6190_v8, %v6549_v29 }
 0x371   :  { %v2466_v10 = vpop.f32.mrf.mxu2 }
 0x372   :  { %3441 = vmatmul.bf16.gmra.mxu0 %v3138_v14  ;;  %v2800_v40 = vadd.f32 1e-05, %v2796_v62  ;;  %v2467_v59 = vadd.f32 %v2466_v10, %v2418_v54  ;;  %v2862_v14 = vsub.f32 %v6193_v39, %v6549_v29  ;;  %v7315_v10 = vld [vmem:[#allocation31_spill] sm:$0xff] }
 0x373   :  { %3490 = vmatmul.bf16.gmra.mxu1 %v3139_v60  ;;  %v2515_v27 = vpop.f32.mrf.mxu3  ;;  %3520 = vmatpush.bf16.msrb.mxu2 %v4758_v37  ;;  %v6610_v60 = vld [vmem:[%s7092_s6] sm:$0xf] }
 0x374   :  { %4787 = vrsqrt.f32 %v2800_v40  ;;  %v6578_v52 = vadd.f32 %v2515_v27, %v2467_v59  ;;  %v2422_v46 = vpop.f32.mrf.mxu1  ;;  %vm2828_vm4 = vweird.f32 %v2800_v40  ;;  %v6613_v62 = vperm.slane %v6610_v60, 2 }
 0x375   :  { %v2373_v47 = vpop.f32.mrf.mxu0 }
 0x376   :  { %v2423_v57 = vadd.f32 %v2422_v46, %v2373_v47 }
 0x377   :  { %3521 = vmatpush.bf16.msrb.mxu2 %v4757_v49  ;;  %v2866_v49 = vsub.f32 %v6198_v23, %v6549_v29 }
 0x379   :  { %v6594_v58 = vpop.f32.mrf.mxu2 }
 0x37a   :  { %v4788_v11 = vpop.eup %4787 }
 0x37b   :  { %v2823_v31 = vmul.f32 %v4788_v11, %v2800_v40  ;;  %vm2829_vm3 = vweird.f32 %v4788_v11  ;;  %v6596_v32 = vpop.f32.mrf.mxu3  ;;  %3522 = vmatpush.bf16.msrb.mxu2 %v4756_v42 }
 0x37c   :  { %vm2830_vm5 = vmor %vm2828_vm4, %vm2829_vm3  ;;  %v6620_v9 = vpop.f32.mrf.mxu1 }
 0x37d   :  { %v2824_v4 = vmul.f32 %v4788_v11, %v2823_v31  ;;  %v6618_v40 = vpop.f32.mrf.mxu0 }
 0x37f   :  { %v2825_v7 = vmul.f32 0.5, %v2824_v4  ;;  %3523 = vmatpush.bf16.msrb.mxu2 %v4755_v28  ;;  %v2870_v4 = vsub.f32 %v6202_v36, %v6549_v29 }
 0x381   :  { %v2826_v17 = vsub.f32 1.5, %v2825_v7  ;;  %v2471_v39 = vpop.f32.mrf.mxu2  ;;  %v4769_v7 = vld [vmem:[%s7093_s7 + $0xf0] sm:$0xff] }
 0x382   :  { %3446 = vmatmul.bf16.gmra.mxu0 %v7313_v26  ;;  %v2472_v56 = vadd.f32 %v2471_v39, %v2423_v57  ;;  %3566 = vmatpush.bf16.msrb.mxu3 %v4769_v7 }
 0x383   :  { %3495 = vmatmul.bf16.gmra.mxu1 %v7314_v50  ;;  %v2827_v35 = vmul.f32 %v4788_v11, %v2826_v17  ;;  %v2520_v54 = vpop.f32.mrf.mxu3  ;;  %v2914_v50 = vsub.f32 %v6510_v41, %v6549_v29 }
 0x384   :  { %v6626_v21 = vadd.f32 %v2520_v54, %v2472_v56  ;;  %v6632_v59 = vpop.f32.mrf.mxu1 }
 0x385   :  { %v2831_v15 = vsel %vm2830_vm5, %v4788_v11, %v2827_v35  ;;  %v6630_v27 = vpop.f32.mrf.mxu0 }
 0x386   :  { %v2854_v16 = vmul.f32 %v2846_v18, %v2831_v15  ;;  %v2874_v15 = vsub.f32 %v6216_v1, %v6549_v29 }
 0x388   :  { %v6601_v20 = vperm.slane %v2854_v16, 0  ;;  %v7316_v16 = vld [vmem:[#allocation28_spill] sm:$0xff] }
 0x389   :  { %v6641_v42 = vpop.f32.mrf.mxu2 }
 0x38a   :  { %v6616_v53 = vmul.f32 %v6601_v20, %v2918_v44  ;;  %v2926_v8 = vmul.f32 %v6601_v20, %v2858_v24  ;;  %v2930_v61 = vmul.f32 %v6601_v20, %v2862_v14  ;;  %v2938_v26 = vmul.f32 %v6601_v20, %v2870_v4 }
 0x38b   :  { %v6643_v17 = vpop.f32.mrf.mxu3  ;;  %v2942_v1 = vmul.f32 %v6601_v20, %v2874_v15 }
 0x38c   :  { %v3000_v37 = vadd.f32 %v6613_v62, %v2926_v8  ;;  %v3004_v11 = vadd.f32 %v6613_v62, %v2930_v61  ;;  %v3012_v36 = vadd.f32 %v6613_v62, %v2938_v26  ;;  %v6653_v47 = vpop.f32.mrf.mxu1  ;;  %v2878_v8 = vsub.f32 %v6425_v34, %v6549_v29  ;;  %v4768_v61 = vld [vmem:[%s7093_s7 + $0xe8] sm:$0xff] }
 0x38d   :  { %v6651_v18 = vpop.f32.mrf.mxu0  ;;  %3567 = vmatpush.bf16.msrb.mxu3 %v4768_v61  ;;  %v3016_v56 = vadd.f32 %v6613_v62, %v2942_v1  ;;  %v2890_v34 = vsub.f32 %v6458_v51, %v6549_v29 }
 0x38e   :  { %v3064_v38 = vmax.f32 %v3000_v37, 0.0  ;;  %v3068_v44 = vmax.f32 %v3004_v11, 0.0  ;;  %v3076_v57 = vmax.f32 %v3012_v36, 0.0 }
 0x38f   :  { %v3080_v7 = vmax.f32 %v3016_v56, 0.0  ;;  %v2958_v51 = vmul.f32 %v6601_v20, %v2890_v34  ;;  %v7317_v56 = vld [vmem:[#allocation32_spill] sm:$0xff] }
 0x390   :  { %v3128_v31 = vpack.c.bf16 %v3068_v44, %v3064_v38  ;;  %v2894_v44 = vsub.f32 %v6467_v55, %v6549_v29 }
 0x391   :  { %v6655_v46 = vpop.f32.mrf.mxu2  ;;  %v3032_v36 = vadd.f32 %v6613_v62, %v2958_v51  ;;  %v3060_v51 = vadd.f32 %v6613_v62, %v6616_v53 }
 0x392   :  { %3451 = vmatmul.bf16.gmra.mxu0 %v7315_v10  ;;  %3524 = vmatmul.bf16.vlgmr.msrb.gmra.mxu2 %v3128_v31  ;;  %v2898_v31 = vsub.f32 %v6478_v30, %v6549_v29  ;;  %v2902_v10 = vsub.f32 %v6486_v19, %v6549_v29  ;;  %v2910_v19 = vsub.f32 %v6505_v3, %v6549_v29 }
 0x393   :  { %3500 = vmatmul.bf16.gmra.mxu1 %v6387_v45  ;;  %v2934_v45 = vmul.f32 %v6601_v20, %v2866_v49  ;;  %v6657_v63 = vpop.f32.mrf.mxu3  ;;  %v3096_v15 = vmax.f32 %v3032_v36, 0.0 }
 0x394   :  { %v6665_v14 = vpop.f32.mrf.mxu1  ;;  %v2966_v55 = vmul.f32 %v6601_v20, %v2898_v31  ;;  %v2970_v30 = vmul.f32 %v6601_v20, %v2902_v10  ;;  %v2886_v10 = vsub.f32 %v6447_v2, %v6549_v29 }
 0x395   :  { %v3008_v23 = vadd.f32 %v6613_v62, %v2934_v45  ;;  %v6663_v24 = vpop.f32.mrf.mxu0  ;;  %v2906_v45 = vsub.f32 %v6496_v5, %v6549_v29 }
 0x396   :  { %v3044_v5 = vadd.f32 %v6613_v62, %v2970_v30  ;;  %v2954_v36 = vmul.f32 %v6601_v20, %v2886_v10  ;;  %v2469_v10 = vadd.f32 %v6594_v58, %v6573_v13  ;;  %v2649_v58 = vmul.f32 %v6578_v52, %v6578_v52 }
 0x397   :  { %v3072_v35 = vmax.f32 %v3008_v23, 0.0  ;;  %v2962_v23 = vmul.f32 %v6601_v20, %v2894_v44 }
 0x398   :  { %v3108_v3 = vmax.f32 %v3044_v5, 0.0 }
 0x399   :  { %v3132_v28 = vpack.c.bf16 %v3076_v57, %v3072_v35  ;;  %v6672_v39 = vpop.f32.mrf.mxu2  ;;  %v2974_v35 = vmul.f32 %v6601_v20, %v2906_v45  ;;  %v3036_v57 = vadd.f32 %v6613_v62, %v2962_v23 }
 0x39b   :  { %v6674_v54 = vpop.f32.mrf.mxu3  ;;  %v3100_v61 = vmax.f32 %v3036_v57, 0.0 }
 0x39c   :  { %v6684_v38 = vpop.f32.mrf.mxu1 }
 0x39d   :  { %v6682_v11 = vpop.f32.mrf.mxu0 }
 0x3a1   :  { %v6692_v49 = vpop.f32.mrf.mxu2 }
 0x3a2   :  { %3456 = vmatmul.bf16.gmra.mxu0 %v7316_v16  ;;  %3529 = vmatmul.bf16.gmra.mxu2 %v3132_v28  ;;  %v3040_v28 = vadd.f32 %v6613_v62, %v2966_v55  ;;  %v2978_v16 = vmul.f32 %v6601_v20, %v2910_v19 }
 0x3a3   :  { %3505 = vmatmul.bf16.gmra.mxu1 %v6402_v48  ;;  %v2946_v48 = vmul.f32 %v6601_v20, %v2878_v8  ;;  %v6694_v4 = vpop.f32.mrf.mxu3 }
 0x3a4   :  { %v3104_v1 = vmax.f32 %v3040_v28, 0.0  ;;  %v3052_v34 = vadd.f32 %v6613_v62, %v2978_v16  ;;  %v6718_v31 = vpop.f32.mrf.mxu1 }
 0x3a5   :  { %v3020_v37 = vadd.f32 %v6613_v62, %v2946_v48  ;;  %v2882_v48 = vsub.f32 %v6436_v0, %v6549_v29  ;;  %v6716_v44 = vpop.f32.mrf.mxu0  ;;  %v4767_v0 = vld [vmem:[%s7093_s7 + $0xe0] sm:$0xff]  ;;  %v3124_v29 = vmax.f32 %v3060_v51, 0.0 }
 0x3a6   :  { %v6737_v23 = vpack.c.bf16 %v3108_v3, %v3104_v1  ;;  %v3116_v55 = vmax.f32 %v3052_v34, 0.0  ;;  %3568 = vmatpush.bf16.msrb.mxu3 %v4767_v0  ;;  %v6765_v0 = vadd.f32 %v6596_v32, %v2469_v10  ;;  %v2430_v32 = vadd.f32 %v6653_v47, %v6651_v18 }
 0x3a7   :  { %v3084_v26 = vmax.f32 %v3020_v37, 0.0  ;;  %v3048_v37 = vadd.f32 %v6613_v62, %v2974_v35  ;;  %v2950_v30 = vmul.f32 %v6601_v20, %v2882_v48  ;;  %v3028_v35 = vadd.f32 %v6613_v62, %v2954_v36 }
 0x3a8   :  { %v2657_v47 = vmul.f32 %v6626_v21, %v6626_v21 }
 0x3a9   :  { %v3136_v8 = vpack.c.bf16 %v3084_v26, %v3080_v7  ;;  %v6725_v7 = vpack.c.bf16 %v3100_v61, %v3096_v15  ;;  %v6733_v45 = vpop.f32.mrf.mxu2  ;;  %v3112_v2 = vmax.f32 %v3048_v37, 0.0  ;;  %v3024_v53 = vadd.f32 %v6613_v62, %v2950_v30 }
 0x3aa   :  { %v2464_v61 = vadd.f32 %v6563_v12, %v6547_v6  ;;  %v2425_v6 = vadd.f32 %v6620_v9, %v6618_v40  ;;  %v2653_v30 = vmul.f32 %v6765_v0, %v6765_v0 }
 0x3ab   :  { %v6735_v26 = vpop.f32.mrf.mxu3 }
 0x3ac   :  { %v2439_v5 = vpop.f32.mrf.mxu1  ;;  %v6756_v34 = vadd.f32 %v6565_v25, %v2464_v61  ;;  %v2474_v51 = vadd.f32 %v6641_v42, %v2425_v6  ;;  %v2641_v25 = vmul.f32 %v6558_v43, %v6558_v43 }
 0x3ad   :  { %v2390_v28 = vpop.f32.mrf.mxu0 }
 0x3ae   :  { %v2645_v12 = vmul.f32 %v6756_v34, %v6756_v34  ;;  %v2613_v13 = vadd.f32 %v6756_v34, %v6558_v43  ;;  %v6783_v36 = vadd.f32 %v6643_v17, %v2474_v51  ;;  %v2435_v17 = vadd.f32 %v6684_v38, %v6682_v11 }
 0x3b0   :  { %v2614_v42 = vadd.f32 %v2613_v13, %v6578_v52 }
 0x3b1   :  { %v2486_v15 = vpop.f32.mrf.mxu2 }
 0x3b2   :  { %3461 = vmatmul.bf16.gmra.mxu0 %v7317_v56  ;;  %3534 = vmatmul.bf16.gmra.mxu2 %v3136_v8  ;;  %v3088_v8 = vmax.f32 %v3024_v53, 0.0  ;;  %v2615_v18 = vadd.f32 %v2614_v42, %v6765_v0 }
 0x3b3   :  { %3510 = vmatmul.bf16.gmra.mxu1 %v6404_v22  ;;  %v2982_v22 = vmul.f32 %v6601_v20, %v2914_v50  ;;  %v6742_v50 = vpack.c.bf16 %v3116_v55, %v3112_v2  ;;  %v6748_v16 = vpop.f32.mrf.mxu3  ;;  %v3092_v20 = vmax.f32 %v3028_v35, 0.0 }
 0x3b4   :  { %v2442_v56 = vpop.f32.mrf.mxu1 }
 0x3b5   :  { %v3056_v41 = vadd.f32 %v6613_v62, %v2982_v22  ;;  %v3140_v1 = vpack.c.bf16 %v3092_v20, %v3088_v8  ;;  %v2393_v48 = vpop.f32.mrf.mxu0  ;;  %v4766_v62 = vld [vmem:[%s7093_s7 + $0xd8] sm:$0xff]  ;;  %v2428_v22 = vadd.f32 %v6632_v59, %v6630_v27  ;;  %v2765_v59 = vadd.f32 %v2645_v12, %v2641_v25 }
 0x3b6   :  { %3569 = vmatpush.bf16.msrb.mxu3 %v4766_v62  ;;  %v2616_v8 = vadd.f32 %v2615_v18, %v6626_v21  ;;  %v2443_v12 = vadd.f32 %v2442_v56, %v2393_v48 }
 0x3b7   :  { %v3120_v19 = vmax.f32 %v3056_v41, 0.0  ;;  %v2477_v2 = vadd.f32 %v6655_v46, %v2428_v22  ;;  %v2433_v41 = vadd.f32 %v6665_v14, %v6663_v24  ;;  %v2661_v24 = vmul.f32 %v6783_v36, %v6783_v36 }
 0x3b8   :  { %v2617_v20 = vadd.f32 %v2616_v8, %v6783_v36 }
 0x3b9   :  { %v6746_v57 = vpack.c.bf16 %v3124_v29, %v3120_v19  ;;  %v2488_v3 = vpop.f32.mrf.mxu2  ;;  %v2479_v29 = vadd.f32 %v6672_v39, %v2430_v32  ;;  %v2766_v19 = vadd.f32 %v2765_v59, %v2649_v58  ;;  %v6792_v46 = vadd.f32 %v6657_v63, %v2477_v2 }
 0x3ba   :  { %v2482_v53 = vadd.f32 %v6692_v49, %v2433_v41  ;;  %v2438_v39 = vadd.f32 %v6718_v31, %v6716_v44  ;;  %v2484_v63 = vadd.f32 %v6733_v45, %v2435_v17 }
 0x3bb   :  { %v2537_v37 = vpop.f32.mrf.mxu3  ;;  %v2767_v35 = vadd.f32 %v2766_v19, %v2653_v30  ;;  %v6801_v14 = vadd.f32 %v6674_v54, %v2479_v29  ;;  %v2665_v11 = vmul.f32 %v6792_v46, %v6792_v46  ;;  %v2440_v54 = vadd.f32 %v2439_v5, %v2390_v28 }
 0x3bc   :  { %v2444_v9 = vpop.f32.mrf.mxu1  ;;  %v6811_v38 = vadd.f32 %v6694_v4, %v2482_v53  ;;  %v2487_v62 = vadd.f32 %v2486_v15, %v2438_v39  ;;  %v2618_v44 = vadd.f32 %v2617_v20, %v6792_v46  ;;  %v6817_v6 = vadd.f32 %v6735_v26, %v2484_v63 }
 0x3bd   :  { %v2395_v40 = vpop.f32.mrf.mxu0  ;;  %v2768_v49 = vadd.f32 %v2767_v35, %v2657_v47  ;;  %v2669_v31 = vmul.f32 %v6801_v14, %v6801_v14  ;;  %v2489_v22 = vadd.f32 %v2488_v3, %v2440_v54 }
 0x3be   :  { %v2619_v4 = vadd.f32 %v2618_v44, %v6801_v14  ;;  %v2673_v28 = vmul.f32 %v6811_v38, %v6811_v38  ;;  %v6823_v5 = vadd.f32 %v6748_v16, %v2487_v62  ;;  %v2445_v15 = vadd.f32 %v2444_v9, %v2395_v40 }
 0x3bf   :  { %v2769_v10 = vadd.f32 %v2768_v49, %v2661_v24  ;;  %v2677_v26 = vmul.f32 %v6817_v6, %v6817_v6  ;;  %v6828_v32 = vadd.f32 %v2537_v37, %v2489_v22 }
 0x3c0   :  { %v2620_v58 = vadd.f32 %v2619_v4, %v6811_v38  ;;  %v2681_v16 = vmul.f32 %v6823_v5, %v6823_v5 }
 0x3c1   :  { %v2491_v55 = vpop.f32.mrf.mxu2  ;;  %v2770_v51 = vadd.f32 %v2769_v10, %v2665_v11  ;;  %v2685_v37 = vmul.f32 %v6828_v32, %v6828_v32 }
 0x3c2   :  { %3539 = vmatmul.bf16.gmra.mxu2 %v3140_v1  ;;  %v2492_v25 = vadd.f32 %v2491_v55, %v2443_v12  ;;  %v2621_v42 = vadd.f32 %v2620_v58, %v6817_v6 }
 0x3c3   :  { %v2540_v27 = vpop.f32.mrf.mxu3  ;;  %v2771_v13 = vadd.f32 %v2770_v51, %v2669_v31 }
 0x3c4   :  { %v2447_v45 = vpop.f32.mrf.mxu1  ;;  %v6833_v40 = vadd.f32 %v2540_v27, %v2492_v25  ;;  %v2622_v30 = vadd.f32 %v2621_v42, %v6823_v5 }
 0x3c5   :  { %v2772_v3 = vadd.f32 %v2771_v13, %v2673_v28 }
 0x3c6   :  { %v2623_v47 = vadd.f32 %v2622_v30, %v6828_v32  ;;  %v2689_v53 = vmul.f32 %v6833_v40, %v6833_v40 }
 0x3c7   :  { %v2773_v55 = vadd.f32 %v2772_v3, %v2677_v26  ;;  %v4765_v26 = vld [vmem:[%s7093_s7 + $0xd0] sm:$0xff]  ;;  %v4764_v3 = vld [vmem:[%s7093_s7 + $0xc8] sm:$0xff] }
 0x3c8   :  { %v2624_v35 = vadd.f32 %v2623_v47, %v6833_v40  ;;  %3570 = vmatpush.bf16.msrb.mxu3 %v4765_v26 }
 0x3c9   :  { %v2493_v61 = vpop.f32.mrf.mxu2  ;;  %v2774_v18 = vadd.f32 %v2773_v55, %v2681_v16  ;;  %v4763_v16 = vld [vmem:[%s7093_s7 + $0xc0] sm:$0xff] }
 0x3ca   :  { %v2494_v56 = vadd.f32 %v2493_v61, %v2445_v15 }
 0x3cb   :  { %v2542_v1 = vpop.f32.mrf.mxu3  ;;  %v2775_v27 = vadd.f32 %v2774_v18, %v2685_v37  ;;  %v2847_v18 = vperm.slane %v6588_v33, 3 }
 0x3cc   :  { %v6838_v41 = vadd.f32 %v2542_v1, %v2494_v56  ;;  %v2449_v19 = vpop.f32.mrf.mxu1  ;;  %3571 = vmatpush.bf16.msrb.mxu3 %v4764_v3 }
 0x3cd   :  { %v2776_v63 = vadd.f32 %v2775_v27, %v2689_v53 }
 0x3ce   :  { %v2693_v8 = vmul.f32 %v6838_v41, %v6838_v41  ;;  %v2625_v49 = vadd.f32 %v2624_v35, %v6838_v41 }
 0x3d0   :  { %v2777_v1 = vadd.f32 %v2776_v63, %v2693_v8  ;;  %3572 = vmatpush.bf16.msrb.mxu3 %v4763_v16 }
 0x3d1   :  { %v2496_v2 = vpop.f32.mrf.mxu2 }
 0x3d2   :  { %3544 = vmatmul.bf16.gmra.mxu2 %v6725_v7  ;;  %v2398_v7 = vpop.f32.mrf.mxu0 }
 0x3d3   :  { %v2448_v48 = vadd.f32 %v2447_v45, %v2398_v7  ;;  %v2545_v59 = vpop.f32.mrf.mxu3 }
 0x3d5   :  { %v2497_v9 = vadd.f32 %v2496_v2, %v2448_v48 }
 0x3d7   :  { %v6843_v17 = vadd.f32 %v2545_v59, %v2497_v9 }
 0x3d9   :  { %v2498_v39 = vpop.f32.mrf.mxu2  ;;  %v2697_v20 = vmul.f32 %v6843_v17, %v6843_v17  ;;  %v2626_v54 = vadd.f32 %v2625_v49, %v6843_v17 }
 0x3da   :  { %v2400_v29 = vpop.f32.mrf.mxu0 }
 0x3db   :  { %v2450_v24 = vadd.f32 %v2449_v19, %v2400_v29  ;;  %v2547_v61 = vpop.f32.mrf.mxu3  ;;  %v2778_v10 = vadd.f32 %v2777_v1, %v2697_v20 }
 0x3dd   :  { %v2499_v11 = vadd.f32 %v2498_v39, %v2450_v24  ;;  %v6877_v24 = vperm.slane %v6610_v60, 3 }
 0x3df   :  { %v2548_v62 = vadd.f32 %v2547_v61, %v2499_v11 }
 0x3e1   :  { %v2627_v44 = vadd.f32 %v2626_v54, %v2548_v62  ;;  %v2701_v31 = vmul.f32 %v2548_v62, %v2548_v62 }
 0x3e2   :  { %3549 = vmatmul.bf16.gmra.mxu2 %v6737_v23 }
 0x3e3   :  { %v2628_v7 = vrot.slane %v2627_v44, 4  ;;  %v2779_v45 = vadd.f32 %v2778_v10, %v2701_v31 }
 0x3e5   :  { %v2629_v12 = vadd.f32 %v2628_v7, %v2627_v44  ;;  %v2780_v23 = vrot.slane %v2779_v45, 4 }
 0x3e7   :  { %v2630_v22 = vrot.slane %v2629_v12, 2  ;;  %v2781_v51 = vadd.f32 %v2780_v23, %v2779_v45 }
 0x3e9   :  { %v2631_v4 = vadd.f32 %v2630_v22, %v2629_v12  ;;  %v2782_v28 = vrot.slane %v2781_v51, 2 }
 0x3eb   :  { %v2632_v15 = vrot.slane %v2631_v4, 1  ;;  %v2783_v25 = vadd.f32 %v2782_v28, %v2781_v51 }
 0x3ed   :  { %v2633_v13 = vadd.f32 %v2632_v15, %v2631_v4  ;;  %v2784_v58 = vrot.slane %v2783_v25, 1 }
 0x3ef   :  { %v6857_v48 = vmul.f32 0.0078125, %v2633_v13  ;;  %v2785_v56 = vadd.f32 %v2784_v58, %v2783_v25 }
 0x3f1   :  { %v2789_v2 = vmul.f32 0.0078125, %v2785_v56  ;;  %v2793_v59 = vmul.f32 %v6857_v48, %v6857_v48  ;;  %v2859_v35 = vsub.f32 %v6558_v43, %v6857_v48  ;;  %v2911_v39 = vsub.f32 %v6838_v41, %v6857_v48 }
 0x3f2   :  { %3554 = vmatmul.bf16.gmra.mxu2 %v6742_v50  ;;  %v2919_v50 = vsub.f32 %v2548_v62, %v6857_v48  ;;  %v2915_v33 = vsub.f32 %v6843_v17, %v6857_v48  ;;  %v2867_v41 = vsub.f32 %v6578_v52, %v6857_v48  ;;  %v2871_v17 = vsub.f32 %v6765_v0, %v6857_v48 }
 0x3f3   :  { %v2797_v42 = vsub.f32 %v2789_v2, %v2793_v59  ;;  %v2891_v7 = vsub.f32 %v6811_v38, %v6857_v48  ;;  %v2895_v52 = vsub.f32 %v6817_v6, %v6857_v48  ;;  %v2899_v0 = vsub.f32 %v6823_v5, %v6857_v48 }
 0x3f4   :  { %v2903_v12 = vsub.f32 %v6828_v32, %v6857_v48  ;;  %v2875_v23 = vsub.f32 %v6626_v21, %v6857_v48  ;;  %v2879_v22 = vsub.f32 %v6783_v36, %v6857_v48  ;;  %v2907_v32 = vsub.f32 %v6833_v40, %v6857_v48 }
 0x3f5   :  { %v2801_v9 = vadd.f32 1e-05, %v2797_v42 }
 0x3f7   :  { %4789 = vrsqrt.f32 %v2801_v9  ;;  %vm2838_vm7 = vweird.f32 %v2801_v9 }
 0x3fd   :  { %v4790_v55 = vpop.eup %4789 }
 0x3fe   :  { %v2833_v30 = vmul.f32 %v4790_v55, %v2801_v9  ;;  %vm2839_vm6 = vweird.f32 %v4790_v55 }
 0x3ff   :  { %vm2840_vm8 = vmor %vm2838_vm7, %vm2839_vm6 }
 0x400   :  { %v2834_v37 = vmul.f32 %v4790_v55, %v2833_v30 }
 0x402   :  { %3559 = vmatmul.bf16.gmra.mxu2 %v6746_v57  ;;  %v2835_v29 = vmul.f32 0.5, %v2834_v37  ;;  %v2863_v57 = vsub.f32 %v6756_v34, %v6857_v48 }
 0x404   :  { %v2836_v19 = vsub.f32 1.5, %v2835_v29 }
 0x406   :  { %v2837_v47 = vmul.f32 %v4790_v55, %v2836_v19 }
 0x408   :  { %v2841_v53 = vsel %vm2840_vm8, %v4790_v55, %v2837_v47 }
 0x409   :  { %v2855_v27 = vmul.f32 %v2847_v18, %v2841_v53 }
 0x40b   :  { %v6872_v8 = vperm.slane %v2855_v27, 0 }
 0x40d   :  { %v2987_v63 = vmul.f32 %v6872_v8, %v2919_v50  ;;  %v2927_v49 = vmul.f32 %v6872_v8, %v2859_v35  ;;  %v2931_v43 = vmul.f32 %v6872_v8, %v2863_v57  ;;  %v2935_v1 = vmul.f32 %v6872_v8, %v2867_v41  ;;  %v3427_v41 = vpop.f32.mrf.mxu0 }
 0x40e   :  { %v2939_v54 = vmul.f32 %v6872_v8, %v2871_v17  ;;  %v2959_v51 = vmul.f32 %v6872_v8, %v2891_v7  ;;  %v2963_v38 = vmul.f32 %v6872_v8, %v2895_v52  ;;  %v2967_v4 = vmul.f32 %v6872_v8, %v2899_v0  ;;  %v3476_v17 = vpop.f32.mrf.mxu1 }
 0x40f   :  { %v3001_v20 = vadd.f32 %v6877_v24, %v2927_v49  ;;  %v3005_v11 = vadd.f32 %v6877_v24, %v2931_v43  ;;  %v3009_v62 = vadd.f32 %v6877_v24, %v2935_v1  ;;  %v2971_v6 = vmul.f32 %v6872_v8, %v2903_v12 }
 0x410   :  { %v3013_v10 = vadd.f32 %v6877_v24, %v2939_v54  ;;  %v2943_v5 = vmul.f32 %v6872_v8, %v2875_v23  ;;  %v2947_v28 = vmul.f32 %v6872_v8, %v2879_v22  ;;  %v3033_v21 = vadd.f32 %v6877_v24, %v2959_v51 }
 0x411   :  { %v3065_v34 = vmax.f32 %v3001_v20, 0.0  ;;  %v3069_v61 = vmax.f32 %v3005_v11, 0.0  ;;  %v3073_v44 = vmax.f32 %v3009_v62, 0.0  ;;  %v3037_v36 = vadd.f32 %v6877_v24, %v2963_v38 }
 0x412   :  { %v3077_v31 = vmax.f32 %v3013_v10, 0.0  ;;  %v3041_v15 = vadd.f32 %v6877_v24, %v2967_v4  ;;  %v3045_v25 = vadd.f32 %v6877_v24, %v2971_v6  ;;  %v3097_v13 = vmax.f32 %v3033_v21, 0.0 }
 0x413   :  { %v3129_v60 = vpack.c.bf16 %v3069_v61, %v3065_v34  ;;  %v3101_v58 = vmax.f32 %v3037_v36, 0.0  ;;  %v2975_v56 = vmul.f32 %v6872_v8, %v2907_v32  ;;  %v3017_v3 = vadd.f32 %v6877_v24, %v2943_v5 }
 0x414   :  { %v3133_v45 = vpack.c.bf16 %v3077_v31, %v3073_v44  ;;  %v3105_v26 = vmax.f32 %v3041_v15, 0.0  ;;  %v3109_v2 = vmax.f32 %v3045_v25, 0.0  ;;  %v2979_v40 = vmul.f32 %v6872_v8, %v2911_v39 }
 0x415   :  { %3573 = vmatmul.bf16.vlgmr.msrb.gmra.mxu3 %v3129_v60  ;;  %v2983_v59 = vmul.f32 %v6872_v8, %v2915_v33  ;;  %v3021_v50 = vadd.f32 %v6877_v24, %v2947_v28  ;;  %v3145_v42 = vpack.c.bf16 %v3101_v58, %v3097_v13  ;;  %v3049_v16 = vadd.f32 %v6877_v24, %v2975_v56  ;;  %v3429_v1 = vpop.f32.mrf.mxu0 }
 0x416   :  { %v3061_v9 = vadd.f32 %v6877_v24, %v2987_v63  ;;  %v3149_v55 = vpack.c.bf16 %v3109_v2, %v3105_v26  ;;  %v3053_v30 = vadd.f32 %v6877_v24, %v2979_v40  ;;  %v3081_v53 = vmax.f32 %v3017_v3, 0.0 }
 0x417   :  { %v3057_v37 = vadd.f32 %v6877_v24, %v2983_v59  ;;  %v3113_v29 = vmax.f32 %v3049_v16, 0.0  ;;  %v3085_v27 = vmax.f32 %v3021_v50, 0.0  ;;  %v2883_v33 = vsub.f32 %v6792_v46, %v6857_v48  ;;  %v3525_v46 = vpop.f32.mrf.mxu2 }
 0x418   :  { %v3125_v19 = vmax.f32 %v3061_v9, 0.0  ;;  %v3117_v18 = vmax.f32 %v3053_v30, 0.0  ;;  %v2887_v63 = vsub.f32 %v6801_v14, %v6857_v48  ;;  %v3478_v14 = vpop.f32.mrf.mxu1 }
 0x419   :  { %v3121_v47 = vmax.f32 %v3057_v37, 0.0  ;;  %v3137_v39 = vpack.c.bf16 %v3085_v27, %v3081_v53  ;;  %v2951_v49 = vmul.f32 %v6872_v8, %v2883_v33 }
 0x41a   :  { %v3153_v35 = vpack.c.bf16 %v3117_v18, %v3113_v29  ;;  %v2955_v43 = vmul.f32 %v6872_v8, %v2887_v63 }
 0x41b   :  { %v3157_v57 = vpack.c.bf16 %v3125_v19, %v3121_v47  ;;  %v3025_v20 = vadd.f32 %v6877_v24, %v2951_v49 }
 0x41c   :  { %v3029_v11 = vadd.f32 %v6877_v24, %v2955_v43  ;;  %v6940_v24 = vld [vmem:[%s7094_s8] ss:$0 sm:$0xff] }
 0x41d   :  { %v3089_v34 = vmax.f32 %v3025_v20, 0.0  ;;  %v3432_v54 = vpop.f32.mrf.mxu0  ;;  %v3428_v44 = vadd.f32 %v6940_v24, %v3427_v41  ;;  %v3430_v23 = vadd.f32 %v6940_v24, %v3429_v1 }
 0x41e   :  { %v3093_v61 = vmax.f32 %v3029_v11, 0.0  ;;  %v3433_v28 = vadd.f32 %v6940_v24, %v3432_v54 }
 0x41f   :  { %v3527_v48 = vpop.f32.mrf.mxu2  ;;  %v3479_v38 = vadd.f32 %v3478_v14, %v3430_v23 }
 0x420   :  { %v3141_v60 = vpack.c.bf16 %v3093_v61, %v3089_v34  ;;  %v3481_v8 = vpop.f32.mrf.mxu1 }
 0x421   :  { %v3528_v5 = vadd.f32 %v3527_v48, %v3479_v38  ;;  %v3482_v25 = vadd.f32 %v3481_v8, %v3433_v28 }
 0x425   :  { %3578 = vmatmul.bf16.gmra.mxu3 %v3133_v45  ;;  %v3434_v10 = vpop.f32.mrf.mxu0  ;;  %v3477_v45 = vadd.f32 %v3476_v17, %v3428_v44 }
 0x426   :  { %v3435_v3 = vadd.f32 %v6940_v24, %v3434_v10 }
 0x427   :  { %v3530_v62 = vpop.f32.mrf.mxu2  ;;  %v3526_v52 = vadd.f32 %v3525_v46, %v3477_v45 }
 0x428   :  { %v3483_v31 = vpop.f32.mrf.mxu1  ;;  %v3531_v58 = vadd.f32 %v3530_v62, %v3482_v25 }
 0x429   :  { %v3484_v50 = vadd.f32 %v3483_v31, %v3435_v3 }
 0x42d   :  { %v3437_v0 = vpop.f32.mrf.mxu0 }
 0x42e   :  { %v3438_v9 = vadd.f32 %v6940_v24, %v3437_v0 }
 0x42f   :  { %v3532_v7 = vpop.f32.mrf.mxu2 }
 0x430   :  { %v3486_v4 = vpop.f32.mrf.mxu1 }
 0x431   :  { %v3487_v19 = vadd.f32 %v3486_v4, %v3438_v9 }
 0x435   :  { %3583 = vmatmul.bf16.gmra.mxu3 %v3137_v39  ;;  %v3439_v36 = vpop.f32.mrf.mxu0 }
 0x436   :  { %v3440_v27 = vadd.f32 %v6940_v24, %v3439_v36 }
 0x437   :  { %v3535_v6 = vpop.f32.mrf.mxu2 }
 0x438   :  { %v3488_v13 = vpop.f32.mrf.mxu1  ;;  %v3536_v47 = vadd.f32 %v3535_v6, %v3487_v19 }
 0x439   :  { %v3489_v63 = vadd.f32 %v3488_v13, %v3440_v27 }
 0x43d   :  { %v3442_v59 = vpop.f32.mrf.mxu0 }
 0x43e   :  { %v3443_v11 = vadd.f32 %v6940_v24, %v3442_v59 }
 0x43f   :  { %v3537_v26 = vpop.f32.mrf.mxu2 }
 0x440   :  { %v3538_v49 = vadd.f32 %v3537_v26, %v3489_v63 }
 0x445   :  { %3588 = vmatmul.bf16.gmra.mxu3 %v3141_v60  ;;  %v3444_v18 = vpop.f32.mrf.mxu0 }
 0x446   :  { %v3445_v14 = vadd.f32 %v6940_v24, %v3444_v18 }
 0x447   :  { %v3540_v37 = vpop.f32.mrf.mxu2 }
 0x44d   :  { %v3447_v43 = vpop.f32.mrf.mxu0 }
 0x44e   :  { %v3448_v45 = vadd.f32 %v6940_v24, %v3447_v43 }
 0x44f   :  { %v3542_v33 = vpop.f32.mrf.mxu2 }
 0x455   :  { %3593 = vmatmul.bf16.gmra.mxu3 %v3145_v42  ;;  %v3533_v42 = vadd.f32 %v3532_v7, %v3484_v50  ;;  %v3449_v54 = vpop.f32.mrf.mxu0 }
 0x456   :  { %v3450_v4 = vadd.f32 %v6940_v24, %v3449_v54 }
 0x457   :  { %v3545_v17 = vpop.f32.mrf.mxu2 }
 0x45f   :  { %v3547_v31 = vpop.f32.mrf.mxu2 }
 0x465   :  { %3598 = vmatmul.bf16.gmra.mxu3 %v3149_v55  ;;  %v3491_v55 = vpop.f32.mrf.mxu1 }
 0x466   :  { %v3492_v60 = vadd.f32 %v3491_v55, %v3443_v11 }
 0x468   :  { %v3541_v46 = vadd.f32 %v3540_v37, %v3492_v60 }
 0x475   :  { %3603 = vmatmul.bf16.gmra.mxu3 %v3153_v35 }
 0x485   :  { %3608 = vmatmul.bf16.gmra.mxu3 %v3157_v57  ;;  %v3493_v57 = vpop.f32.mrf.mxu1 }
 0x486   :  { %v3494_v62 = vadd.f32 %v3493_v57, %v3445_v14 }
 0x488   :  { %v3543_v44 = vadd.f32 %v3542_v33, %v3494_v62 }
 0x48d   :  { %v3496_v41 = vpop.f32.mrf.mxu1 }
 0x48e   :  { %v3497_v23 = vadd.f32 %v3496_v41, %v3448_v45 }
 0x495   :  { %v3498_v10 = vpop.f32.mrf.mxu1 }
 0x496   :  { %v3499_v36 = vadd.f32 %v3498_v10, %v3450_v4 }
 0x498   :  { %v3574_v12 = vpop.f32.mrf.mxu3  ;;  %v3548_v25 = vadd.f32 %v3547_v31, %v3499_v36 }
 0x499   :  { %v6944_v22 = vadd.f32 %v3574_v12, %v3526_v52  ;;  %v3452_v12 = vpop.f32.mrf.mxu0 }
 0x49b   :  { %v3614_v51 = vmul.f32 %v6944_v22, %v6944_v22 }
 0x49d   :  { %3630 = vadd.xlane.f32.xlu0 %v3614_v51  ;;  %v3546_v51 = vadd.f32 %v3545_v17, %v3497_v23  ;;  %v3501_v6 = vpop.f32.mrf.mxu1 }
 0x4a0   :  { %v3576_v32 = vpop.f32.mrf.mxu3 }
 0x4a1   :  { %v6949_v21 = vadd.f32 %v3576_v32, %v3528_v5  ;;  %v3550_v32 = vpop.f32.mrf.mxu2 }
 0x4a3   :  { %v3615_v15 = vmul.f32 %v6949_v21, %v6949_v21 }
 0x4a5   :  { %3632 = vadd.xlane.f32.xlu0 %v3615_v15  ;;  %v3454_v15 = vpop.f32.mrf.mxu0 }
 0x4a6   :  { %v3455_v9 = vadd.f32 %v6940_v24, %v3454_v15 }
 0x4a8   :  { %v3579_v56 = vpop.f32.mrf.mxu3 }
 0x4a9   :  { %v6954_v2 = vadd.f32 %v3579_v56, %v3531_v58  ;;  %v3453_v58 = vadd.f32 %v6940_v24, %v3452_v12  ;;  %v3503_v56 = vpop.f32.mrf.mxu1 }
 0x4ab   :  { %v3616_v40 = vmul.f32 %v6954_v2, %v6954_v2  ;;  %v3502_v59 = vadd.f32 %v3501_v6, %v3453_v58 }
 0x4ad   :  { %3634 = vadd.xlane.f32.xlu1 %v3616_v40  ;;  %v3552_v40 = vpop.f32.mrf.mxu2  ;;  %v3551_v50 = vadd.f32 %v3550_v32, %v3502_v59 }
 0x4b0   :  { %v3581_v16 = vpop.f32.mrf.mxu3 }
 0x4b1   :  { %v6959_v30 = vadd.f32 %v3581_v16, %v3533_v42  ;;  %v3457_v42 = vpop.f32.mrf.mxu0  ;;  %v3506_v19 = vpop.f32.mrf.mxu1 }
 0x4b2   :  { %v3458_v27 = vadd.f32 %v6940_v24, %v3457_v42 }
 0x4b3   :  { %v3617_v29 = vmul.f32 %v6959_v30, %v6959_v30 }
 0x4b4   :  { %v3507_v63 = vadd.f32 %v3506_v19, %v3458_v27 }
 0x4b5   :  { %3636 = vadd.xlane.f32.xlu1 %v3617_v29  ;;  %v3504_v29 = vadd.f32 %v3503_v56, %v3455_v9  ;;  %v3555_v18 = vpop.f32.mrf.mxu2 }
 0x4b6   :  { %v3556_v43 = vadd.f32 %v3555_v18, %v3507_v63 }
 0x4b8   :  { %v3584_v53 = vpop.f32.mrf.mxu3 }
 0x4b9   :  { %v6964_v35 = vadd.f32 %v3584_v53, %v3536_v47  ;;  %v3553_v47 = vadd.f32 %v3552_v40, %v3504_v29 }
 0x4bb   :  { %v3618_v39 = vmul.f32 %v6964_v35, %v6964_v35 }
 0x4bd   :  { %3638 = vadd.xlane.f32.xlu2 %v3618_v39  ;;  %v3459_v39 = vpop.f32.mrf.mxu0 }
 0x4c0   :  { %v3586_v20 = vpop.f32.mrf.mxu3 }
 0x4c1   :  { %v6969_v34 = vadd.f32 %v3586_v20, %v3538_v49  ;;  %v3508_v49 = vpop.f32.mrf.mxu1  ;;  %v3557_v20 = vpop.f32.mrf.mxu2 }
 0x4c3   :  { %v3619_v61 = vmul.f32 %v6969_v34, %v6969_v34 }
 0x4c5   :  { %3640 = vadd.xlane.f32.xlu2 %v3619_v61  ;;  %v3460_v61 = vadd.f32 %v6940_v24, %v3459_v39  ;;  %v3462_v17 = vpop.f32.mrf.mxu0 }
 0x4c6   :  { %v3463_v54 = vadd.f32 %v6940_v24, %v3462_v17 }
 0x4c8   :  { %v3589_v1 = vpop.f32.mrf.mxu3 }
 0x4c9   :  { %v6974_v48 = vadd.f32 %v3589_v1, %v3541_v46  ;;  %v3509_v46 = vadd.f32 %v3508_v49, %v3460_v61  ;;  %v3511_v62 = vpop.f32.mrf.mxu1  ;;  %v3560_v10 = vpop.f32.mrf.mxu2 }
 0x4ca   :  { %v3512_v31 = vadd.f32 %v3511_v62, %v3463_v54 }
 0x4cb   :  { %v3620_v8 = vmul.f32 %v6974_v48, %v6974_v48  ;;  %v3558_v1 = vadd.f32 %v3557_v20, %v3509_v46 }
 0x4cc   :  { %v3561_v45 = vadd.f32 %v3560_v10, %v3512_v31 }
 0x4cd   :  { %3642 = vadd.xlane.f32.xlu0 %v3620_v8 }
 0x4d0   :  { %v3591_v7 = vpop.f32.mrf.mxu3 }
 0x4d1   :  { %v6979_v52 = vadd.f32 %v3591_v7, %v3543_v44  ;;  %v3464_v7 = vpop.f32.mrf.mxu0  ;;  %v3562_v4 = vpop.f32.mrf.mxu2 }
 0x4d2   :  { %v3465_v12 = vadd.f32 %v6940_v24, %v3464_v7 }
 0x4d3   :  { %v3621_v0 = vmul.f32 %v6979_v52, %v6979_v52 }
 0x4d5   :  { %3644 = vadd.xlane.f32.xlu1 %v3621_v0 }
 0x4d8   :  { %v3594_v38 = vpop.f32.mrf.mxu3 }
 0x4d9   :  { %v6984_v5 = vadd.f32 %v3594_v38, %v3546_v51  ;;  %v3513_v38 = vpop.f32.mrf.mxu1 }
 0x4da   :  { %v3514_v6 = vadd.f32 %v3513_v38, %v3465_v12 }
 0x4db   :  { %v3622_v28 = vmul.f32 %v6984_v5, %v6984_v5 }
 0x4dc   :  { %v3563_v32 = vadd.f32 %v3562_v4, %v3514_v6 }
 0x4dd   :  { %3646 = vadd.xlane.f32.xlu2 %v3622_v28 }
 0x4e0   :  { %v3596_v13 = vpop.f32.mrf.mxu3 }
 0x4e1   :  { %v6989_v26 = vadd.f32 %v3596_v13, %v3548_v25 }
 0x4e3   :  { %v3623_v3 = vmul.f32 %v6989_v26, %v6989_v26 }
 0x4e5   :  { %3648 = vadd.xlane.f32.xlu0 %v3623_v3 }
 0x4e8   :  { %v3599_v16 = vpop.f32.mrf.mxu3 }
 0x4e9   :  { %v6994_v55 = vadd.f32 %v3599_v16, %v3551_v50 }
 0x4eb   :  { %v3624_v37 = vmul.f32 %v6994_v55, %v6994_v55 }
 0x4ed   :  { %3650 = vadd.xlane.f32.xlu1 %v3624_v37 }
 0x4f0   :  { %v3601_v53 = vpop.f32.mrf.mxu3 }
 0x4f1   :  { %v6999_v57 = vadd.f32 %v3601_v53, %v3553_v47 }
 0x4f3   :  { %v3625_v33 = vmul.f32 %v6999_v57, %v6999_v57 }
 0x4f5   :  { %3652 = vadd.xlane.f32.xlu2 %v3625_v33 }
 0x4f8   :  { %v3604_v11 = vpop.f32.mrf.mxu3 }
 0x4f9   :  { %v7004_v60 = vadd.f32 %v3604_v11, %v3556_v43 }
 0x4fb   :  { %v3626_v41 = vmul.f32 %v7004_v60, %v7004_v60 }
 0x4fd   :  { %3654 = vadd.xlane.f32.xlu0 %v3626_v41 }
 0x500   :  { %v3606_v14 = vpop.f32.mrf.mxu3 }
 0x501   :  { %v7009_v8 = vadd.f32 %v3606_v14, %v3558_v1 }
 0x503   :  { %v3627_v44 = vmul.f32 %v7009_v8, %v7009_v8 }
 0x505   :  { %3656 = vadd.xlane.f32.xlu1 %v3627_v44 }
 0x508   :  { %v3609_v0 = vpop.f32.mrf.mxu3 }
 0x509   :  { %v7014_v23 = vadd.f32 %v3609_v0, %v3561_v45 }
 0x50b   :  { %v3628_v51 = vmul.f32 %v7014_v23, %v7014_v23 }
 0x50d   :  { %3658 = vadd.xlane.f32.xlu2 %v3628_v51 }
 0x510   :  { %v3611_v28 = vpop.f32.mrf.mxu3  ;;  %v3631_v36 = vpop.xlane.xlu0 %3630 }
 0x511   :  { %v7018_v15 = vadd.f32 %v3611_v28, %v3563_v32  ;;  %4791 = vrsqrt.f32 %v3631_v36  ;;  %vm3668_vm10 = vweird.f32 %v3631_v36 }
 0x513   :  { %v3629_v25 = vmul.f32 %v7018_v15, %v7018_v15 }
 0x515   :  { %3660 = vadd.xlane.f32.xlu0 %v3629_v25 }
 0x517   :  { %v4792_v24 = vpop.eup %4791 }
 0x518   :  { %v3663_v13 = vmul.f32 %v4792_v24, %v3631_v36  ;;  %v3633_v58 = vpop.xlane.xlu0 %3632  ;;  %vm3669_vm9 = vweird.f32 %v4792_v24 }
 0x519   :  { %4793 = vrsqrt.f32 %v3633_v58  ;;  %vm3670_vm11 = vmor %vm3668_vm10, %vm3669_vm9  ;;  %vm3678_vm13 = vweird.f32 %v3633_v58 }
 0x51a   :  { %v3664_v56 = vmul.f32 %v4792_v24, %v3663_v13 }
 0x51c   :  { %v3665_v3 = vmul.f32 0.5, %v3664_v56 }
 0x51e   :  { %v3666_v40 = vsub.f32 1.5, %v3665_v3 }
 0x51f   :  { %v4794_v59 = vpop.eup %4793 }
 0x520   :  { %v3667_v50 = vmul.f32 %v4792_v24, %v3666_v40  ;;  %v3673_v42 = vmul.f32 %v4794_v59, %v3633_v58  ;;  %v3635_v16 = vpop.xlane.xlu1 %3634  ;;  %vm3679_vm12 = vweird.f32 %v4794_v59 }
 0x521   :  { %4795 = vrsqrt.f32 %v3635_v16  ;;  %vm3680_vm14 = vmor %vm3678_vm13, %vm3679_vm12  ;;  %vm3688_vm0 = vweird.f32 %v3635_v16 }
 0x522   :  { %v3671_v9 = vsel %vm3670_vm11, %v4792_v24, %v3667_v50  ;;  %v3674_v37 = vmul.f32 %v4794_v59, %v3673_v42 }
 0x523   :  { %v3822_v29 = vmul.f32 %v3671_v9, %v6944_v22 }
 0x524   :  { %v3675_v19 = vmul.f32 0.5, %v3674_v37 }
 0x525   :  { %3838 = vst [vmem:[%s7095_s9] sm:$0xff] %v3822_v29 }
 0x526   :  { %v3676_v18 = vsub.f32 1.5, %v3675_v19 }
 0x527   :  { %v4796_v47 = vpop.eup %4795 }
 0x528   :  { %v3677_v53 = vmul.f32 %v4794_v59, %v3676_v18  ;;  %v3683_v27 = vmul.f32 %v4796_v47, %v3635_v16  ;;  %v3637_v39 = vpop.xlane.xlu1 %3636  ;;  %vm3689_vm15 = vweird.f32 %v4796_v47 }
 0x529   :  { %4797 = vrsqrt.f32 %v3637_v39  ;;  %vm3690_vm1 = vmor %vm3688_vm0, %vm3689_vm15  ;;  %vm3698_vm3 = vweird.f32 %v3637_v39 }
 0x52a   :  { %v3681_v33 = vsel %vm3680_vm14, %v4794_v59, %v3677_v53  ;;  %v3684_v63 = vmul.f32 %v4796_v47, %v3683_v27 }
 0x52b   :  { %v3823_v49 = vmul.f32 %v3681_v33, %v6949_v21 }
 0x52c   :  { %v3685_v43 = vmul.f32 0.5, %v3684_v63 }
 0x52d   :  { %3839 = vst [vmem:[%s7095_s9 + $0x8] sm:$0xff] %v3823_v49 }
 0x52e   :  { %v3686_v22 = vsub.f32 1.5, %v3685_v43 }
 0x52f   :  { %v4798_v20 = vpop.eup %4797 }
 0x530   :  { %v3687_v11 = vmul.f32 %v4796_v47, %v3686_v22  ;;  %v3693_v61 = vmul.f32 %v4798_v20, %v3637_v39  ;;  %v3639_v41 = vpop.xlane.xlu2 %3638  ;;  %vm3699_vm2 = vweird.f32 %v4798_v20 }
 0x531   :  { %4799 = vrsqrt.f32 %v3639_v41  ;;  %vm3700_vm4 = vmor %vm3698_vm3, %vm3699_vm2  ;;  %vm3708_vm6 = vweird.f32 %v3639_v41 }
 0x532   :  { %v3691_v17 = vsel %vm3690_vm1, %v4796_v47, %v3687_v11  ;;  %v3694_v46 = vmul.f32 %v4798_v20, %v3693_v61 }
 0x533   :  { %v3824_v1 = vmul.f32 %v3691_v17, %v6954_v2 }
 0x534   :  { %v3695_v14 = vmul.f32 0.5, %v3694_v46 }
 0x535   :  { %3840 = vst [vmem:[%s7095_s9 + $0x10] sm:$0xff] %v3824_v1 }
 0x536   :  { %v3696_v21 = vsub.f32 1.5, %v3695_v14 }
 0x537   :  { %v4800_v54 = vpop.eup %4799 }
 0x538   :  { %v3697_v62 = vmul.f32 %v4798_v20, %v3696_v21  ;;  %v3703_v10 = vmul.f32 %v4800_v54, %v3639_v41  ;;  %v3641_v44 = vpop.xlane.xlu2 %3640  ;;  %vm3709_vm5 = vweird.f32 %v4800_v54 }
 0x539   :  { %4801 = vrsqrt.f32 %v3641_v44  ;;  %vm3710_vm7 = vmor %vm3708_vm6, %vm3709_vm5  ;;  %vm3718_vm9 = vweird.f32 %v3641_v44 }
 0x53a   :  { %v3701_v31 = vsel %vm3700_vm4, %v4798_v20, %v3697_v62  ;;  %v3704_v7 = vmul.f32 %v4800_v54, %v3703_v10 }
 0x53b   :  { %v3825_v45 = vmul.f32 %v3701_v31, %v6959_v30 }
 0x53c   :  { %v3705_v0 = vmul.f32 0.5, %v3704_v7 }
 0x53d   :  { %3841 = vst [vmem:[%s7095_s9 + $0x18] sm:$0xff] %v3825_v45 }
 0x53e   :  { %v3706_v2 = vsub.f32 1.5, %v3705_v0 }
 0x53f   :  { %v4802_v12 = vpop.eup %4801 }
 0x540   :  { %v3707_v51 = vmul.f32 %v4800_v54, %v3706_v2  ;;  %v3713_v38 = vmul.f32 %v4802_v12, %v3641_v44  ;;  %v3643_v4 = vpop.xlane.xlu0 %3642  ;;  %vm3719_vm8 = vweird.f32 %v4802_v12 }
 0x541   :  { %4803 = vrsqrt.f32 %v3643_v4  ;;  %vm3720_vm10 = vmor %vm3718_vm9, %vm3719_vm8  ;;  %vm3728_vm12 = vweird.f32 %v3643_v4 }
 0x542   :  { %v3711_v6 = vsel %vm3710_vm7, %v4800_v54, %v3707_v51  ;;  %v3714_v32 = vmul.f32 %v4802_v12, %v3713_v38 }
 0x543   :  { %v3826_v28 = vmul.f32 %v3711_v6, %v6964_v35 }
 0x544   :  { %v3715_v36 = vmul.f32 0.5, %v3714_v32 }
 0x545   :  { %3842 = vst [vmem:[%s7095_s9 + $0x20] sm:$0xff] %v3826_v28 }
 0x546   :  { %v3716_v30 = vsub.f32 1.5, %v3715_v36 }
 0x547   :  { %v4804_v25 = vpop.eup %4803 }
 0x548   :  { %v3717_v24 = vmul.f32 %v4802_v12, %v3716_v30  ;;  %v3723_v13 = vmul.f32 %v4804_v25, %v3643_v4  ;;  %v3645_v58 = vpop.xlane.xlu1 %3644  ;;  %vm3729_vm11 = vweird.f32 %v4804_v25 }
 0x549   :  { %4805 = vrsqrt.f32 %v3645_v58  ;;  %vm3730_vm13 = vmor %vm3728_vm12, %vm3729_vm11  ;;  %vm3738_vm15 = vweird.f32 %v3645_v58 }
 0x54a   :  { %v3721_v56 = vsel %vm3720_vm10, %v4802_v12, %v3717_v24  ;;  %v3724_v3 = vmul.f32 %v4804_v25, %v3723_v13 }
 0x54b   :  { %v3827_v40 = vmul.f32 %v3721_v56, %v6969_v34 }
 0x54c   :  { %v3725_v59 = vmul.f32 0.5, %v3724_v3 }
 0x54d   :  { %3843 = vst [vmem:[%s7095_s9 + $0x28] sm:$0xff] %v3827_v40 }
 0x54e   :  { %v3726_v35 = vsub.f32 1.5, %v3725_v59 }
 0x54f   :  { %v4806_v50 = vpop.eup %4805 }
 0x550   :  { %v3727_v42 = vmul.f32 %v4804_v25, %v3726_v35  ;;  %v3733_v16 = vmul.f32 %v4806_v50, %v3645_v58  ;;  %v3647_v9 = vpop.xlane.xlu2 %3646  ;;  %vm3739_vm14 = vweird.f32 %v4806_v50 }
 0x551   :  { %4807 = vrsqrt.f32 %v3647_v9  ;;  %vm3740_vm0 = vmor %vm3738_vm15, %vm3739_vm14  ;;  %vm3748_vm2 = vweird.f32 %v3647_v9 }
 0x552   :  { %v3731_v37 = vsel %vm3730_vm13, %v4804_v25, %v3727_v42  ;;  %v3734_v29 = vmul.f32 %v4806_v50, %v3733_v16 }
 0x553   :  { %v3828_v19 = vmul.f32 %v3731_v37, %v6974_v48 }
 0x554   :  { %v3735_v18 = vmul.f32 0.5, %v3734_v29 }
 0x555   :  { %3844 = vst [vmem:[%s7095_s9 + $0x30] sm:$0xff] %v3828_v19 }
 0x556   :  { %v3736_v34 = vsub.f32 1.5, %v3735_v18 }
 0x557   :  { %v4808_v47 = vpop.eup %4807 }
 0x558   :  { %v3737_v53 = vmul.f32 %v4806_v50, %v3736_v34  ;;  %v3743_v27 = vmul.f32 %v4808_v47, %v3647_v9  ;;  %v3649_v39 = vpop.xlane.xlu0 %3648  ;;  %vm3749_vm1 = vweird.f32 %v4808_v47 }
 0x559   :  { %4809 = vrsqrt.f32 %v3649_v39  ;;  %vm3750_vm3 = vmor %vm3748_vm2, %vm3749_vm1  ;;  %vm3758_vm5 = vweird.f32 %v3649_v39 }
 0x55a   :  { %v3741_v33 = vsel %vm3740_vm0, %v4806_v50, %v3737_v53  ;;  %v3744_v63 = vmul.f32 %v4808_v47, %v3743_v27 }
 0x55b   :  { %v3829_v49 = vmul.f32 %v3741_v33, %v6979_v52 }
 0x55c   :  { %v3745_v43 = vmul.f32 0.5, %v3744_v63 }
 0x55d   :  { %3845 = vst [vmem:[%s7095_s9 + $0x38] sm:$0xff] %v3829_v49 }
 0x55e   :  { %v3746_v48 = vsub.f32 1.5, %v3745_v43 }
 0x55f   :  { %v4810_v22 = vpop.eup %4809 }
 0x560   :  { %v3747_v20 = vmul.f32 %v4808_v47, %v3746_v48  ;;  %v3753_v11 = vmul.f32 %v4810_v22, %v3649_v39  ;;  %v3651_v61 = vpop.xlane.xlu1 %3650  ;;  %vm3759_vm4 = vweird.f32 %v4810_v22 }
 0x561   :  { %4811 = vrsqrt.f32 %v3651_v61  ;;  %vm3760_vm6 = vmor %vm3758_vm5, %vm3759_vm4  ;;  %vm3768_vm8 = vweird.f32 %v3651_v61 }
 0x562   :  { %v3751_v41 = vsel %vm3750_vm3, %v4808_v47, %v3747_v20  ;;  %v3754_v17 = vmul.f32 %v4810_v22, %v3753_v11 }
 0x563   :  { %v3830_v46 = vmul.f32 %v3751_v41, %v6984_v5 }
 0x564   :  { %v3755_v1 = vmul.f32 0.5, %v3754_v17 }
 0x565   :  { %3846 = vst [vmem:[%s7095_s9 + $0x40] sm:$0xff] %v3830_v46 }
 0x566   :  { %v3756_v52 = vsub.f32 1.5, %v3755_v1 }
 0x567   :  { %v4812_v14 = vpop.eup %4811 }
 0x568   :  { %v3757_v21 = vmul.f32 %v4810_v22, %v3756_v52  ;;  %v3763_v54 = vmul.f32 %v4812_v14, %v3651_v61  ;;  %v3653_v62 = vpop.xlane.xlu2 %3652  ;;  %vm3769_vm7 = vweird.f32 %v4812_v14 }
 0x569   :  { %4813 = vrsqrt.f32 %v3653_v62  ;;  %vm3770_vm9 = vmor %vm3768_vm8, %vm3769_vm7  ;;  %vm3778_vm11 = vweird.f32 %v3653_v62 }
 0x56a   :  { %v3761_v10 = vsel %vm3760_vm6, %v4810_v22, %v3757_v21  ;;  %v3764_v44 = vmul.f32 %v4812_v14, %v3763_v54 }
 0x56b   :  { %v3831_v31 = vmul.f32 %v3761_v10, %v6989_v26 }
 0x56c   :  { %v3765_v7 = vmul.f32 0.5, %v3764_v44 }
 0x56d   :  { %3847 = vst [vmem:[%s7095_s9 + $0x48] sm:$0xff] %v3831_v31 }
 0x56e   :  { %v3766_v5 = vsub.f32 1.5, %v3765_v7 }
 0x56f   :  { %v4814_v45 = vpop.eup %4813 }
 0x570   :  { %v3767_v0 = vmul.f32 %v4812_v14, %v3766_v5  ;;  %v3773_v2 = vmul.f32 %v4814_v45, %v3653_v62  ;;  %v3655_v12 = vpop.xlane.xlu0 %3654  ;;  %vm3779_vm10 = vweird.f32 %v4814_v45 }
 0x571   :  { %4815 = vrsqrt.f32 %v3655_v12  ;;  %vm3780_vm12 = vmor %vm3778_vm11, %vm3779_vm10  ;;  %vm3788_vm14 = vweird.f32 %v3655_v12 }
 0x572   :  { %v3771_v51 = vsel %vm3770_vm9, %v4812_v14, %v3767_v0  ;;  %v3774_v38 = vmul.f32 %v4814_v45, %v3773_v2 }
 0x573   :  { %v3832_v4 = vmul.f32 %v3771_v51, %v6994_v55 }
 0x574   :  { %v3775_v6 = vmul.f32 0.5, %v3774_v38 }
 0x575   :  { %3848 = vst [vmem:[%s7095_s9 + $0x50] sm:$0xff] %v3832_v4 }
 0x576   :  { %v3776_v26 = vsub.f32 1.5, %v3775_v6 }
 0x577   :  { %v4816_v32 = vpop.eup %4815 }
 0x578   :  { %v3777_v28 = vmul.f32 %v4814_v45, %v3776_v26  ;;  %v3783_v36 = vmul.f32 %v4816_v32, %v3655_v12  ;;  %v3657_v30 = vpop.xlane.xlu1 %3656  ;;  %vm3789_vm13 = vweird.f32 %v4816_v32 }
 0x579   :  { %4817 = vrsqrt.f32 %v3657_v30  ;;  %vm3790_vm15 = vmor %vm3788_vm14, %vm3789_vm13  ;;  %vm3798_vm1 = vweird.f32 %v3657_v30 }
 0x57a   :  { %v3781_v25 = vsel %vm3780_vm12, %v4814_v45, %v3777_v28  ;;  %v3784_v24 = vmul.f32 %v4816_v32, %v3783_v36 }
 0x57b   :  { %v3833_v13 = vmul.f32 %v3781_v25, %v6999_v57 }
 0x57c   :  { %v3785_v58 = vmul.f32 0.5, %v3784_v24 }
 0x57d   :  { %3849 = vst [vmem:[%s7095_s9 + $0x58] sm:$0xff] %v3833_v13 }
 0x57e   :  { %v3786_v55 = vsub.f32 1.5, %v3785_v58 }
 0x57f   :  { %v4818_v56 = vpop.eup %4817 }
 0x580   :  { %v3787_v3 = vmul.f32 %v4816_v32, %v3786_v55  ;;  %v3793_v40 = vmul.f32 %v4818_v56, %v3657_v30  ;;  %v3659_v59 = vpop.xlane.xlu2 %3658  ;;  %vm3799_vm0 = vweird.f32 %v4818_v56 }
 0x581   :  { %4819 = vrsqrt.f32 %v3659_v59  ;;  %vm3800_vm2 = vmor %vm3798_vm1, %vm3799_vm0  ;;  %vm3808_vm4 = vweird.f32 %v3659_v59 }
 0x582   :  { %v3791_v35 = vsel %vm3790_vm15, %v4816_v32, %v3787_v3  ;;  %v3794_v50 = vmul.f32 %v4818_v56, %v3793_v40 }
 0x583   :  { %v3834_v42 = vmul.f32 %v3791_v35, %v7004_v60 }
 0x584   :  { %v3795_v16 = vmul.f32 0.5, %v3794_v50 }
 0x585   :  { %3850 = vst [vmem:[%s7095_s9 + $0x60] sm:$0xff] %v3834_v42 }
 0x586   :  { %v3796_v57 = vsub.f32 1.5, %v3795_v16 }
 0x587   :  { %v4820_v9 = vpop.eup %4819 }
 0x588   :  { %v3797_v37 = vmul.f32 %v4818_v56, %v3796_v57  ;;  %v3803_v29 = vmul.f32 %v4820_v9, %v3659_v59  ;;  %v3661_v19 = vpop.xlane.xlu0 %3660  ;;  %vm3809_vm3 = vweird.f32 %v4820_v9 }
 0x589   :  { %4821 = vrsqrt.f32 %v3661_v19  ;;  %vm3810_vm5 = vmor %vm3808_vm4, %vm3809_vm3  ;;  %vm3818_vm7 = vweird.f32 %v3661_v19 }
 0x58a   :  { %v3801_v18 = vsel %vm3800_vm2, %v4818_v56, %v3797_v37  ;;  %v3804_v34 = vmul.f32 %v4820_v9, %v3803_v29 }
 0x58b   :  { %v3835_v47 = vmul.f32 %v3801_v18, %v7009_v8 }
 0x58c   :  { %v3805_v53 = vmul.f32 0.5, %v3804_v34 }
 0x58d   :  { %3851 = vst [vmem:[%s7095_s9 + $0x68] sm:$0xff] %v3835_v47 }
 0x58e   :  { %v3806_v60 = vsub.f32 1.5, %v3805_v53 }
 0x58f   :  { %v4822_v27 = vpop.eup %4821 }
 0x590   :  { %v3807_v39 = vmul.f32 %v4820_v9, %v3806_v60  ;;  %v3813_v33 = vmul.f32 %v4822_v27, %v3661_v19  ;;  %vm3819_vm6 = vweird.f32 %v4822_v27 }
 0x591   :  { %vm3820_vm8 = vmor %vm3818_vm7, %vm3819_vm6 }
 0x592   :  { %v3811_v63 = vsel %vm3810_vm5, %v4820_v9, %v3807_v39  ;;  %v3814_v49 = vmul.f32 %v4822_v27, %v3813_v33 }
 0x593   :  { %v3836_v43 = vmul.f32 %v3811_v63, %v7014_v23 }
 0x594   :  { %v3815_v48 = vmul.f32 0.5, %v3814_v49 }
 0x595   :  { %3852 = vst [vmem:[%s7095_s9 + $0x70] sm:$0xff] %v3836_v43 }
 0x596   :  { %v3816_v8 = vsub.f32 1.5, %v3815_v48 }
 0x598   :  { %v3817_v22 = vmul.f32 %v4822_v27, %v3816_v8 }
 0x59a   :  { %v3821_v20 = vsel %vm3820_vm8, %v4822_v27, %v3817_v22 }
 0x59b   :  { %v3837_v11 = vmul.f32 %v3821_v20, %v7018_v15 }
 0x59d   :  { %3853 = vst [vmem:[%s7095_s9 + $0x78] sm:$0xff] %v3837_v11 }
 0x59e   :  { %3858 = vsyncpa [#allocation3], 1 }

</bundles_post_ra>
